<compile_context>
chip_gen: v5e
topology: v5e:2x2
jax: 0.10.0
libtpu: 0.0.40
codegen_flags: <defaults>
</compile_context>

<pallas_src>
import math
import functools
import jax
import jax.numpy as jnp
from jax import lax
from jax.experimental import pallas as pl
from jax.experimental.pallas import tpu as pltpu

BN_EPS = 1e-5
_INV_SQRT2 = 1.0 / math.sqrt(2.0)


def _gelu_exact(x):
    # nn.GELU default = exact erf-based gelu (matches PyTorch numerics)
    return 0.5 * x * (1.0 + lax.erf(x * _INV_SQRT2))


# ---------------------------------------------------------------------------
# Fused kernel: fc1 (1x1+BN+GELU) -> depthwise 3x3 (+BN+GELU) -> fc2 (1x1+BN)
# ---------------------------------------------------------------------------

def _fused_kernel(x_ref, w1_ref, s1_ref, b1_ref, w9_ref, sm_ref, bm_ref,
                  w2t_ref, s2_ref, b2_ref, o_ref, hid_ref):
    """One (batch, H-band) tile.

    x_ref  : (1, H+2, W, Cin)    whole H-padded image (resident across bands of same b)
    w1_ref : (Cin, hidden)       s1/b1 : (1, hidden)   folded conv-bias + BN
    w9_ref : (9, hidden)         sm/bm : (1, hidden)
    w2t_ref: (Cout, hidden)      s2/b2 : (Cout, 1)
    o_ref  : (1, Cout, TH*W)     lane-dense output block ("NC(HW)" layout)
    hid_ref: (TH+2, W+2, hidden) VMEM scratch: zero-padded hidden activation of band
    """
    Hp2, W, Cin = x_ref.shape[1], x_ref.shape[2], x_ref.shape[3]
    H = Hp2 - 2
    TH = hid_ref.shape[0] - 2
    hidden = hid_ref.shape[2]
    Cout = o_ref.shape[1]

    hb = pl.program_id(1)
    row0 = hb * TH                                    # band start (padded coordinates)

    # ---- fc1: 1x1 conv as matmul + BN + GELU over TH+2 rows (1-row halo each side) ---
    xb = x_ref[:, pl.ds(row0, TH + 2), :, :]          # (1, TH+2, W, Cin)
    xb = xb.reshape((TH + 2) * W, Cin)
    h1 = jnp.dot(xb, w1_ref[...], preferred_element_type=jnp.float32)
    h1 = _gelu_exact(h1 * s1_ref[...] + b1_ref[...])
    h1 = h1.reshape(TH + 2, W, hidden)

    # Rows outside the real image must contribute ZEROS to the depthwise conv
    # (fc1 of a zero-padded input row would be gelu(bias) != 0), so mask them out.
    grow = row0 + lax.broadcasted_iota(jnp.int32, (TH + 2, 1, 1), 0)
    h1 = jnp.where(jnp.logical_and(grow >= 1, grow <= H), h1, 0.0)

    # ---- stage into zero-W-padded VMEM scratch (halo handled fully on-chip) ----------
    hid_ref[:, 1:W + 1, :] = h1
    zcol = jnp.zeros((TH + 2, 1, hidden), jnp.float32)
    hid_ref[:, 0:1, :] = zcol
    hid_ref[:, W + 1:W + 2, :] = zcol

    # ---- mid: depthwise 3x3 conv + BN + GELU ------------------------------------------
    acc = jnp.zeros((TH, W, hidden), jnp.float32)
    for ky in range(3):
        for kx in range(3):
            tap = w9_ref[ky * 3 + kx: ky * 3 + kx + 1, :]          # (1, hidden)
            acc = acc + hid_ref[ky:ky + TH, kx:kx + W, :] * tap
    y = _gelu_exact(acc * sm_ref[...] + bm_ref[...])

    # ---- fc2: 1x1 conv as matmul + BN, produced transposed -> lane-dense store -------
    yf = y.reshape(TH * W, hidden)
    y2t = lax.dot_general(w2t_ref[...], yf, (((1,), (1,)), ((), ())),
                          preferred_element_type=jnp.float32)      # (Cout, TH*W)
    y2t = y2t * s2_ref[...] + b2_ref[...]
    o_ref[...] = y2t.reshape(1, Cout, TH * W).astype(o_ref.dtype)


# ---------------------------------------------------------------------------
# Wrapper
# ---------------------------------------------------------------------------

def _pick_tile_h(H, W, hidden, vmem_budget_bytes=8 << 20):
    """Largest divisor of H whose output band is lane-dense (tile_h*W % 128 == 0)
    and whose padded hidden scratch fits the VMEM budget; else whole-image bands."""
    def scratch_bytes(th):
        return (th + 2) * (W + 2) * hidden * 4
    cands = [d for d in range(1, H + 1)
             if H % d == 0 and (d * W) % 128 == 0
             and scratch_bytes(d) <= vmem_budget_bytes]
    return max(cands) if cands else H


def _fold_bn(conv_bias, gamma, beta, mean, var):
    """Fold conv bias + BatchNorm (eval / running stats) into per-channel scale & bias."""
    s = gamma / jnp.sqrt(var + BN_EPS)
    return s, (conv_bias - mean) * s + beta


def conv_mlp_with_norm(x_nchw, params, tile_h=None):
    """Forward pass of ConvMlpWithNorm (mid_conv=True, drop=0.0, eval-mode BN)."""
    B, Cin, H, W = x_nchw.shape
    hidden = params["w1"].shape[1]
    Cout = params["w2"].shape[1]

    if tile_h is None:
        tile_h = _pick_tile_h(H, W, hidden)
    assert H % tile_h == 0 and (tile_h == H or (tile_h * W) % 128 == 0), (tile_h, H, W)
    n_bands = H // tile_h

    s1, b1 = _fold_bn(params["b1"], *params["bn1"])
    sm, bm = _fold_bn(params["bm"], *params["bnm"])
    s2, b2 = _fold_bn(params["b2"], *params["bn2"])

    # NCHW -> NHWC (small Cin tensor only) + 1-row zero halo on H.
    # The large hidden activation is never written to or padded in HBM.
    x_nhwc = jnp.transpose(x_nchw, (0, 2, 3, 1))
    x_pad = jnp.pad(x_nhwc, ((0, 0), (1, 1), (0, 0), (0, 0)))

    const = lambda b, h: (0, 0)
    out_flat = pl.pallas_call(
        _fused_kernel,
        out_shape=jax.ShapeDtypeStruct((B, Cout, H * W), x_nchw.dtype),
        grid=(B, n_bands),
        in_specs=[
            pl.BlockSpec((1, H + 2, W, Cin), lambda b, h: (b, 0, 0, 0)),
            pl.BlockSpec((Cin, hidden), const),
            pl.BlockSpec((1, hidden), const),
            pl.BlockSpec((1, hidden), const),
            pl.BlockSpec((9, hidden), const),
            pl.BlockSpec((1, hidden), const),
            pl.BlockSpec((1, hidden), const),
            pl.BlockSpec((Cout, hidden), const),
            pl.BlockSpec((Cout, 1), const),
            pl.BlockSpec((Cout, 1), const),
        ],
        out_specs=pl.BlockSpec((1, Cout, tile_h * W), lambda b, h: (b, 0, h)),
        scratch_shapes=[pltpu.VMEM((tile_h + 2, W + 2, hidden), jnp.float32)],
        compiler_params=pltpu.CompilerParams(
            dimension_semantics=("parallel", "parallel")),
    )(x_pad,
      params["w1"], s1.reshape(1, hidden), b1.reshape(1, hidden),
      params["wm"], sm.reshape(1, hidden), bm.reshape(1, hidden),
      jnp.transpose(params["w2"]), s2.reshape(Cout, 1), b2.reshape(Cout, 1))

    # (B, Cout, H*W) -> (B, Cout, H, W): free row-major reshape, already NCHW.
    return out_flat.reshape(B, Cout, H, W)


# ---------------------------------------------------------------------------
# Pure-JAX reference (uses lax.conv) for a sanity check
# ---------------------------------------------------------------------------

def _bn_ref(y, bn):
    gamma, beta, mean, var = bn
    rs = lambda v: v[None, :, None, None]
    return (y - rs(mean)) / jnp.sqrt(rs(var) + BN_EPS) * rs(gamma) + rs(beta)


def reference_forward(x_nchw, params, hidden):
    w1_oihw = jnp.transpose(params["w1"], (1, 0))[:, :, None, None]     # (hid, Cin, 1, 1)
    w2_oihw = jnp.transpose(params["w2"], (1, 0))[:, :, None, None]     # (Cout, hid, 1, 1)
    wm_oihw = jnp.transpose(params["wm"].reshape(3, 3, hidden), (2, 0, 1))[:, None]  # (hid,1,3,3)

    y = lax.conv_general_dilated(x_nchw, w1_oihw, (1, 1), "VALID")
    y = y + params["b1"][None, :, None, None]
    y = jax.nn.gelu(_bn_ref(y, params["bn1"]), approximate=False)

    y = lax.conv_general_dilated(y, wm_oihw, (1, 1), ((1, 1), (1, 1)),
                                 feature_group_count=hidden)
    y = y + params["bm"][None, :, None, None]
    y = jax.nn.gelu(_bn_ref(y, params["bnm"]), approximate=False)

    y = lax.conv_general_dilated(y, w2_oihw, (1, 1), "VALID")
    y = y + params["b2"][None, :, None, None]
    y = _bn_ref(y, params["bn2"])
    return y


# ---------------------------------------------------------------------------
# Main
# ---------------------------------------------------------------------------

if __name__ == "__main__":
    B, Cin, H, W = 2, 4, 16, 16
    hidden = 32
    Cout = Cin                    # out_features defaults to in_features

    key = jax.random.PRNGKey(0)
    ks = jax.random.split(key, 16)

    def randn(k, shape, scale=0.1):
        return scale * jax.random.normal(k, shape, dtype=jnp.float32)

    def bn_params_c(k, c):
        k1, k2, k3, k4 = jax.random.split(k, 4)
        gamma = 1.0 + randn(k1, (c,))
        beta = randn(k2, (c,))
        mean = randn(k3, (c,))
        var = 1.0 + 0.1 * jax.nn.softplus(jax.random.normal(k4, (c,), dtype=jnp.float32))
        return (gamma, beta, mean, var)

    params = {
        # fc1: 1x1 conv (Cin -> hidden), stored as matmul weight (Cin, hidden)
        "w1": randn(ks[0], (Cin, hidden)),
        "b1": randn(ks[1], (hidden,)),
        "bn1": bn_params_c(ks[2], hidden),
        # mid: depthwise 3x3 conv, weight stored as (9, hidden)  [== (ky*3+kx, C)]
        "wm": randn(ks[3], (3, 3, hidden)).reshape(9, hidden),
        "bm": randn(ks[4], (hidden,)),
        "bnm": bn_params_c(ks[5], hidden),
        # fc2: 1x1 conv (hidden -> Cout), stored as (hidden, Cout)
        "w2": randn(ks[6], (hidden, Cout)),
        "b2": randn(ks[7], (Cout,)),
        "bn2": bn_params_c(ks[8], Cout),
    }

    x = jax.random.normal(ks[9], (B, Cin, H, W), dtype=jnp.float32)

    # Default (auto-picked) band size.
    out = jax.block_until_ready(jax.jit(conv_mlp_with_norm)(x, params))
    assert out.shape == (B, Cout, H, W), out.shape

    # Also exercise multi-band tiling with halo recomputation (tile_h=8 -> 2 bands).
    out_banded = jax.block_until_ready(
        jax.jit(functools.partial(conv_mlp_with_norm, tile_h=8))(x, params))

    ref = jax.block_until_ready(reference_forward(x, params, hidden))
    assert jnp.allclose(out, ref, rtol=1e-2, atol=1e-2), float(jnp.max(jnp.abs(out - ref)))
    assert jnp.allclose(out_banded, ref, rtol=1e-2, atol=1e-2), \
        float(jnp.max(jnp.abs(out_banded - ref)))

    print("KERNEL_OK")
</pallas_src>

<mosaic_0001>
module attributes {stable_mosaic.version = 11 : i64} {
  func.func @_fused_kernel(%arg0: i32, %arg1: i32, %arg2: memref<1x18x16x4xf32, #tpu.memory_space<vmem>>, %arg3: memref<4x32xf32, #tpu.memory_space<vmem>>, %arg4: memref<1x32xf32, #tpu.memory_space<vmem>>, %arg5: memref<1x32xf32, #tpu.memory_space<vmem>>, %arg6: memref<9x32xf32, #tpu.memory_space<vmem>>, %arg7: memref<1x32xf32, #tpu.memory_space<vmem>>, %arg8: memref<1x32xf32, #tpu.memory_space<vmem>>, %arg9: memref<4x32xf32, #tpu.memory_space<vmem>>, %arg10: memref<4x1xf32, #tpu.memory_space<vmem>>, %arg11: memref<4x1xf32, #tpu.memory_space<vmem>>, %arg12: memref<1x4x256xf32, #tpu.memory_space<vmem>>, %arg13: memref<18x18x32xf32, #tpu.memory_space<vmem>>) attributes {dimension_semantics = [#tpu.dimension_semantics<parallel>, #tpu.dimension_semantics<parallel>], iteration_bounds = array<i64: 2, 1>, scalar_prefetch = 0 : i64, scratch_operands = 1 : i64, tpu.core_type = #tpu.core_type<tc>, window_params = [{transform_indices = @transform_0, window_bounds = array<i64: 1, 18, 16, 4>}, {pipeline_mode = #tpu.pipeline_mode<synchronous>, transform_indices = @transform_1, window_bounds = array<i64: 4, 32>}, {pipeline_mode = #tpu.pipeline_mode<synchronous>, transform_indices = @transform_2, window_bounds = array<i64: 1, 32>}, {pipeline_mode = #tpu.pipeline_mode<synchronous>, transform_indices = @transform_3, window_bounds = array<i64: 1, 32>}, {pipeline_mode = #tpu.pipeline_mode<synchronous>, transform_indices = @transform_4, window_bounds = array<i64: 9, 32>}, {pipeline_mode = #tpu.pipeline_mode<synchronous>, transform_indices = @transform_5, window_bounds = array<i64: 1, 32>}, {pipeline_mode = #tpu.pipeline_mode<synchronous>, transform_indices = @transform_6, window_bounds = array<i64: 1, 32>}, {pipeline_mode = #tpu.pipeline_mode<synchronous>, transform_indices = @transform_7, window_bounds = array<i64: 4, 32>}, {pipeline_mode = #tpu.pipeline_mode<synchronous>, transform_indices = @transform_8, window_bounds = array<i64: 4, 1>}, {pipeline_mode = #tpu.pipeline_mode<synchronous>, transform_indices = @transform_9, window_bounds = array<i64: 4, 1>}, {transform_indices = @transform_10, window_bounds = array<i64: 1, 4, 256>}]} {
    %c16_i32 = arith.constant 16 : i32
    %0 = arith.muli %arg1, %c16_i32 : i32
    %c0 = arith.constant 0 : index
    %1 = arith.index_cast %0 : i32 to index
    %c0_0 = arith.constant 0 : index
    %c0_1 = arith.constant 0 : index
    %2 = vector.load %arg2[%c0, %1, %c0_0, %c0_1] : memref<1x18x16x4xf32, #tpu.memory_space<vmem>>, vector<1x18x16x4xf32>
    %3 = vector.shape_cast %2 : vector<1x18x16x4xf32> to vector<288x4xf32>
    %c0_2 = arith.constant 0 : index
    %c0_3 = arith.constant 0 : index
    %4 = vector.load %arg3[%c0_2, %c0_3] : memref<4x32xf32, #tpu.memory_space<vmem>>, vector<4x32xf32>
    %cst = arith.constant dense<0.000000e+00> : vector<288x32xf32>
    %5 = tpu.matmul %3, %4, %cst {dimension_numbers = #tpu.dot_dimension_numbers<[1], [0], [0], [1], [0, 0, 1, 1], [], []>} : vector<288x4xf32>, vector<4x32xf32>, vector<288x32xf32> -> vector<288x32xf32>
    %c0_4 = arith.constant 0 : index
    %c0_5 = arith.constant 0 : index
    %6 = vector.load %arg4[%c0_4, %c0_5] : memref<1x32xf32, #tpu.memory_space<vmem>>, vector<1x32xf32>
    %7 = vector.broadcast %6 : vector<1x32xf32> to vector<288x32xf32>
    %8 = arith.mulf %5, %7 : vector<288x32xf32>
    %c0_6 = arith.constant 0 : index
    %c0_7 = arith.constant 0 : index
    %9 = vector.load %arg5[%c0_6, %c0_7] : memref<1x32xf32, #tpu.memory_space<vmem>>, vector<1x32xf32>
    %10 = vector.broadcast %9 : vector<1x32xf32> to vector<288x32xf32>
    %11 = arith.addf %8, %10 : vector<288x32xf32>
    %cst_8 = arith.constant 5.000000e-01 : f32
    %12 = vector.broadcast %cst_8 : f32 to vector<288x32xf32>
    %13 = arith.mulf %12, %11 : vector<288x32xf32>
    %cst_9 = arith.constant 0.707106769 : f32
    %14 = vector.broadcast %cst_9 : f32 to vector<288x32xf32>
    %15 = arith.mulf %11, %14 : vector<288x32xf32>
    %16 = math.erf %15 : vector<288x32xf32>
    %cst_10 = arith.constant 1.000000e+00 : f32
    %17 = vector.broadcast %cst_10 : f32 to vector<288x32xf32>
    %18 = arith.addf %17, %16 : vector<288x32xf32>
    %19 = arith.mulf %13, %18 : vector<288x32xf32>
    %20 = vector.shape_cast %19 : vector<288x32xf32> to vector<18x16x32xf32>
    %21 = tpu.iota {dimensions = array<i32: 0>} : vector<18x1x1xi32>
    %22 = vector.broadcast %0 : i32 to vector<18x1x1xi32>
    %23 = arith.addi %22, %21 : vector<18x1x1xi32>
    %c1_i32 = arith.constant 1 : i32
    %24 = vector.broadcast %c1_i32 : i32 to vector<18x1x1xi32>
    %25 = arith.cmpi sge, %23, %24 : vector<18x1x1xi32>
    %c16_i32_11 = arith.constant 16 : i32
    %26 = vector.broadcast %c16_i32_11 : i32 to vector<18x1x1xi32>
    %27 = arith.cmpi sle, %23, %26 : vector<18x1x1xi32>
    %28 = arith.andi %25, %27 : vector<18x1x1xi1>
    %cst_12 = arith.constant 0.000000e+00 : f32
    %29 = vector.shape_cast %28 : vector<18x1x1xi1> to vector<18x1x1xi1>
    %30 = vector.broadcast %29 : vector<18x1x1xi1> to vector<18x16x32xi1>
    %31 = vector.broadcast %cst_12 : f32 to vector<18x16x32xf32>
    %32 = arith.select %30, %20, %31 : vector<18x16x32xi1>, vector<18x16x32xf32>
    %c0_13 = arith.constant 0 : index
    %c1 = arith.constant 1 : index
    %c0_14 = arith.constant 0 : index
    %33 = vector.load %arg13[%c0_13, %c1, %c0_14] : memref<18x18x32xf32, #tpu.memory_space<vmem>>, vector<18x16x32xf32>
    tpu.vector_store %arg13[%c0_13, %c1, %c0_14], %32 {strides = array<i32>} : memref<18x18x32xf32, #tpu.memory_space<vmem>>, vector<18x16x32xf32>,
    %cst_15 = arith.constant 0.000000e+00 : f32
    %34 = vector.broadcast %cst_15 : f32 to vector<18x1x32xf32>
    %c0_16 = arith.constant 0 : index
    %c0_17 = arith.constant 0 : index
    %c0_18 = arith.constant 0 : index
    %35 = vector.load %arg13[%c0_16, %c0_17, %c0_18] : memref<18x18x32xf32, #tpu.memory_space<vmem>>, vector<18x1x32xf32>
    tpu.vector_store %arg13[%c0_16, %c0_17, %c0_18], %34 {strides = array<i32>} : memref<18x18x32xf32, #tpu.memory_space<vmem>>, vector<18x1x32xf32>,
    %c0_19 = arith.constant 0 : index
    %c17 = arith.constant 17 : index
    %c0_20 = arith.constant 0 : index
    %36 = vector.load %arg13[%c0_19, %c17, %c0_20] : memref<18x18x32xf32, #tpu.memory_space<vmem>>, vector<18x1x32xf32>
    tpu.vector_store %arg13[%c0_19, %c17, %c0_20], %34 {strides = array<i32>} : memref<18x18x32xf32, #tpu.memory_space<vmem>>, vector<18x1x32xf32>,
    %cst_21 = arith.constant 0.000000e+00 : f32
    %37 = vector.broadcast %cst_21 : f32 to vector<16x16x32xf32>
    %c0_22 = arith.constant 0 : index
    %c0_23 = arith.constant 0 : index
    %38 = vector.load %arg6[%c0_22, %c0_23] : memref<9x32xf32, #tpu.memory_space<vmem>>, vector<1x32xf32>
    %c0_24 = arith.constant 0 : index
    %c0_25 = arith.constant 0 : index
    %c0_26 = arith.constant 0 : index
    %39 = vector.load %arg13[%c0_24, %c0_25, %c0_26] : memref<18x18x32xf32, #tpu.memory_space<vmem>>, vector<16x16x32xf32>
    %40 = vector.shape_cast %38 : vector<1x32xf32> to vector<1x1x32xf32>
    %41 = vector.broadcast %40 : vector<1x1x32xf32> to vector<16x16x32xf32>
    %42 = arith.mulf %39, %41 : vector<16x16x32xf32>
    %43 = arith.addf %37, %42 : vector<16x16x32xf32>
    %c1_27 = arith.constant 1 : index
    %c0_28 = arith.constant 0 : index
    %44 = vector.load %arg6[%c1_27, %c0_28] : memref<9x32xf32, #tpu.memory_space<vmem>>, vector<1x32xf32>
    %c0_29 = arith.constant 0 : index
    %c1_30 = arith.constant 1 : index
    %c0_31 = arith.constant 0 : index
    %45 = vector.load %arg13[%c0_29, %c1_30, %c0_31] : memref<18x18x32xf32, #tpu.memory_space<vmem>>, vector<16x16x32xf32>
    %46 = vector.shape_cast %44 : vector<1x32xf32> to vector<1x1x32xf32>
    %47 = vector.broadcast %46 : vector<1x1x32xf32> to vector<16x16x32xf32>
    %48 = arith.mulf %45, %47 : vector<16x16x32xf32>
    %49 = arith.addf %43, %48 : vector<16x16x32xf32>
    %c2 = arith.constant 2 : index
    %c0_32 = arith.constant 0 : index
    %50 = vector.load %arg6[%c2, %c0_32] : memref<9x32xf32, #tpu.memory_space<vmem>>, vector<1x32xf32>
    %c0_33 = arith.constant 0 : index
    %c2_34 = arith.constant 2 : index
    %c0_35 = arith.constant 0 : index
    %51 = vector.load %arg13[%c0_33, %c2_34, %c0_35] : memref<18x18x32xf32, #tpu.memory_space<vmem>>, vector<16x16x32xf32>
    %52 = vector.shape_cast %50 : vector<1x32xf32> to vector<1x1x32xf32>
    %53 = vector.broadcast %52 : vector<1x1x32xf32> to vector<16x16x32xf32>
    %54 = arith.mulf %51, %53 : vector<16x16x32xf32>
    %55 = arith.addf %49, %54 : vector<16x16x32xf32>
    %c3 = arith.constant 3 : index
    %c0_36 = arith.constant 0 : index
    %56 = vector.load %arg6[%c3, %c0_36] : memref<9x32xf32, #tpu.memory_space<vmem>>, vector<1x32xf32>
    %c1_37 = arith.constant 1 : index
    %c0_38 = arith.constant 0 : index
    %c0_39 = arith.constant 0 : index
    %57 = vector.load %arg13[%c1_37, %c0_38, %c0_39] : memref<18x18x32xf32, #tpu.memory_space<vmem>>, vector<16x16x32xf32>
    %58 = vector.shape_cast %56 : vector<1x32xf32> to vector<1x1x32xf32>
    %59 = vector.broadcast %58 : vector<1x1x32xf32> to vector<16x16x32xf32>
    %60 = arith.mulf %57, %59 : vector<16x16x32xf32>
    %61 = arith.addf %55, %60 : vector<16x16x32xf32>
    %c4 = arith.constant 4 : index
    %c0_40 = arith.constant 0 : index
    %62 = vector.load %arg6[%c4, %c0_40] : memref<9x32xf32, #tpu.memory_space<vmem>>, vector<1x32xf32>
    %c1_41 = arith.constant 1 : index
    %c1_42 = arith.constant 1 : index
    %c0_43 = arith.constant 0 : index
    %63 = vector.load %arg13[%c1_41, %c1_42, %c0_43] : memref<18x18x32xf32, #tpu.memory_space<vmem>>, vector<16x16x32xf32>
    %64 = vector.shape_cast %62 : vector<1x32xf32> to vector<1x1x32xf32>
    %65 = vector.broadcast %64 : vector<1x1x32xf32> to vector<16x16x32xf32>
    %66 = arith.mulf %63, %65 : vector<16x16x32xf32>
    %67 = arith.addf %61, %66 : vector<16x16x32xf32>
    %c5 = arith.constant 5 : index
    %c0_44 = arith.constant 0 : index
    %68 = vector.load %arg6[%c5, %c0_44] : memref<9x32xf32, #tpu.memory_space<vmem>>, vector<1x32xf32>
    %c1_45 = arith.constant 1 : index
    %c2_46 = arith.constant 2 : index
    %c0_47 = arith.constant 0 : index
    %69 = vector.load %arg13[%c1_45, %c2_46, %c0_47] : memref<18x18x32xf32, #tpu.memory_space<vmem>>, vector<16x16x32xf32>
    %70 = vector.shape_cast %68 : vector<1x32xf32> to vector<1x1x32xf32>
    %71 = vector.broadcast %70 : vector<1x1x32xf32> to vector<16x16x32xf32>
    %72 = arith.mulf %69, %71 : vector<16x16x32xf32>
    %73 = arith.addf %67, %72 : vector<16x16x32xf32>
    %c6 = arith.constant 6 : index
    %c0_48 = arith.constant 0 : index
    %74 = vector.load %arg6[%c6, %c0_48] : memref<9x32xf32, #tpu.memory_space<vmem>>, vector<1x32xf32>
    %c2_49 = arith.constant 2 : index
    %c0_50 = arith.constant 0 : index
    %c0_51 = arith.constant 0 : index
    %75 = vector.load %arg13[%c2_49, %c0_50, %c0_51] : memref<18x18x32xf32, #tpu.memory_space<vmem>>, vector<16x16x32xf32>
    %76 = vector.shape_cast %74 : vector<1x32xf32> to vector<1x1x32xf32>
    %77 = vector.broadcast %76 : vector<1x1x32xf32> to vector<16x16x32xf32>
    %78 = arith.mulf %75, %77 : vector<16x16x32xf32>
    %79 = arith.addf %73, %78 : vector<16x16x32xf32>
    %c7 = arith.constant 7 : index
    %c0_52 = arith.constant 0 : index
    %80 = vector.load %arg6[%c7, %c0_52] : memref<9x32xf32, #tpu.memory_space<vmem>>, vector<1x32xf32>
    %c2_53 = arith.constant 2 : index
    %c1_54 = arith.constant 1 : index
    %c0_55 = arith.constant 0 : index
    %81 = vector.load %arg13[%c2_53, %c1_54, %c0_55] : memref<18x18x32xf32, #tpu.memory_space<vmem>>, vector<16x16x32xf32>
    %82 = vector.shape_cast %80 : vector<1x32xf32> to vector<1x1x32xf32>
    %83 = vector.broadcast %82 : vector<1x1x32xf32> to vector<16x16x32xf32>
    %84 = arith.mulf %81, %83 : vector<16x16x32xf32>
    %85 = arith.addf %79, %84 : vector<16x16x32xf32>
    %c8 = arith.constant 8 : index
    %c0_56 = arith.constant 0 : index
    %86 = vector.load %arg6[%c8, %c0_56] : memref<9x32xf32, #tpu.memory_space<vmem>>, vector<1x32xf32>
    %c2_57 = arith.constant 2 : index
    %c2_58 = arith.constant 2 : index
    %c0_59 = arith.constant 0 : index
    %87 = vector.load %arg13[%c2_57, %c2_58, %c0_59] : memref<18x18x32xf32, #tpu.memory_space<vmem>>, vector<16x16x32xf32>
    %88 = vector.shape_cast %86 : vector<1x32xf32> to vector<1x1x32xf32>
    %89 = vector.broadcast %88 : vector<1x1x32xf32> to vector<16x16x32xf32>
    %90 = arith.mulf %87, %89 : vector<16x16x32xf32>
    %91 = arith.addf %85, %90 : vector<16x16x32xf32>
    %c0_60 = arith.constant 0 : index
    %c0_61 = arith.constant 0 : index
    %92 = vector.load %arg7[%c0_60, %c0_61] : memref<1x32xf32, #tpu.memory_space<vmem>>, vector<1x32xf32>
    %93 = vector.shape_cast %92 : vector<1x32xf32> to vector<1x1x32xf32>
    %94 = vector.broadcast %93 : vector<1x1x32xf32> to vector<16x16x32xf32>
    %95 = arith.mulf %91, %94 : vector<16x16x32xf32>
    %c0_62 = arith.constant 0 : index
    %c0_63 = arith.constant 0 : index
    %96 = vector.load %arg8[%c0_62, %c0_63] : memref<1x32xf32, #tpu.memory_space<vmem>>, vector<1x32xf32>
    %97 = vector.shape_cast %96 : vector<1x32xf32> to vector<1x1x32xf32>
    %98 = vector.broadcast %97 : vector<1x1x32xf32> to vector<16x16x32xf32>
    %99 = arith.addf %95, %98 : vector<16x16x32xf32>
    %cst_64 = arith.constant 5.000000e-01 : f32
    %100 = vector.broadcast %cst_64 : f32 to vector<16x16x32xf32>
    %101 = arith.mulf %100, %99 : vector<16x16x32xf32>
    %cst_65 = arith.constant 0.707106769 : f32
    %102 = vector.broadcast %cst_65 : f32 to vector<16x16x32xf32>
    %103 = arith.mulf %99, %102 : vector<16x16x32xf32>
    %104 = math.erf %103 : vector<16x16x32xf32>
    %cst_66 = arith.constant 1.000000e+00 : f32
    %105 = vector.broadcast %cst_66 : f32 to vector<16x16x32xf32>
    %106 = arith.addf %105, %104 : vector<16x16x32xf32>
    %107 = arith.mulf %101, %106 : vector<16x16x32xf32>
    %108 = vector.shape_cast %107 : vector<16x16x32xf32> to vector<256x32xf32>
    %c0_67 = arith.constant 0 : index
    %c0_68 = arith.constant 0 : index
    %109 = vector.load %arg9[%c0_67, %c0_68] : memref<4x32xf32, #tpu.memory_space<vmem>>, vector<4x32xf32>
    %cst_69 = arith.constant dense<0.000000e+00> : vector<4x256xf32>
    %110 = tpu.matmul %109, %108, %cst_69 {dimension_numbers = #tpu.dot_dimension_numbers<[1], [1], [0], [0], [0, 0, 1, 0], [], []>} : vector<4x32xf32>, vector<256x32xf32>, vector<4x256xf32> -> vector<4x256xf32>
    %c0_70 = arith.constant 0 : index
    %c0_71 = arith.constant 0 : index
    %111 = vector.load %arg10[%c0_70, %c0_71] : memref<4x1xf32, #tpu.memory_space<vmem>>, vector<4x1xf32>
    %112 = vector.broadcast %111 : vector<4x1xf32> to vector<4x256xf32>
    %113 = arith.mulf %110, %112 : vector<4x256xf32>
    %c0_72 = arith.constant 0 : index
    %c0_73 = arith.constant 0 : index
    %114 = vector.load %arg11[%c0_72, %c0_73] : memref<4x1xf32, #tpu.memory_space<vmem>>, vector<4x1xf32>
    %115 = vector.broadcast %114 : vector<4x1xf32> to vector<4x256xf32>
    %116 = arith.addf %113, %115 : vector<4x256xf32>
    %117 = vector.shape_cast %116 : vector<4x256xf32> to vector<1x4x256xf32>
    %c0_74 = arith.constant 0 : index
    %c0_75 = arith.constant 0 : index
    %c0_76 = arith.constant 0 : index
    %118 = vector.load %arg12[%c0_74, %c0_75, %c0_76] : memref<1x4x256xf32, #tpu.memory_space<vmem>>, vector<1x4x256xf32>
    tpu.vector_store %arg12[%c0_74, %c0_75, %c0_76], %117 {strides = array<i32>} : memref<1x4x256xf32, #tpu.memory_space<vmem>>, vector<1x4x256xf32>,
    return
  }
  func.func @transform_0(%arg0: i32, %arg1: i32) -> (i32, i32, i32, i32) {
    %c0_i32 = arith.constant 0 : i32
    %c0_i32_0 = arith.constant 0 : i32
    %c0_i32_1 = arith.constant 0 : i32
    %c0_i32_2 = arith.constant 0 : i32
    return %arg0, %c0_i32, %c0_i32_0, %c0_i32_1 : i32, i32, i32, i32
  }
  func.func @transform_1(%arg0: i32, %arg1: i32) -> (i32, i32) {
    %c0_i32 = arith.constant 0 : i32
    %c0_i32_0 = arith.constant 0 : i32
    %c0_i32_1 = arith.constant 0 : i32
    return %c0_i32, %c0_i32_0 : i32, i32
  }
  func.func @transform_2(%arg0: i32, %arg1: i32) -> (i32, i32) {
    %c0_i32 = arith.constant 0 : i32
    %c0_i32_0 = arith.constant 0 : i32
    %c0_i32_1 = arith.constant 0 : i32
    return %c0_i32, %c0_i32_0 : i32, i32
  }
  func.func @transform_3(%arg0: i32, %arg1: i32) -> (i32, i32) {
    %c0_i32 = arith.constant 0 : i32
    %c0_i32_0 = arith.constant 0 : i32
    %c0_i32_1 = arith.constant 0 : i32
    return %c0_i32, %c0_i32_0 : i32, i32
  }
  func.func @transform_4(%arg0: i32, %arg1: i32) -> (i32, i32) {
    %c0_i32 = arith.constant 0 : i32
    %c0_i32_0 = arith.constant 0 : i32
    %c0_i32_1 = arith.constant 0 : i32
    return %c0_i32, %c0_i32_0 : i32, i32
  }
  func.func @transform_5(%arg0: i32, %arg1: i32) -> (i32, i32) {
    %c0_i32 = arith.constant 0 : i32
    %c0_i32_0 = arith.constant 0 : i32
    %c0_i32_1 = arith.constant 0 : i32
    return %c0_i32, %c0_i32_0 : i32, i32
  }
  func.func @transform_6(%arg0: i32, %arg1: i32) -> (i32, i32) {
    %c0_i32 = arith.constant 0 : i32
    %c0_i32_0 = arith.constant 0 : i32
    %c0_i32_1 = arith.constant 0 : i32
    return %c0_i32, %c0_i32_0 : i32, i32
  }
  func.func @transform_7(%arg0: i32, %arg1: i32) -> (i32, i32) {
    %c0_i32 = arith.constant 0 : i32
    %c0_i32_0 = arith.constant 0 : i32
    %c0_i32_1 = arith.constant 0 : i32
    return %c0_i32, %c0_i32_0 : i32, i32
  }
  func.func @transform_8(%arg0: i32, %arg1: i32) -> (i32, i32) {
    %c0_i32 = arith.constant 0 : i32
    %c0_i32_0 = arith.constant 0 : i32
    %c0_i32_1 = arith.constant 0 : i32
    return %c0_i32, %c0_i32_0 : i32, i32
  }
  func.func @transform_9(%arg0: i32, %arg1: i32) -> (i32, i32) {
    %c0_i32 = arith.constant 0 : i32
    %c0_i32_0 = arith.constant 0 : i32
    %c0_i32_1 = arith.constant 0 : i32
    return %c0_i32, %c0_i32_0 : i32, i32
  }
  func.func @transform_10(%arg0: i32, %arg1: i32) -> (i32, i32, i32) {
    %c0_i32 = arith.constant 0 : i32
    %c0_i32_0 = arith.constant 0 : i32
    return %arg0, %c0_i32, %arg1 : i32, i32, i32
  }
}

</mosaic_0001>

<bundles_post_ra>
// kernel: conv_mlp_with_norm.1
= control target key start
LH: loop header
LB: loop body
LE: loop exit
PB: predicated region body
PF: predicated region fallthrough
CT: control target
= control target key end

     0   :  { %s5607_s13 = smov 0   ;;  %s5609_s14 = smov 0   ;;  %s9312_s0 = inlined_call_operand.vmem [shape: f32[2,18,16,4], index: 0, kind: input, shape index: {}]   ;;  %s9313_s1 = inlined_call_operand.vmem [shape: f32[4,32], index: 1, kind: input, shape index: {}]   ;;  %s9314_s2 = inlined_call_operand.vmem [shape: f32[1,32], index: 2, kind: input, shape index: {}]   ;;  %s9315_s3 = inlined_call_operand.vmem [shape: f32[1,32], index: 3, kind: input, shape index: {}]   ;;  %s9316_s4 = inlined_call_operand.vmem [shape: f32[9,32], index: 4, kind: input, shape index: {}]   ;;  %s9317_s5 = inlined_call_operand.vmem [shape: f32[1,32], index: 5, kind: input, shape index: {}]   ;;  %s9318_s6 = inlined_call_operand.vmem [shape: f32[1,32], index: 6, kind: input, shape index: {}]   ;;  %s9319_s7 = inlined_call_operand.vmem [shape: f32[4,32], index: 7, kind: input, shape index: {}]   ;;  %s9320_s8 = inlined_call_operand.vmem [shape: f32[4,1], index: 8, kind: input, shape index: {}]   ;;  %s9321_s9 = inlined_call_operand.vmem [shape: f32[4,1], index: 9, kind: input, shape index: {}]   ;;  %s9322_s10 = inlined_call_operand.vmem [shape: f32[2,4,256], index: 10, kind: output, shape index: {}]  }
   0x1   :  { %s5611_s15 = smov 0  }
   0x2 LB: > { %s32_s16 = sadd.s32 1, %s5544_s14  ;;  %p5156_p0 = scmp.ge.s32.totalorder %s5548_s15, 1  ;;  %s5548_s15 = sphi %s5611_s15, %s20_s15   ;;  %s5544_s14 = sphi %s5609_s14, %s9479_s14   ;;  %s5540_s13 = sphi %s5607_s13, %s9478_s13  }
   0x3   : > { %p34_p1 = scmp.ge.s32.totalorder %s32_s16, 2  ;;  %p326_p2 = scmp.lt.s32.totalorder %s5548_s15, 3 }
   0x5   : > { %s9481_s16 = smov (%p34_p1, %s32_s16), 0  ;;  %p327_p3 = pnand %p5156_p0, %p326_p2 }
   0x7   : > { %330 = sbr.rel (%p327_p3) target bundleno = 1163 (0x48b), region = 60 }
   0xc   : > { %v422_v0 = vld [vmem:[%s9313_s1] sm:$0xf]  ;;  %vm532_vm0 = vcmask 1043456   ;;  %p368_p4 = scmp.lt.s32.totalorder %s5540_s13, 1  ;;  %vm423_vm1 = vcmask 31744   ;;  %vm2469_vm8 = vcmask 261120  }
   0xd   : > { %5160 = vmatpush.msk.msra.mxu0 %vm532_vm0, %v422_v0  ;;  %5302 = vmatpush.msk.msra.mxu1 %vm532_vm0, %v422_v0  ;;  %v5710_v35 = vld [vmem:[%s9314_s2] ss:$0 sm:$0xff] }
   0xe   : > { %5303 = vmatpush.msk.msra.mxu3 %vm532_vm0, %v422_v0  ;;  %s9483_s13 = smov (!%p368_p4, %s5540_s13), 1  ;;  %v5715_v36 = vld [vmem:[%s9315_s3] ss:$0 sm:$0xff] }
   0xf   : > { %s5304_s19 = smul.u32 288, %s9483_s13 }
  0x11   : > { %s5637_s22 = scalar_lea.vmem %s9312_s0, %s5304_s19 }
  0x12   : > { %v386_v1 = vld [vmem:[%s5637_s22] sm:$0xff]  ;;  %v400_v2 = vld [vmem:[%s5637_s22 + $0x70] sm:$0xff]  ;;  %v387_v4 = vld [vmem:[%s5637_s22 + $0x8] sm:$0xff] }
  0x13   : > { %v410_v3 = vld [vmem:[%s5637_s22 + $0xc0] sm:$0xff]  ;;  %5161 = vmatmul.msk.f32.vlgmr.msra.gmra.mxu0 %vm423_vm1, %v386_v1  ;;  %5175 = vmatmul.msk.f32.vlgmr.msra.gmra.mxu1 %vm423_vm1, %v400_v2  ;;  %v401_v5 = vld [vmem:[%s5637_s22 + $0x78] sm:$0xff]  ;;  %v411_v6 = vld [vmem:[%s5637_s22 + $0xc8] sm:$0xff] }
  0x14   : > { %5185 = vmatmul.msk.f32.vlgmr.msra.gmra.mxu3 %vm423_vm1, %v410_v3  ;;  %v388_v7 = vld [vmem:[%s5637_s22 + $0x10] sm:$0xff]  ;;  %v402_v8 = vld [vmem:[%s5637_s22 + $0x80] sm:$0xff]  ;;  %v389_v10 = vld [vmem:[%s5637_s22 + $0x18] sm:$0xff] }
  0x15   : > { %v412_v9 = vld [vmem:[%s5637_s22 + $0xd0] sm:$0xff]  ;;  %v403_v11 = vld [vmem:[%s5637_s22 + $0x88] sm:$0xff]  ;;  %v413_v12 = vld [vmem:[%s5637_s22 + $0xd8] sm:$0xff] }
  0x16   : > { %v390_v13 = vld [vmem:[%s5637_s22 + $0x20] sm:$0xff]  ;;  %v404_v14 = vld [vmem:[%s5637_s22 + $0x90] sm:$0xff]  ;;  %v391_v16 = vld [vmem:[%s5637_s22 + $0x28] sm:$0xff] }
  0x17   : > { %v414_v15 = vld [vmem:[%s5637_s22 + $0xe0] sm:$0xff]  ;;  %v405_v17 = vld [vmem:[%s5637_s22 + $0x98] sm:$0xff]  ;;  %v415_v18 = vld [vmem:[%s5637_s22 + $0xe8] sm:$0xff] }
  0x18   : > { %v392_v19 = vld [vmem:[%s5637_s22 + $0x30] sm:$0xff]  ;;  %v406_v20 = vld [vmem:[%s5637_s22 + $0xa0] sm:$0xff]  ;;  %v393_v22 = vld [vmem:[%s5637_s22 + $0x38] sm:$0xff] }
  0x19   : > { %v416_v21 = vld [vmem:[%s5637_s22 + $0xf0] sm:$0xff]  ;;  %v407_v23 = vld [vmem:[%s5637_s22 + $0xa8] sm:$0xff]  ;;  %v417_v24 = vld [vmem:[%s5637_s22 + $0xf8] sm:$0xff] }
  0x1a   : > { %v394_v25 = vld [vmem:[%s5637_s22 + $0x40] sm:$0xff]  ;;  %v408_v26 = vld [vmem:[%s5637_s22 + $0xb0] sm:$0xff]  ;;  %v395_v28 = vld [vmem:[%s5637_s22 + $0x48] sm:$0xff] }
  0x1b   : > { %5162 = vmatmul.msk.f32.gmra.mxu0 %vm423_vm1, %v387_v4  ;;  %5176 = vmatmul.msk.f32.gmra.mxu1 %vm423_vm1, %v401_v5  ;;  %v418_v27 = vld [vmem:[%s5637_s22 + $0x100] sm:$0xff]  ;;  %v409_v29 = vld [vmem:[%s5637_s22 + $0xb8] sm:$0xff]  ;;  %v419_v30 = vld [vmem:[%s5637_s22 + $0x108] sm:$0xff] }
  0x1c   : > { %5186 = vmatmul.msk.f32.gmra.mxu3 %vm423_vm1, %v411_v6  ;;  %v396_v31 = vld [vmem:[%s5637_s22 + $0x50] sm:$0xff]  ;;  %v397_v32 = vld [vmem:[%s5637_s22 + $0x58] sm:$0xff]  ;;  %v398_v33 = vld [vmem:[%s5637_s22 + $0x60] sm:$0xff] }
  0x1d   : > { %v399_v34 = vld [vmem:[%s5637_s22 + $0x68] sm:$0xff] }
  0x23   : > { %5163 = vmatmul.msk.f32.gmra.mxu0 %vm423_vm1, %v388_v7  ;;  %5177 = vmatmul.msk.f32.gmra.mxu1 %vm423_vm1, %v402_v8 }
  0x24   : > { %5187 = vmatmul.msk.f32.gmra.mxu3 %vm423_vm1, %v412_v9 }
  0x2b   : > { %5164 = vmatmul.msk.f32.gmra.mxu0 %vm423_vm1, %v389_v10  ;;  %5178 = vmatmul.msk.f32.gmra.mxu1 %vm423_vm1, %v403_v11 }
  0x2c   : > { %5188 = vmatmul.msk.f32.gmra.mxu3 %vm423_vm1, %v413_v12 }
  0x33   : > { %5165 = vmatmul.msk.f32.gmra.mxu0 %vm423_vm1, %v390_v13  ;;  %5179 = vmatmul.msk.f32.gmra.mxu1 %vm423_vm1, %v404_v14 }
  0x34   : > { %5189 = vmatmul.msk.f32.gmra.mxu3 %vm423_vm1, %v414_v15 }
  0x3b   : > { %5166 = vmatmul.msk.f32.gmra.mxu0 %vm423_vm1, %v391_v16  ;;  %5180 = vmatmul.msk.f32.gmra.mxu1 %vm423_vm1, %v405_v17 }
  0x3c   : > { %5190 = vmatmul.msk.f32.gmra.mxu3 %vm423_vm1, %v415_v18 }
  0x43   : > { %5167 = vmatmul.msk.f32.gmra.mxu0 %vm423_vm1, %v392_v19  ;;  %5181 = vmatmul.msk.f32.gmra.mxu1 %vm423_vm1, %v406_v20 }
  0x44   : > { %5191 = vmatmul.msk.f32.gmra.mxu3 %vm423_vm1, %v416_v21 }
  0x4b   : > { %5168 = vmatmul.msk.f32.gmra.mxu0 %vm423_vm1, %v393_v22  ;;  %5182 = vmatmul.msk.f32.gmra.mxu1 %vm423_vm1, %v407_v23 }
  0x4c   : > { %5192 = vmatmul.msk.f32.gmra.mxu3 %vm423_vm1, %v417_v24 }
  0x53   : > { %5169 = vmatmul.msk.f32.gmra.mxu0 %vm423_vm1, %v394_v25  ;;  %5183 = vmatmul.msk.f32.gmra.mxu1 %vm423_vm1, %v408_v26 }
  0x54   : > { %5193 = vmatmul.msk.f32.gmra.mxu3 %vm423_vm1, %v418_v27 }
  0x5b   : > { %5170 = vmatmul.msk.f32.gmra.mxu0 %vm423_vm1, %v395_v28  ;;  %5184 = vmatmul.msk.f32.gmra.mxu1 %vm423_vm1, %v409_v29 }
  0x5c   : > { %5194 = vmatmul.msk.f32.gmra.mxu3 %vm423_vm1, %v419_v30 }
  0x63   : > { %5171 = vmatmul.msk.f32.gmra.mxu0 %vm423_vm1, %v396_v31 }
  0x6b   : > { %5172 = vmatmul.msk.f32.gmra.mxu0 %vm423_vm1, %v397_v32 }
  0x73   : > { %5173 = vmatmul.msk.f32.gmra.mxu0 %vm423_vm1, %v398_v33 }
  0x7b   : > { %5174 = vmatmul.msk.f32.gmra.mxu0 %vm423_vm1, %v399_v34 }
  0x90   : > { %v553_v37 = vpop.f32.mrf.mxu0  ;;  %v595_v38 = vpop.f32.mrf.mxu1 }
  0x91   : > { %v679_v39 = vmul.f32 %v5710_v35, %v595_v38 }
  0x93   : > { %v5719_v40 = vadd.f32 %v5715_v36, %v679_v39 }
  0x95   : > { %v5722_v41 = vmul.f32 0.70710677, %v5719_v40 }
  0x97   : > { %v1373_v42 = vmul.f32 %v5722_v41, %v5722_v41  ;;  %v625_v43 = vpop.f32.mrf.mxu3 }
  0x98   : > { %v689_v44 = vmul.f32 %v5710_v35, %v625_v43  ;;  %v556_v45 = vpop.f32.mrf.mxu0  ;;  %v598_v46 = vpop.f32.mrf.mxu1 }
  0x99   : > { %v1374_v47 = vmin.f32 %v1373_v42, 16.0  ;;  %v680_v48 = vmul.f32 %v5710_v35, %v598_v46 }
  0x9a   : > { %v5729_v49 = vadd.f32 %v5715_v36, %v689_v44 }
  0x9b   : > { %v1375_v50 = vmul.f32 2.1237322e-06, %v1374_v47  ;;  %v1386_v51 = vmul.f32 3.8918573e-05, %v1374_v47  ;;  %v5732_v52 = vadd.f32 %v5715_v36, %v680_v48 }
  0x9c   : > { %v5735_v53 = vmul.f32 0.70710677, %v5729_v49 }
  0x9d   : > { %v1376_v54 = vadd.f32 0.00028619796, %v1375_v50  ;;  %v1387_v55 = vadd.f32 0.001143296, %v1386_v51  ;;  %v5738_v56 = vmul.f32 0.70710677, %v5732_v52 }
  0x9e   : > { %v1773_v57 = vmul.f32 %v5735_v53, %v5735_v53 }
  0x9f   : > { %v1377_v58 = vmul.f32 %v1376_v54, %v1374_v47  ;;  %v1388_v59 = vmul.f32 %v1387_v55, %v1374_v47  ;;  %v1413_v60 = vmul.f32 %v5738_v56, %v5738_v56  ;;  %v628_v61 = vpop.f32.mrf.mxu3 }
  0xa0   : > { %v5744_v62 = vmin.f32 %v1773_v57, 16.0  ;;  %v690_v63 = vmul.f32 %v5710_v35, %v628_v61  ;;  %v559_v3 = vpop.f32.mrf.mxu0  ;;  %v601_v45 = vpop.f32.mrf.mxu1 }
  0xa1   : > { %v1378_v0 = vadd.f32 0.0036580483, %v1377_v58  ;;  %v1389_v1 = vadd.f32 0.014752088, %v1388_v59  ;;  %v5747_v2 = vmin.f32 %v1413_v60, 16.0  ;;  %v667_v13 = vmul.f32 %v5710_v35, %v559_v3 }
  0xa2   : > { %v1775_v4 = vmul.f32 2.1237322e-06, %v5744_v62  ;;  %v1786_v5 = vmul.f32 3.8918573e-05, %v5744_v62  ;;  %v5752_v6 = vadd.f32 %v5715_v36, %v690_v63  ;;  %v5781_v58 = vmul.f32 0.5, %v5719_v40 }
  0xa3   : > { %v1379_v7 = vmul.f32 %v1378_v0, %v1374_v47  ;;  %v1390_v8 = vmul.f32 %v1389_v1, %v1374_v47  ;;  %v1415_v9 = vmul.f32 2.1237322e-06, %v5747_v2  ;;  %v1426_v10 = vmul.f32 3.8918573e-05, %v5747_v2 }
  0xa4   : > { %v1776_v11 = vadd.f32 0.00028619796, %v1775_v4  ;;  %v1787_v12 = vadd.f32 0.001143296, %v1786_v5  ;;  %v5761_v23 = vmul.f32 0.70710677, %v5752_v6  ;;  %v5765_v27 = vadd.f32 %v5715_v36, %v667_v13 }
  0xa5   : > { %v1380_v14 = vadd.f32 0.05243302, %v1379_v7  ;;  %v1391_v15 = vadd.f32 0.112945676, %v1390_v8  ;;  %v1416_v16 = vadd.f32 0.00028619796, %v1415_v9  ;;  %v681_v59 = vmul.f32 %v5710_v35, %v601_v45 }
  0xa6   : > { %v1777_v17 = vmul.f32 %v1776_v11, %v5744_v62  ;;  %v1788_v18 = vmul.f32 %v1787_v12, %v5744_v62  ;;  %v1427_v19 = vadd.f32 0.001143296, %v1426_v10  ;;  %v1813_v31 = vmul.f32 %v5761_v23, %v5761_v23 }
  0xa7   : > { %v1381_v20 = vmul.f32 %v1380_v14, %v1374_v47  ;;  %v1392_v21 = vmul.f32 %v1391_v15, %v1374_v47  ;;  %v1417_v22 = vmul.f32 %v1416_v16, %v5747_v2  ;;  %v5774_v44 = vmul.f32 0.70710677, %v5765_v27  ;;  %v631_v5 = vpop.f32.mrf.mxu3 }
  0xa8   : > { %v1778_v24 = vadd.f32 0.0036580483, %v1777_v17  ;;  %v1789_v25 = vadd.f32 0.014752088, %v1788_v18  ;;  %v1428_v26 = vmul.f32 %v1427_v19, %v5747_v2  ;;  %v5776_v51 = vmin.f32 %v1813_v31, 16.0 }
  0xa9   : > { %v1382_v28 = vadd.f32 0.18741608, %v1381_v20  ;;  %v1393_v29 = vadd.f32 0.4994258, %v1392_v21  ;;  %v1418_v30 = vadd.f32 0.0036580483, %v1417_v22  ;;  %v5793_v13 = vadd.f32 %v5715_v36, %v681_v59 }
  0xaa   : > { %v1779_v32 = vmul.f32 %v1778_v24, %v5744_v62  ;;  %v1790_v33 = vmul.f32 %v1789_v25, %v5744_v62  ;;  %v1429_v34 = vadd.f32 0.014752088, %v1428_v26  ;;  %v1815_v3 = vmul.f32 2.1237322e-06, %v5776_v51 }
  0xab   : > { %v1394_v37 = vmul.f32 %v1393_v29, %v1374_v47  ;;  %v1419_v38 = vmul.f32 %v1418_v30, %v5747_v2  ;;  %v1383_v46 = vmul.f32 %v1382_v28, %v1374_v47  ;;  %v893_v47 = vmul.f32 %v5774_v44, %v5774_v44 }
  0xac   : > { %v1780_v39 = vadd.f32 0.05243302, %v1779_v32  ;;  %v1791_v42 = vadd.f32 0.112945676, %v1790_v33  ;;  %v1430_v43 = vmul.f32 %v1429_v34, %v5747_v2  ;;  %v1826_v4 = vmul.f32 3.8918573e-05, %v5776_v51 }
  0xad   : > { %v1395_v48 = vadd.f32 1.0, %v1394_v37  ;;  %v1420_v50 = vadd.f32 0.05243302, %v1419_v38  ;;  %v1384_v0 = vadd.f32 1.1283791, %v1383_v46  ;;  %v5799_v16 = vmul.f32 %v5710_v35, %v631_v5 }
  0xae   : > { %v1781_v54 = vmul.f32 %v1780_v39, %v5744_v62  ;;  %v1792_v55 = vmul.f32 %v1791_v42, %v5744_v62  ;;  %v1431_v57 = vadd.f32 0.112945676, %v1430_v43  ;;  %v1816_v11 = vadd.f32 0.00028619796, %v1815_v3 }
  0xaf   : > { %5345 = vrcp.f32 %v1395_v48  ;;  %v1421_v63 = vmul.f32 %v1420_v50, %v5747_v2  ;;  %v1405_v40 = vand.u32 2147483647, %v1395_v48  ;;  %v1827_v12 = vadd.f32 0.001143296, %v1826_v4 }
  0xb0   : > { %v1782_v60 = vadd.f32 0.18741608, %v1781_v54  ;;  %v1793_v61 = vadd.f32 0.4994258, %v1792_v55  ;;  %v1432_v1 = vmul.f32 %v1431_v57, %v5747_v2  ;;  %vm1401_vm2 = vweird.f32 %v1395_v48 }
  0xb1   : > { %v1422_v9 = vadd.f32 0.18741608, %v1421_v63  ;;  %v1828_v19 = vmul.f32 %v1827_v12, %v5776_v51  ;;  %v5804_v20 = vmin.f32 %v893_v47, 16.0  ;;  %v1407_v22 = vand.u32 2147483648, %v1395_v48 }
  0xb2   : > { %v1783_v7 = vmul.f32 %v1782_v60, %v5744_v62  ;;  %v1794_v8 = vmul.f32 %v1793_v61, %v5744_v62  ;;  %v1433_v10 = vadd.f32 0.4994258, %v1432_v1  ;;  %v1817_v62 = vmul.f32 %v1816_v11, %v5776_v51 }
  0xb3   : > { %v1423_v15 = vmul.f32 %v1422_v9, %v5747_v2  ;;  %vm5807_vm4 = vcmp.eq.f32.partialorder %v1405_v40, 8.507059e+37  ;;  %v1829_v31 = vadd.f32 0.014752088, %v1828_v19  ;;  %v1385_v32 = vmul.f32 %v1384_v0, %v5722_v41 }
  0xb4   : > { %v5795_v14 = vadd.f32 1.0, %v1794_v8  ;;  %v1434_v18 = vmul.f32 %v1433_v10, %v5747_v2  ;;  %v1784_v24 = vadd.f32 1.1283791, %v1783_v7  ;;  %v1818_v30 = vadd.f32 0.0036580483, %v1817_v62 }
  0xb5   : > { %v5346_v17 = vpop.eup %5345  ;;  %v1424_v28 = vadd.f32 1.1283791, %v1423_v15  ;;  %v895_v34 = vmul.f32 2.1237322e-06, %v5804_v20  ;;  %v5818_v37 = vmul.f32 0.70710677, %v5793_v13  ;;  %v1830_v46 = vmul.f32 %v1829_v31, %v5776_v51 }
  0xb6   : > { %v1397_v21 = vmul.f32 %v5346_v17, %v1395_v48  ;;  %5347 = vrcp.f32 %v5795_v14  ;;  %vm1402_vm3 = vweird.f32 %v5346_v17  ;;  %v1807_v26 = vand.u32 2147483648, %v5795_v14 }
  0xb7   : > { %v5812_v29 = vadd.f32 1.0, %v1434_v18  ;;  %v1805_v33 = vand.u32 2147483647, %v5795_v14  ;;  %v1408_v39 = vor.u32 1.1754944e-38, %v1407_v22  ;;  %v1785_v42 = vmul.f32 %v1784_v24, %v5735_v53  ;;  %vm5824_vm5 = vmor %vm1401_vm2, %vm1402_vm3 }
  0xb8   : > { %v1398_v2 = vsub.f32 1.0, %v1397_v21  ;;  %vm1801_vm6 = vweird.f32 %v5795_v14  ;;  %v1808_v41 = vor.u32 1.1754944e-38, %v1807_v26  ;;  %v1819_v45 = vmul.f32 %v1818_v30, %v5776_v51 }
  0xb9   : > { %5349 = vrcp.f32 %v5812_v29  ;;  %v896_v50 = vadd.f32 0.00028619796, %v895_v34  ;;  %v5832_v53 = vmul.f32 %v1424_v28, %v5738_v56  ;;  %vm1441_vm7 = vweird.f32 %v5812_v29 }
  0xba   : > { %v1399_v38 = vmul.f32 %v5346_v17, %v1398_v2  ;;  %v906_v48 = vmul.f32 3.8918573e-05, %v5804_v20  ;;  %vm5837_vm9 = vcmp.eq.f32.partialorder %v1805_v33, 8.507059e+37  ;;  %v1445_v60 = vand.u32 2147483647, %v5812_v29 }
  0xbb   : > { %v1820_v61 = vadd.f32 0.05243302, %v1819_v45  ;;  %v1453_v63 = vmul.f32 %v5818_v37, %v5818_v37  ;;  %v1831_v47 = vadd.f32 0.112945676, %v1830_v46  ;;  %v897_v0 = vmul.f32 %v896_v50, %v5804_v20 }
  0xbc   : > { %v5348_v54 = vpop.eup %5347  ;;  %v1400_v55 = vadd.f32 %v5346_v17, %v1399_v38  ;;  %v907_v1 = vadd.f32 0.001143296, %v906_v48  ;;  %v1447_v5 = vand.u32 2147483648, %v5812_v29  ;;  %vm5862_vm13 = vcmp.eq.f32.partialorder %v1445_v60, 8.507059e+37 }
  0xbd   : > { %v1797_v57 = vmul.f32 %v5348_v54, %v5795_v14  ;;  %v1821_v40 = vmul.f32 %v1820_v61, %v5776_v51  ;;  %v1832_v9 = vmul.f32 %v1831_v47, %v5776_v51  ;;  %v898_v10 = vadd.f32 0.0036580483, %v897_v0  ;;  %v562_v0 = vpop.f32.mrf.mxu0 }
  0xbe   : > { %v1404_v56 = vsel %vm5824_vm5, %v5346_v17, %v1400_v55  ;;  %v908_v11 = vmul.f32 %v907_v1, %v5804_v20  ;;  %vm1802_vm10 = vweird.f32 %v5348_v54  ;;  %v5854_v17 = vmin.f32 %v1453_v63, 16.0 }
  0xbf   : > { %v1409_v3 = vsel %vm5807_vm4, %v1408_v39, %v1404_v56  ;;  %v1798_v4 = vsub.f32 1.0, %v1797_v57  ;;  %v5350_v7 = vpop.eup %5349  ;;  %v1833_v62 = vadd.f32 0.4994258, %v1832_v9  ;;  %v899_v19 = vmul.f32 %v898_v10, %v5804_v20  ;;  %vm1803_vm12 = vmor %vm1801_vm6, %vm1802_vm10 }
  0xc0   : > { %v1410_v8 = vmul.f32 %v1409_v3, %v1385_v32  ;;  %v1437_v15 = vmul.f32 %v5350_v7, %v5812_v29  ;;  %v909_v21 = vadd.f32 0.014752088, %v908_v11  ;;  %vm1442_vm11 = vweird.f32 %v5350_v7 }
  0xc1   : > { %v1799_v12 = vmul.f32 %v5348_v54, %v1798_v4  ;;  %v1822_v25 = vadd.f32 0.18741608, %v1821_v40  ;;  %v1834_v28 = vmul.f32 %v1833_v62, %v5776_v51  ;;  %v1455_v30 = vmul.f32 2.1237322e-06, %v5854_v17  ;;  %vm5871_vm14 = vmor %vm1441_vm7, %vm1442_vm11  ;;  %v604_v62 = vpop.f32.mrf.mxu1 }
  0xc2   : > { %v5211_v18 = vclamps-f32 %v1410_v8, 1.0  ;;  %v1438_v24 = vsub.f32 1.0, %v1437_v15  ;;  %v910_v2 = vmul.f32 %v909_v21, %v5804_v20  ;;  %v900_v34 = vadd.f32 0.05243302, %v899_v19 }
  0xc3   : > { %v1800_v22 = vadd.f32 %v5348_v54, %v1799_v12  ;;  %v1448_v43 = vor.u32 1.1754944e-38, %v1447_v5  ;;  %v5875_v45 = vadd.f32 1.0, %v1834_v28  ;;  %v5883_v29 = vadd.f32 %v5715_v36, %v5799_v16 }
  0xc4   : > { %v2267_v26 = vadd.f32 1.0, %v5211_v18  ;;  %v1439_v32 = vmul.f32 %v5350_v7, %v1438_v24  ;;  %v911_v55 = vadd.f32 0.112945676, %v910_v2  ;;  %v756_v59 = vmul.f32 0.5, %v5732_v52 }
  0xc5   : > { %v1804_v31 = vsel %vm1803_vm12, %v5348_v54, %v1800_v22  ;;  %v1823_v54 = vmul.f32 %v1822_v25, %v5776_v51  ;;  %5351 = vrcp.f32 %v5875_v45  ;;  %v5893_v60 = vmul.f32 0.5, %v5752_v6 }
  0xc6   : > { %v2303_v38 = vmul.f32 %v2267_v26, %v5781_v58  ;;  %v1809_v39 = vsel %vm5837_vm9, %v1808_v41, %v1804_v31  ;;  %v1440_v50 = vadd.f32 %v5350_v7, %v1439_v32  ;;  %v765_v58 = vmul.f32 0.5, %v5729_v49 }
  0xc7   : > { %v1810_v46 = vmul.f32 %v1809_v39, %v1785_v42  ;;  %v1456_v41 = vadd.f32 0.00028619796, %v1455_v30  ;;  %v901_v42 = vmul.f32 %v900_v34, %v5804_v20  ;;  %v912_v51 = vmul.f32 %v911_v55, %v5804_v20 }
  0xc8   : > { %2484 = vst.msk [vmem:[#allocation2 + $0xa9] sm:$0xff] %vm2469_vm8, %v2303_v38  ;;  %v1444_v57 = vsel %vm5871_vm14, %v5350_v7, %v1440_v50  ;;  %v5896_v61 = vmul.f32 0.5, %v5765_v27  ;;  %v1824_v56 = vadd.f32 1.1283791, %v1823_v54  ;;  %v1845_v1 = vand.u32 2147483647, %v5875_v45 }
  0xc9   : > { %v5221_v48 = vclamps-f32 %v1810_v46, 1.0  ;;  %v1449_v49 = vsel %vm5862_vm13, %v1448_v43, %v1444_v57  ;;  %v913_v47 = vadd.f32 0.4994258, %v912_v51  ;;  %v1457_v3 = vmul.f32 %v1456_v41, %v5854_v17 }
  0xca   : > { %v1450_v63 = vmul.f32 %v1449_v49, %v5832_v53  ;;  %v1466_v52 = vmul.f32 3.8918573e-05, %v5854_v17  ;;  %v5903_v4 = vmul.f32 0.70710677, %v5883_v29  ;;  %v902_v40 = vadd.f32 0.18741608, %v901_v42 }
  0xcb   : > { %v2277_v16 = vadd.f32 1.0, %v5221_v48  ;;  %v914_v27 = vmul.f32 %v913_v47, %v5804_v20  ;;  %v5352_v7 = vpop.eup %5351  ;;  %v1458_v8 = vadd.f32 0.0036580483, %v1457_v3  ;;  %v668_v10 = vmul.f32 %v5710_v35, %v562_v0 }
  0xcc   : > { %v5212_v5 = vclamps-f32 %v1450_v63, 1.0  ;;  %v1467_v53 = vadd.f32 0.001143296, %v1466_v52  ;;  %v1853_v9 = vmul.f32 %v5903_v4, %v5903_v4  ;;  %v1825_v12 = vmul.f32 %v1824_v56, %v5761_v23 }
  0xcd   : > { %v2313_v6 = vmul.f32 %v2277_v16, %v765_v58  ;;  %v1837_v15 = vmul.f32 %v5352_v7, %v5875_v45  ;;  %v1847_v18 = vand.u32 2147483648, %v5875_v45  ;;  %v5913_v19 = vadd.f32 1.0, %v914_v27 }
  0xce   : > { %v2268_v11 = vadd.f32 1.0, %v5212_v5  ;;  %v1459_v21 = vmul.f32 %v1458_v8, %v5854_v17  ;;  %v1468_v22 = vmul.f32 %v1467_v53, %v5854_v17  ;;  %v5917_v24 = vmin.f32 %v1853_v9, 16.0 }
  0xcf   : > { %2494 = vst.msk [vmem:[#allocation2 + $0x121] sm:$0xff] %vm2469_vm8, %v2313_v6  ;;  %v1838_v26 = vsub.f32 1.0, %v1837_v15  ;;  %vm1841_vm15 = vweird.f32 %v5875_v45  ;;  %v5921_v28 = vadd.f32 %v5715_v36, %v668_v10  ;;  %vm5923_vm2 = vcmp.eq.f32.partialorder %v1845_v1, 8.507059e+37 }
  0xd0   : > { %v2304_v25 = vmul.f32 %v2268_v11, %v756_v59  ;;  %v903_v2 = vmul.f32 %v902_v40, %v5804_v20  ;;  %5353 = vrcp.f32 %v5913_v19  ;;  %v682_v30 = vmul.f32 %v5710_v35, %v604_v62 }
  0xd1   : > { %v1839_v31 = vmul.f32 %v5352_v7, %v1838_v26  ;;  %vm1842_vm3 = vweird.f32 %v5352_v7  ;;  %v1460_v32 = vadd.f32 0.05243302, %v1459_v21  ;;  %v1469_v33 = vadd.f32 0.014752088, %v1468_v22 }
  0xd2   : > { %2485 = vst.msk [vmem:[#allocation2 + $0xb1] sm:$0xff] %vm2469_vm8, %v2304_v25  ;;  %v1848_v34 = vor.u32 1.1754944e-38, %v1847_v18  ;;  %v5932_v38 = vmul.f32 0.5, %v5793_v13  ;;  %v1855_v39 = vmul.f32 2.1237322e-06, %v5917_v24  ;;  %v927_v20 = vand.u32 2147483648, %v5913_v19  ;;  %vm1843_vm4 = vmor %vm1841_vm15, %vm1842_vm3 }
  0xd3   : > { %v1866_v14 = vmul.f32 3.8918573e-05, %v5917_v24  ;;  %v1840_v43 = vadd.f32 %v5352_v7, %v1839_v31  ;;  %v1470_v46 = vmul.f32 %v1469_v33, %v5854_v17  ;;  %v5939_v50 = vmul.f32 0.70710677, %v5921_v28 }
  0xd4   : > { %v904_v54 = vadd.f32 1.1283791, %v903_v2  ;;  %v1856_v55 = vadd.f32 0.00028619796, %v1855_v39  ;;  %v5944_v13 = vadd.f32 %v5715_v36, %v682_v30  ;;  %vm921_vm5 = vweird.f32 %v5913_v19 }
  0xd5   : > { %v1867_v58 = vadd.f32 0.001143296, %v1866_v14  ;;  %v1844_v41 = vsel %vm1843_vm4, %v5352_v7, %v1840_v43  ;;  %v1461_v48 = vmul.f32 %v1460_v32, %v5854_v17  ;;  %v1471_v57 = vadd.f32 0.112945676, %v1470_v46  ;;  %v634_v14 = vpop.f32.mrf.mxu3 }
  0xd6   : > { %v933_v42 = vmul.f32 %v5939_v50, %v5939_v50  ;;  %v5354_v51 = vpop.eup %5353  ;;  %v1849_v45 = vsel %vm5923_vm2, %v1848_v34, %v1844_v41  ;;  %v1857_v59 = vmul.f32 %v1856_v55, %v5917_v24  ;;  %v5955_v16 = vmul.f32 0.70710677, %v5944_v13 }
  0xd7   : > { %v1868_v49 = vmul.f32 %v1867_v58, %v5917_v24  ;;  %v1850_v63 = vmul.f32 %v1849_v45, %v1825_v12  ;;  %v917_v56 = vmul.f32 %v5354_v51, %v5913_v19  ;;  %v925_v47 = vand.u32 2147483647, %v5913_v19 }
  0xd8   : > { %v928_v0 = vor.u32 1.1754944e-38, %v927_v20  ;;  %v1472_v1 = vmul.f32 %v1471_v57, %v5854_v17  ;;  %v1858_v3 = vadd.f32 0.0036580483, %v1857_v59  ;;  %v5960_v6 = vmin.f32 %v933_v42, 16.0 }
  0xd9   : > { %v1869_v52 = vadd.f32 0.014752088, %v1868_v49  ;;  %v5222_v5 = vclamps-f32 %v1850_v63, 1.0  ;;  %v918_v40 = vsub.f32 1.0, %v917_v56  ;;  %v1462_v27 = vadd.f32 0.18741608, %v1461_v48 }
  0xda   : > { %v1493_v7 = vmul.f32 %v5955_v16, %v5955_v16  ;;  %v1473_v8 = vadd.f32 0.4994258, %v1472_v1  ;;  %v1859_v53 = vmul.f32 %v1858_v3, %v5917_v24  ;;  %v935_v10 = vmul.f32 2.1237322e-06, %v5960_v6 }
  0xdb   : > { %v1870_v9 = vmul.f32 %v1869_v52, %v5917_v24  ;;  %v2278_v11 = vadd.f32 1.0, %v5222_v5  ;;  %v919_v12 = vmul.f32 %v5354_v51, %v918_v40  ;;  %vm922_vm6 = vweird.f32 %v5354_v51 }
  0xdc   : > { %v946_v15 = vmul.f32 3.8918573e-05, %v5960_v6  ;;  %v1474_v18 = vmul.f32 %v1473_v8, %v5854_v17  ;;  %v1860_v62 = vadd.f32 0.05243302, %v1859_v53  ;;  %v936_v22 = vadd.f32 0.00028619796, %v935_v10  ;;  %vm923_vm7 = vmor %vm921_vm5, %vm922_vm6 }
  0xdd   : > { %v1871_v21 = vadd.f32 0.112945676, %v1870_v9  ;;  %v2314_v25 = vmul.f32 %v2278_v11, %v5893_v60  ;;  %v920_v26 = vadd.f32 %v5354_v51, %v919_v12  ;;  %v5970_v2 = vmin.f32 %v1493_v7, 16.0 }
  0xde   : > { %v947_v23 = vadd.f32 0.001143296, %v946_v15  ;;  %v1475_v30 = vadd.f32 1.0, %v1474_v18  ;;  %v1861_v31 = vmul.f32 %v1860_v62, %v5917_v24  ;;  %v937_v33 = vmul.f32 %v936_v22, %v5960_v6 }
  0xdf   : > { %v1872_v32 = vmul.f32 %v1871_v21, %v5917_v24  ;;  %2495 = vst.msk [vmem:[#allocation2 + $0x129] sm:$0xff] %vm2469_vm8, %v2314_v25  ;;  %v905_v34 = vmul.f32 %v904_v54, %v5774_v44  ;;  %v924_v39 = vsel %vm923_vm7, %v5354_v51, %v920_v26  ;;  %vm926_vm9 = vcmp.eq.f32.partialorder %v925_v47, 8.507059e+37 }
  0xe0   : > { %v948_v60 = vmul.f32 %v947_v23, %v5960_v6  ;;  %v929_v43 = vsel %vm926_vm9, %v928_v0, %v924_v39  ;;  %5355 = vrcp.f32 %v1475_v30  ;;  %v1495_v19 = vmul.f32 2.1237322e-06, %v5970_v2  ;;  %v565_v23 = vpop.f32.mrf.mxu0  ;;  %v607_v39 = vpop.f32.mrf.mxu1 }
  0xe1   : > { %v1506_v20 = vmul.f32 3.8918573e-05, %v5970_v2  ;;  %v930_v46 = vmul.f32 %v929_v43, %v905_v34  ;;  %v1463_v55 = vmul.f32 %v1462_v27, %v5854_v17  ;;  %v1862_v58 = vadd.f32 0.18741608, %v1861_v31 }
  0xe2   : > { %v1873_v41 = vadd.f32 0.4994258, %v1872_v32  ;;  %v5984_v48 = vmul.f32 0.5, %v5883_v29  ;;  %v938_v44 = vadd.f32 0.0036580483, %v937_v33  ;;  %v692_v57 = vmul.f32 %v5710_v35, %v634_v14 }
  0xe3   : > { %v949_v54 = vadd.f32 0.014752088, %v948_v60  ;;  %v5199_v42 = vclamps-f32 %v930_v46, 1.0  ;;  %v1485_v51 = vand.u32 2147483647, %v1475_v30  ;;  %v1863_v45 = vmul.f32 %v1862_v58, %v5917_v24 }
  0xe4   : > { %v1874_v59 = vmul.f32 %v1873_v41, %v5917_v24  ;;  %v939_v49 = vmul.f32 %v938_v44, %v5960_v6  ;;  %v1496_v17 = vadd.f32 0.00028619796, %v1495_v19  ;;  %v1507_v56 = vadd.f32 0.001143296, %v1506_v20 }
  0xe5   : > { %v950_v63 = vmul.f32 %v949_v54, %v5960_v6  ;;  %v2255_v47 = vadd.f32 1.0, %v5199_v42  ;;  %v1464_v0 = vadd.f32 1.1283791, %v1463_v55  ;;  %v5994_v1 = vmul.f32 0.5, %v5921_v28 }
  0xe6   : > { %v5991_v29 = vadd.f32 1.0, %v1874_v59  ;;  %v5356_v3 = vpop.eup %5355  ;;  %v940_v52 = vadd.f32 0.05243302, %v939_v49  ;;  %v1497_v40 = vmul.f32 %v1496_v17, %v5970_v2  ;;  %v1508_v24 = vmul.f32 %v1507_v56, %v5970_v2 }
  0xe7   : > { %v951_v5 = vadd.f32 0.112945676, %v950_v63  ;;  %v2291_v27 = vmul.f32 %v2255_v47, %v5896_v61  ;;  %v1477_v7 = vmul.f32 %v5356_v3, %v1475_v30  ;;  %vm1481_vm10 = vweird.f32 %v1475_v30 }
  0xe8   : > { %v6000_v8 = vadd.f32 %v5715_v36, %v692_v57  ;;  %vm6002_vm11 = vcmp.eq.f32.partialorder %v1485_v51, 8.507059e+37  ;;  %v1487_v28 = vand.u32 2147483648, %v1475_v30  ;;  %v1864_v9 = vadd.f32 1.1283791, %v1863_v45 }
  0xe9   : > { %5357 = vrcp.f32 %v5991_v29  ;;  %2472 = vst.msk [vmem:[#allocation2 + $0x19] sm:$0xff] %vm2469_vm8, %v2291_v27  ;;  %v1478_v10 = vsub.f32 1.0, %v1477_v7  ;;  %vm1482_vm12 = vweird.f32 %v5356_v3  ;;  %v941_v11 = vmul.f32 %v940_v52, %v5960_v6 }
  0xea   : > { %v952_v61 = vmul.f32 %v951_v5, %v5960_v6  ;;  %v1465_v12 = vmul.f32 %v1464_v0, %v5818_v37  ;;  %v1885_v15 = vand.u32 2147483647, %v5991_v29  ;;  %v1498_v18 = vadd.f32 0.0036580483, %v1497_v40  ;;  %vm6016_vm13 = vmor %vm1481_vm10, %vm1482_vm12 }
  0xeb   : > { %v1509_v62 = vadd.f32 0.014752088, %v1508_v24  ;;  %v1479_v21 = vmul.f32 %v5356_v3, %v1478_v10  ;;  %v942_v22 = vadd.f32 0.18741608, %v941_v11  ;;  %v6013_v26 = vmul.f32 0.70710677, %v6000_v8 }
  0xec   : > { %v953_v25 = vadd.f32 0.4994258, %v952_v61  ;;  %v1488_v32 = vor.u32 1.1754944e-38, %v1487_v28  ;;  %v1865_v33 = vmul.f32 %v1864_v9, %v5903_v4  ;;  %v1499_v37 = vmul.f32 %v1498_v18, %v5970_v2 }
  0xed   : > { %v1510_v34 = vmul.f32 %v1509_v62, %v5970_v2  ;;  %v1480_v60 = vadd.f32 %v5356_v3, %v1479_v21  ;;  %vm1881_vm14 = vweird.f32 %v5991_v29  ;;  %v1887_v14 = vand.u32 2147483648, %v5991_v29 }
  0xee   : > { %v954_v43 = vmul.f32 %v953_v25, %v5960_v6  ;;  %v1893_v30 = vmul.f32 %v6013_v26, %v6013_v26  ;;  %v943_v20 = vmul.f32 %v942_v22, %v5960_v6  ;;  %v1500_v46 = vadd.f32 0.05243302, %v1499_v37  ;;  %v637_v22 = vpop.f32.mrf.mxu3 }
  0xef   : > { %v5358_v19 = vpop.eup %5357  ;;  %v1511_v4 = vadd.f32 0.112945676, %v1510_v34  ;;  %v669_v55 = vmul.f32 %v5710_v35, %v565_v23  ;;  %v1484_v58 = vsel %vm6016_vm13, %v5356_v3, %v1480_v60  ;;  %vm6033_vm15 = vcmp.eq.f32.partialorder %v1885_v15, 8.507059e+37 }
  0xf0   : > { %v1877_v41 = vmul.f32 %v5358_v19, %v5991_v29  ;;  %v683_v54 = vmul.f32 %v5710_v35, %v607_v39  ;;  %v1489_v57 = vsel %vm6002_vm11, %v1488_v32, %v1484_v58  ;;  %v6040_v42 = vadd.f32 1.0, %v954_v43 }
  0xf1   : > { %v1501_v6 = vmul.f32 %v1500_v46, %v5970_v2  ;;  %v1512_v51 = vmul.f32 %v1511_v4, %v5970_v2  ;;  %v1490_v45 = vmul.f32 %v1489_v57, %v1465_v12  ;;  %v1888_v49 = vor.u32 1.1754944e-38, %v1887_v14 }
  0xf2   : > { %v1878_v59 = vsub.f32 1.0, %v1877_v41  ;;  %v6044_v63 = vmin.f32 %v1893_v30, 16.0  ;;  %vm1882_vm2 = vweird.f32 %v5358_v19  ;;  %v944_v17 = vadd.f32 1.1283791, %v943_v20 }
  0xf3   : > { %5359 = vrcp.f32 %v6040_v42  ;;  %v6048_v56 = vadd.f32 %v5715_v36, %v669_v55  ;;  %v5213_v47 = vclamps-f32 %v1490_v45, 1.0  ;;  %v1502_v3 = vadd.f32 0.18741608, %v1501_v6  ;;  %vm1883_vm3 = vmor %vm1881_vm14, %vm1882_vm2 }
  0xf4   : > { %v1879_v0 = vmul.f32 %v5358_v19, %v1878_v59  ;;  %v1513_v52 = vadd.f32 0.4994258, %v1512_v51  ;;  %v965_v5 = vand.u32 2147483647, %v6040_v42  ;;  %v1895_v40 = vmul.f32 2.1237322e-06, %v6044_v63 }
  0xf5   : > { %v1906_v24 = vmul.f32 3.8918573e-05, %v6044_v63  ;;  %v6054_v27 = vadd.f32 %v5715_v36, %v683_v54  ;;  %v2269_v7 = vadd.f32 1.0, %v5213_v47  ;;  %v1503_v28 = vmul.f32 %v1502_v3, %v5970_v2 }
  0xf6   : > { %v1880_v53 = vadd.f32 %v5358_v19, %v1879_v0  ;;  %v1514_v9 = vmul.f32 %v1513_v52, %v5970_v2  ;;  %v945_v10 = vmul.f32 %v944_v17, %v5939_v50  ;;  %v967_v11 = vand.u32 2147483648, %v6040_v42 }
  0xf7   : > { %v1896_v61 = vadd.f32 0.00028619796, %v1895_v40  ;;  %v1907_v12 = vadd.f32 0.001143296, %v1906_v24  ;;  %v2305_v15 = vmul.f32 %v2269_v7, %v5932_v38  ;;  %v1504_v62 = vadd.f32 1.1283791, %v1503_v28 }
  0xf8   : > { %v1884_v18 = vsel %vm1883_vm3, %v5358_v19, %v1880_v53  ;;  %v6064_v21 = vadd.f32 1.0, %v1514_v9  ;;  %v6071_v50 = vmul.f32 0.70710677, %v6048_v56  ;;  %vm961_vm4 = vweird.f32 %v6040_v42 }
  0xf9   : > { %v5360_v25 = vpop.eup %5359  ;;  %v1889_v2 = vsel %vm6033_vm15, %v1888_v49, %v1884_v18  ;;  %v1897_v29 = vmul.f32 %v1896_v61, %v6044_v63  ;;  %v1908_v23 = vmul.f32 %v1907_v12, %v6044_v63  ;;  %2486 = vst.msk [vmem:[#allocation2 + $0xc1] sm:$0xff] %vm2469_vm8, %v2305_v15  ;;  %vm6076_vm5 = vcmp.eq.f32.partialorder %v965_v5, 8.507059e+37 }
  0xfa   : > { %v1890_v31 = vmul.f32 %v1889_v2, %v1865_v33  ;;  %v957_v38 = vmul.f32 %v5360_v25, %v6040_v42  ;;  %vm962_vm6 = vweird.f32 %v5360_v25  ;;  %v968_v37 = vor.u32 1.1754944e-38, %v967_v11 }
  0xfb   : > { %5361 = vrcp.f32 %v6064_v21  ;;  %v6082_v34 = vmul.f32 %v5710_v35, %v637_v22  ;;  %v1898_v14 = vadd.f32 0.0036580483, %v1897_v29  ;;  %v1909_v43 = vadd.f32 0.014752088, %v1908_v23  ;;  %vm963_vm9 = vmor %vm961_vm4, %vm962_vm6 }
  0xfc   : > { %v5223_v39 = vclamps-f32 %v1890_v31, 1.0  ;;  %v958_v60 = vsub.f32 1.0, %v957_v38  ;;  %v6085_v33 = vmul.f32 %v1504_v62, %v5955_v16  ;;  %v1527_v30 = vand.u32 2147483648, %v6064_v21 }
  0xfd   : > { %v973_v19 = vmul.f32 %v6071_v50, %v6071_v50  ;;  %v6091_v20 = vmul.f32 0.70710677, %v6054_v27  ;;  %v1899_v55 = vmul.f32 %v1898_v14, %v6044_v63  ;;  %v1910_v58 = vmul.f32 %v1909_v43, %v6044_v63  ;;  %v568_v14 = vpop.f32.mrf.mxu0 }
  0xfe   : > { %v2279_v46 = vadd.f32 1.0, %v5223_v39  ;;  %v959_v4 = vmul.f32 %v5360_v25, %v958_v60  ;;  %vm1521_vm7 = vweird.f32 %v6064_v21  ;;  %v1525_v41 = vand.u32 2147483647, %v6064_v21 }
  0xff   : > { %v6097_v16 = vmin.f32 %v973_v19, 16.0  ;;  %v1533_v44 = vmul.f32 %v6091_v20, %v6091_v20  ;;  %v1900_v6 = vadd.f32 0.05243302, %v1899_v55  ;;  %v1911_v51 = vadd.f32 0.112945676, %v1910_v58 }
 0x100   : > { %v2315_v54 = vmul.f32 %v2279_v46, %v5984_v48  ;;  %v960_v57 = vadd.f32 %v5360_v25, %v959_v4  ;;  %v1528_v59 = vor.u32 1.1754944e-38, %v1527_v30  ;;  %vm1526_vm12 = vcmp.eq.f32.partialorder %v1525_v41, 8.507059e+37 }
 0x101   : > { %v5362_v45 = vpop.eup %5361  ;;  %v975_v49 = vmul.f32 2.1237322e-06, %v6097_v16  ;;  %v986_v17 = vmul.f32 3.8918573e-05, %v6097_v16  ;;  %v6107_v47 = vmin.f32 %v1533_v44, 16.0  ;;  %v1901_v3 = vmul.f32 %v1900_v6, %v6044_v63 }
 0x102   : > { %2496 = vst.msk [vmem:[#allocation2 + $0x139] sm:$0xff] %vm2469_vm8, %v2315_v54  ;;  %v964_v0 = vsel %vm963_vm9, %v5360_v25, %v960_v57  ;;  %v1517_v48 = vmul.f32 %v5362_v45, %v6064_v21  ;;  %vm1522_vm10 = vweird.f32 %v5362_v45  ;;  %v1912_v42 = vmul.f32 %v1911_v51, %v6044_v63 }
 0x103   : > { %v969_v52 = vsel %vm6076_vm5, %v968_v37, %v964_v0  ;;  %v976_v5 = vadd.f32 0.00028619796, %v975_v49  ;;  %v987_v40 = vadd.f32 0.001143296, %v986_v17  ;;  %v1902_v53 = vadd.f32 0.18741608, %v1901_v3  ;;  %vm6123_vm11 = vmor %vm1521_vm7, %vm1522_vm10 }
 0x104   : > { %v970_v24 = vmul.f32 %v969_v52, %v945_v10  ;;  %v1518_v7 = vsub.f32 1.0, %v1517_v48  ;;  %v1535_v28 = vmul.f32 2.1237322e-06, %v6107_v47  ;;  %v1913_v9 = vadd.f32 0.4994258, %v1912_v42 }
 0x105   : > { %v977_v11 = vmul.f32 %v976_v5, %v6097_v16  ;;  %v988_v61 = vmul.f32 %v987_v40, %v6097_v16  ;;  %v1546_v12 = vmul.f32 3.8918573e-05, %v6107_v47  ;;  %v1903_v62 = vmul.f32 %v1902_v53, %v6044_v63  ;;  %v610_v5 = vpop.f32.mrf.mxu1 }
 0x106   : > { %v5200_v15 = vclamps-f32 %v970_v24, 1.0  ;;  %v1519_v18 = vmul.f32 %v5362_v45, %v1518_v7  ;;  %v1536_v22 = vadd.f32 0.00028619796, %v1535_v28  ;;  %v1914_v25 = vmul.f32 %v1913_v9, %v6044_v63 }
 0x107   : > { %v978_v2 = vadd.f32 0.0036580483, %v977_v11  ;;  %v989_v29 = vadd.f32 0.014752088, %v988_v61  ;;  %v1547_v23 = vadd.f32 0.001143296, %v1546_v12  ;;  %v6140_v4 = vadd.f32 %v5715_v36, %v6082_v34 }
 0x108   : > { %v2256_v31 = vadd.f32 1.0, %v5200_v15  ;;  %v1520_v38 = vadd.f32 %v5362_v45, %v1519_v18  ;;  %v1537_v32 = vmul.f32 %v1536_v22, %v6107_v47  ;;  %v6129_v37 = vadd.f32 1.0, %v1914_v25  ;;  %v6182_v15 = vld [vmem:[%s9314_s2] ss:$0 sm:$0xff] }
 0x109   : > { %v979_v39 = vmul.f32 %v978_v2, %v6097_v16  ;;  %v990_v21 = vmul.f32 %v989_v29, %v6097_v16  ;;  %v1548_v60 = vmul.f32 %v1547_v23, %v6107_v47  ;;  %v1904_v46 = vadd.f32 1.1283791, %v1903_v62 }
 0x10a   : > { %v2292_v43 = vmul.f32 %v2256_v31, %v5994_v1  ;;  %v1524_v63 = vsel %vm6123_vm11, %v5362_v45, %v1520_v38  ;;  %v1538_v30 = vadd.f32 0.0036580483, %v1537_v32  ;;  %5363 = vrcp.f32 %v6129_v37 }
 0x10b   : > { %v1529_v19 = vsel %vm1526_vm12, %v1528_v59, %v1524_v63  ;;  %v980_v58 = vadd.f32 0.05243302, %v979_v39  ;;  %v991_v41 = vadd.f32 0.112945676, %v990_v21  ;;  %v670_v1 = vmul.f32 %v5710_v35, %v568_v14 }
 0x10c   : > { %2473 = vst.msk [vmem:[#allocation2 + $0x21] sm:$0xff] %vm2469_vm8, %v2292_v43  ;;  %v1530_v55 = vmul.f32 %v1529_v19, %v6085_v33  ;;  %v758_v44 = vmul.f32 0.5, %v5944_v13  ;;  %v6147_v54 = vmul.f32 0.5, %v6000_v8  ;;  %v1539_v57 = vmul.f32 %v1538_v30, %v6107_v47 }
 0x10d   : > { %v1549_v6 = vadd.f32 0.014752088, %v1548_v60  ;;  %v6151_v34 = vmul.f32 0.5, %v6048_v56  ;;  %v981_v45 = vmul.f32 %v980_v58, %v6097_v16  ;;  %v992_v33 = vmul.f32 %v991_v41, %v6097_v16  ;;  %v6201_v60 = vld [vmem:[%s9315_s3] ss:$0 sm:$0xff] }
 0x10e   : > { %v5214_v51 = vclamps-f32 %v1530_v55, 1.0  ;;  %v1905_v59 = vmul.f32 %v1904_v46, %v6013_v26  ;;  %v1540_v49 = vadd.f32 0.05243302, %v1539_v57  ;;  %v6158_v13 = vmul.f32 0.70710677, %v6140_v4 }
 0x10f   : > { %v1550_v35 = vmul.f32 %v1549_v6, %v6107_v47  ;;  %v982_v17 = vadd.f32 0.18741608, %v981_v45  ;;  %v993_v0 = vadd.f32 0.4994258, %v992_v33  ;;  %v6161_v48 = vadd.f32 %v5715_v36, %v670_v1 }
 0x110   : > { %v2270_v8 = vadd.f32 1.0, %v5214_v51  ;;  %v5364_v56 = vpop.eup %5363  ;;  %v1925_v3 = vand.u32 2147483647, %v6129_v37  ;;  %v1541_v52 = vmul.f32 %v1540_v49, %v6107_v47  ;;  %v1933_v26 = vmul.f32 %v6158_v13, %v6158_v13 }
 0x111   : > { %v1551_v42 = vadd.f32 0.112945676, %v1550_v35  ;;  %v1917_v24 = vmul.f32 %v5364_v56, %v6129_v37  ;;  %v1927_v7 = vand.u32 2147483648, %v6129_v37  ;;  %v983_v53 = vmul.f32 %v982_v17, %v6097_v16 }
 0x112   : > { %v2306_v40 = vmul.f32 %v2270_v8, %v758_v44  ;;  %v994_v36 = vmul.f32 %v993_v0, %v6097_v16  ;;  %v1542_v28 = vadd.f32 0.18741608, %v1541_v52  ;;  %v6172_v11 = vmin.f32 %v1933_v26, 16.0 }
 0x113   : > { %v1552_v9 = vmul.f32 %v1551_v42, %v6107_v47  ;;  %v1918_v61 = vsub.f32 1.0, %v1917_v24  ;;  %vm1921_vm13 = vweird.f32 %v6129_v37  ;;  %v6177_v12 = vmul.f32 0.70710677, %v6161_v48 }
 0x114   : > { %2487 = vst.msk [vmem:[#allocation2 + $0xc9] sm:$0xff] %vm2469_vm8, %v2306_v40  ;;  %v684_v16 = vmul.f32 %v6182_v15, %v610_v5  ;;  %v6185_v18 = vadd.f32 1.0, %v994_v36  ;;  %v1543_v62 = vmul.f32 %v1542_v28, %v6107_v47  ;;  %v1935_v10 = vmul.f32 2.1237322e-06, %v6172_v11  ;;  %v640_v40 = vpop.f32.mrf.mxu3 }
 0x115   : > { %v1553_v22 = vadd.f32 0.4994258, %v1552_v9  ;;  %v1919_v25 = vmul.f32 %v5364_v56, %v1918_v61  ;;  %vm1922_vm14 = vweird.f32 %v5364_v56  ;;  %v1946_v2 = vmul.f32 3.8918573e-05, %v6172_v11 }
 0x116   : > { %v1013_v29 = vmul.f32 %v6177_v12, %v6177_v12  ;;  %vm6192_vm15 = vcmp.eq.f32.partialorder %v1925_v3, 8.507059e+37  ;;  %v1928_v31 = vor.u32 1.1754944e-38, %v1927_v7  ;;  %v984_v38 = vadd.f32 1.1283791, %v983_v53  ;;  %vm1923_vm2 = vmor %vm1921_vm13, %vm1922_vm14 }
 0x117   : > { %5365 = vrcp.f32 %v6185_v18  ;;  %v1920_v32 = vadd.f32 %v5364_v56, %v1919_v25  ;;  %v1554_v39 = vmul.f32 %v1553_v22, %v6107_v47  ;;  %v1936_v21 = vadd.f32 0.00028619796, %v1935_v10 }
 0x118   : > { %v6204_v14 = vadd.f32 %v6201_v60, %v684_v16  ;;  %v1007_v43 = vand.u32 2147483648, %v6185_v18  ;;  %v1544_v63 = vadd.f32 1.1283791, %v1543_v62  ;;  %v1947_v30 = vadd.f32 0.001143296, %v1946_v2 }
 0x119   : > { %v6209_v19 = vmin.f32 %v1013_v29, 16.0  ;;  %v1924_v46 = vsel %vm1923_vm2, %v5364_v56, %v1920_v32  ;;  %v1005_v47 = vand.u32 2147483647, %v6185_v18  ;;  %v6212_v55 = vadd.f32 1.0, %v1554_v39 }
 0x11a   : > { %v1937_v58 = vmul.f32 %v1936_v21, %v6172_v11  ;;  %v1929_v41 = vsel %vm6192_vm15, %v1928_v31, %v1924_v46  ;;  %v985_v1 = vmul.f32 %v984_v38, %v6071_v50  ;;  %v1948_v37 = vmul.f32 %v1947_v30, %v6172_v11 }
 0x11b   : > { %v1015_v44 = vmul.f32 2.1237322e-06, %v6209_v19  ;;  %v1930_v57 = vmul.f32 %v1929_v41, %v1905_v59  ;;  %vm1001_vm3 = vweird.f32 %v6185_v18  ;;  %5367 = vrcp.f32 %v6212_v55 }
 0x11c   : > { %v1026_v6 = vmul.f32 3.8918573e-05, %v6209_v19  ;;  %v1008_v45 = vor.u32 1.1754944e-38, %v1007_v43  ;;  %v6224_v33 = vmul.f32 %v1544_v63, %v6091_v20  ;;  %v1938_v49 = vadd.f32 0.0036580483, %v1937_v58 }
 0x11d   : > { %v5366_v51 = vpop.eup %5365  ;;  %v1949_v35 = vadd.f32 0.014752088, %v1948_v37  ;;  %v5224_v8 = vclamps-f32 %v1930_v57, 1.0  ;;  %vm6227_vm4 = vcmp.eq.f32.partialorder %v1005_v47, 8.507059e+37  ;;  %vm1561_vm5 = vweird.f32 %v6212_v55 }
 0x11e   : > { %v997_v50 = vmul.f32 %v5366_v51, %v6185_v18  ;;  %v1565_v59 = vand.u32 2147483647, %v6212_v55  ;;  %v1567_v0 = vand.u32 2147483648, %v6212_v55  ;;  %v1939_v56 = vmul.f32 %v1938_v49, %v6172_v11 }
 0x11f   : > { %v1950_v20 = vmul.f32 %v1949_v35, %v6172_v11  ;;  %v1016_v3 = vadd.f32 0.00028619796, %v1015_v44  ;;  %v2280_v52 = vadd.f32 1.0, %v5224_v8  ;;  %v1027_v26 = vadd.f32 0.001143296, %v1026_v6 }
 0x120   : > { %v998_v42 = vsub.f32 1.0, %v997_v50  ;;  %v6237_v5 = vmul.f32 0.70710677, %v6204_v14  ;;  %vm1002_vm6 = vweird.f32 %v5366_v51  ;;  %v1940_v24 = vadd.f32 0.05243302, %v1939_v56 }
 0x121   : > { %v1951_v7 = vadd.f32 0.112945676, %v1950_v20  ;;  %v1017_v53 = vmul.f32 %v1016_v3, %v6209_v19  ;;  %v5368_v36 = vpop.eup %5367  ;;  %v2316_v28 = vmul.f32 %v2280_v52, %v6147_v54  ;;  %v1028_v61 = vmul.f32 %v1027_v26, %v6209_v19  ;;  %vm1003_vm7 = vmor %vm1001_vm3, %vm1002_vm6 }
 0x122   : > { %v999_v9 = vmul.f32 %v5366_v51, %v998_v42  ;;  %v1573_v16 = vmul.f32 %v6237_v5, %v6237_v5  ;;  %v1557_v62 = vmul.f32 %v5368_v36, %v6212_v55  ;;  %v1941_v22 = vmul.f32 %v1940_v24, %v6172_v11  ;;  %v571_v24 = vpop.f32.mrf.mxu0 }
 0x123   : > { %v1952_v10 = vmul.f32 %v1951_v7, %v6172_v11  ;;  %v694_v25 = vmul.f32 %v6182_v15, %v640_v40  ;;  %2497 = vst.msk [vmem:[#allocation2 + $0x141] sm:$0xff] %vm2469_vm8, %v2316_v28  ;;  %v1018_v29 = vadd.f32 0.0036580483, %v1017_v53  ;;  %v1029_v23 = vadd.f32 0.014752088, %v1028_v61  ;;  %v613_v28 = vpop.f32.mrf.mxu1 }
 0x124   : > { %v1000_v2 = vadd.f32 %v5366_v51, %v999_v9  ;;  %v6249_v54 = vmin.f32 %v1573_v16, 16.0  ;;  %v1558_v31 = vsub.f32 1.0, %v1557_v62  ;;  %vm1562_vm9 = vweird.f32 %v5368_v36 }
 0x125   : > { %v1942_v38 = vadd.f32 0.18741608, %v1941_v22  ;;  %v1953_v32 = vadd.f32 0.4994258, %v1952_v10  ;;  %v1019_v21 = vmul.f32 %v1018_v29, %v6209_v19  ;;  %v1030_v43 = vmul.f32 %v1029_v23, %v6209_v19  ;;  %vm6262_vm10 = vmor %vm1561_vm5, %vm1562_vm9 }
 0x126   : > { %v1004_v39 = vsel %vm1003_vm7, %v5366_v51, %v1000_v2  ;;  %v1575_v63 = vmul.f32 2.1237322e-06, %v6249_v54  ;;  %v1559_v46 = vmul.f32 %v5368_v36, %v1558_v31  ;;  %v1568_v47 = vor.u32 1.1754944e-38, %v1567_v0 }
 0x127   : > { %v1009_v30 = vsel %vm6227_vm4, %v1008_v45, %v1004_v39  ;;  %v1954_v58 = vmul.f32 %v1953_v32, %v6172_v11  ;;  %v1020_v37 = vadd.f32 0.05243302, %v1019_v21  ;;  %v1031_v44 = vadd.f32 0.112945676, %v1030_v43 }
 0x128   : > { %v1010_v18 = vmul.f32 %v1009_v30, %v985_v1  ;;  %v1576_v57 = vadd.f32 0.00028619796, %v1575_v63  ;;  %v1560_v6 = vadd.f32 %v5368_v36, %v1559_v46  ;;  %vm1566_vm11 = vcmp.eq.f32.partialorder %v1565_v59, 8.507059e+37 }
 0x129   : > { %v1943_v51 = vmul.f32 %v1942_v38, %v6172_v11  ;;  %v6267_v49 = vadd.f32 1.0, %v1954_v58  ;;  %v1021_v35 = vmul.f32 %v1020_v37, %v6209_v19  ;;  %v1032_v1 = vmul.f32 %v1031_v44, %v6209_v19 }
 0x12a   : > { %v5201_v45 = vclamps-f32 %v1010_v18, 1.0  ;;  %v1577_v55 = vmul.f32 %v1576_v57, %v6249_v54  ;;  %v759_v8 = vmul.f32 0.5, %v6054_v27  ;;  %v1564_v50 = vsel %vm6262_vm10, %v5368_v36, %v1560_v6 }
 0x12b   : > { %v6276_v17 = vmul.f32 0.5, %v6140_v4  ;;  %5369 = vrcp.f32 %v6267_v49  ;;  %v1569_v59 = vsel %vm1566_vm11, %v1568_v47, %v1564_v50  ;;  %v6280_v0 = vmul.f32 0.5, %v6161_v48 }
 0x12c   : > { %v2257_v11 = vadd.f32 1.0, %v5201_v45  ;;  %v6283_v56 = vadd.f32 %v6201_v60, %v694_v25  ;;  %v1570_v20 = vmul.f32 %v1569_v59, %v6224_v33  ;;  %v1022_v3 = vadd.f32 0.18741608, %v1021_v35 }
 0x12d   : > { %v1033_v27 = vadd.f32 0.4994258, %v1032_v1  ;;  %v1578_v52 = vadd.f32 0.0036580483, %v1577_v55  ;;  %v1944_v26 = vadd.f32 1.1283791, %v1943_v51  ;;  %v671_v10 = vmul.f32 %v6182_v15, %v571_v24 }
 0x12e   : > { %v2293_v42 = vmul.f32 %v2257_v11, %v6151_v34  ;;  %v1965_v4 = vand.u32 2147483647, %v6267_v49  ;;  %v1586_v40 = vmul.f32 3.8918573e-05, %v6249_v54  ;;  %v5215_v7 = vclamps-f32 %v1570_v20, 1.0 }
 0x12f   : > { %v1023_v48 = vmul.f32 %v1022_v3, %v6209_v19  ;;  %v1034_v53 = vmul.f32 %v1033_v27, %v6209_v19  ;;  %v1579_v36 = vmul.f32 %v1578_v52, %v6249_v54  ;;  %v1967_v33 = vand.u32 2147483648, %v6267_v49 }
 0x130   : > { %2474 = vst.msk [vmem:[#allocation2 + $0x31] sm:$0xff] %vm2469_vm8, %v2293_v42  ;;  %v1587_v9 = vadd.f32 0.001143296, %v1586_v40  ;;  %v6295_v34 = vmul.f32 0.70710677, %v6283_v56  ;;  %v2271_v16 = vadd.f32 1.0, %v5215_v7  ;;  %v685_v29 = vmul.f32 %v6182_v15, %v613_v28 }
 0x131   : > { %v5370_v61 = vpop.eup %5369  ;;  %v6297_v62 = vadd.f32 1.0, %v1034_v53  ;;  %v1580_v22 = vadd.f32 0.05243302, %v1579_v36  ;;  %v1945_v31 = vmul.f32 %v1944_v26, %v6158_v13  ;;  %v1024_v38 = vadd.f32 1.1283791, %v1023_v48 }
 0x132   : > { %v1957_v19 = vmul.f32 %v5370_v61, %v6267_v49  ;;  %v1588_v25 = vmul.f32 %v1587_v9, %v6249_v54  ;;  %v1973_v2 = vmul.f32 %v6295_v34, %v6295_v34  ;;  %v2307_v23 = vmul.f32 %v2271_v16, %v759_v8 }
 0x133   : > { %5371 = vrcp.f32 %v6297_v62  ;;  %vm1961_vm12 = vweird.f32 %v6267_v49  ;;  %vm6308_vm13 = vcmp.eq.f32.partialorder %v1965_v4, 8.507059e+37  ;;  %v1581_v21 = vmul.f32 %v1580_v22, %v6249_v54 }
 0x134   : > { %v1958_v32 = vsub.f32 1.0, %v1957_v19  ;;  %2488 = vst.msk [vmem:[#allocation2 + $0xd9] sm:$0xff] %vm2469_vm8, %v2307_v23  ;;  %v1968_v43 = vor.u32 1.1754944e-38, %v1967_v33  ;;  %v1589_v63 = vadd.f32 0.014752088, %v1588_v25  ;;  %v6314_v30 = vmin.f32 %v1973_v2, 16.0  ;;  %v643_v33 = vpop.f32.mrf.mxu3 }
 0x135   : > { %v6317_v13 = vadd.f32 %v6201_v60, %v671_v10  ;;  %vm1962_vm14 = vweird.f32 %v5370_v61  ;;  %v1045_v47 = vand.u32 2147483647, %v6297_v62  ;;  %v6321_v58 = vadd.f32 %v6201_v60, %v685_v29 }
 0x136   : > { %v1959_v46 = vmul.f32 %v5370_v61, %v1958_v32  ;;  %v1025_v18 = vmul.f32 %v1024_v38, %v6177_v12  ;;  %v1590_v41 = vmul.f32 %v1589_v63, %v6249_v54  ;;  %v1975_v37 = vmul.f32 2.1237322e-06, %v6314_v30  ;;  %vm1963_vm15 = vmor %vm1961_vm12, %vm1962_vm14 }
 0x137   : > { %v1986_v44 = vmul.f32 3.8918573e-05, %v6314_v30  ;;  %v1047_v6 = vand.u32 2147483648, %v6297_v62  ;;  %v1582_v51 = vadd.f32 0.18741608, %v1581_v21  ;;  %vm1041_vm2 = vweird.f32 %v6297_v62 }
 0x138   : > { %v1960_v57 = vadd.f32 %v5370_v61, %v1959_v46  ;;  %v6329_v45 = vmul.f32 0.70710677, %v6317_v13  ;;  %v1591_v12 = vadd.f32 0.112945676, %v1590_v41  ;;  %v1976_v1 = vadd.f32 0.00028619796, %v1975_v37 }
 0x139   : > { %v5372_v35 = vpop.eup %5371  ;;  %v1987_v55 = vadd.f32 0.001143296, %v1986_v44  ;;  %vm6335_vm3 = vcmp.eq.f32.partialorder %v1045_v47, 8.507059e+37  ;;  %v6340_v59 = vmul.f32 0.70710677, %v6321_v58  ;;  %v1048_v26 = vor.u32 1.1754944e-38, %v1047_v6 }
 0x13a   : > { %v1964_v8 = vsel %vm1963_vm15, %v5370_v61, %v1960_v57  ;;  %v1037_v50 = vmul.f32 %v5372_v35, %v6297_v62  ;;  %v1592_v49 = vmul.f32 %v1591_v12, %v6249_v54  ;;  %v1977_v3 = vmul.f32 %v1976_v1, %v6314_v30 }
 0x13b   : > { %v1969_v20 = vsel %vm6308_vm13, %v1968_v43, %v1964_v8  ;;  %v1988_v27 = vmul.f32 %v1987_v55, %v6314_v30  ;;  %v1053_v4 = vmul.f32 %v6329_v45, %v6329_v45  ;;  %v1583_v40 = vmul.f32 %v1582_v51, %v6249_v54 }
 0x13c   : > { %v1970_v52 = vmul.f32 %v1969_v20, %v1945_v31  ;;  %v1038_v42 = vsub.f32 1.0, %v1037_v50  ;;  %v1593_v24 = vadd.f32 0.4994258, %v1592_v49  ;;  %v1978_v7 = vadd.f32 0.0036580483, %v1977_v3 }
 0x13d   : > { %v1989_v48 = vadd.f32 0.014752088, %v1988_v27  ;;  %vm1042_vm4 = vweird.f32 %v5372_v35  ;;  %v6350_v28 = vmin.f32 %v1053_v4, 16.0  ;;  %v1613_v22 = vmul.f32 %v6340_v59, %v6340_v59 }
 0x13e   : > { %v5225_v53 = vclamps-f32 %v1970_v52, 1.0  ;;  %v1039_v36 = vmul.f32 %v5372_v35, %v1038_v42  ;;  %v1594_v9 = vmul.f32 %v1593_v24, %v6249_v54  ;;  %v1979_v61 = vmul.f32 %v1978_v7, %v6314_v30  ;;  %vm1043_vm5 = vmor %vm1041_vm2, %vm1042_vm4 }
 0x13f   : > { %v1990_v16 = vmul.f32 %v1989_v48, %v6314_v30  ;;  %v1055_v25 = vmul.f32 2.1237322e-06, %v6350_v28  ;;  %v1066_v2 = vmul.f32 3.8918573e-05, %v6350_v28  ;;  %v695_v54 = vmul.f32 %v6182_v15, %v643_v33 }
 0x140   : > { %v2281_v10 = vadd.f32 1.0, %v5225_v53  ;;  %v1040_v19 = vadd.f32 %v5372_v35, %v1039_v36  ;;  %v1595_v29 = vadd.f32 1.0, %v1594_v9  ;;  %v1980_v23 = vadd.f32 0.05243302, %v1979_v61  ;;  %v574_v61 = vpop.f32.mrf.mxu0 }
 0x141   : > { %v1991_v31 = vadd.f32 0.112945676, %v1990_v16  ;;  %v1056_v39 = vadd.f32 0.00028619796, %v1055_v25  ;;  %v1067_v21 = vadd.f32 0.001143296, %v1066_v2  ;;  %v6377_v6 = vadd.f32 %v6201_v60, %v695_v54 }
 0x142   : > { %v2317_v38 = vmul.f32 %v2281_v10, %v6276_v17  ;;  %v1044_v32 = vsel %vm1043_vm5, %v5372_v35, %v1040_v19  ;;  %5373 = vrcp.f32 %v1595_v29  ;;  %v6366_v63 = vmul.f32 0.5, %v6283_v56 }
 0x143   : > { %v1049_v43 = vsel %vm6335_vm3, %v1048_v26, %v1044_v32  ;;  %v6368_v46 = vmin.f32 %v1613_v22, 16.0  ;;  %v1584_v47 = vadd.f32 1.1283791, %v1583_v40  ;;  %v1981_v41 = vmul.f32 %v1980_v23, %v6314_v30 }
 0x144   : > { %2498 = vst.msk [vmem:[#allocation2 + $0x151] sm:$0xff] %vm2469_vm8, %v2317_v38  ;;  %v1050_v62 = vmul.f32 %v1049_v43, %v1025_v18  ;;  %v1992_v17 = vmul.f32 %v1991_v31, %v6314_v30  ;;  %v1057_v37 = vmul.f32 %v1056_v39, %v6350_v28  ;;  %v1068_v44 = vmul.f32 %v1067_v21, %v6350_v28 }
 0x145   : > { %v1615_v57 = vmul.f32 2.1237322e-06, %v6368_v46  ;;  %v6380_v51 = vmul.f32 0.5, %v6204_v14  ;;  %v1982_v35 = vadd.f32 0.18741608, %v1981_v41  ;;  %v1607_v4 = vand.u32 2147483648, %v1595_v29 }
 0x146   : > { %v5202_v56 = vclamps-f32 %v1050_v62, 1.0  ;;  %v1993_v18 = vadd.f32 0.4994258, %v1992_v17  ;;  %v1058_v12 = vadd.f32 0.0036580483, %v1057_v37  ;;  %vm1601_vm6 = vweird.f32 %v1595_v29 }
 0x147   : > { %v1069_v1 = vadd.f32 0.014752088, %v1068_v44  ;;  %v1616_v55 = vadd.f32 0.00028619796, %v1615_v57  ;;  %v1605_v50 = vand.u32 2147483647, %v1595_v29  ;;  %v1983_v11 = vmul.f32 %v1982_v35, %v6314_v30 }
 0x148   : > { %v2258_v8 = vadd.f32 1.0, %v5202_v56  ;;  %v1994_v20 = vmul.f32 %v1993_v18, %v6314_v30  ;;  %v5374_v49 = vpop.eup %5373  ;;  %v1059_v3 = vmul.f32 %v1058_v12, %v6350_v28  ;;  %v6388_v14 = vmul.f32 0.70710677, %v6377_v6 }
 0x149   : > { %v1070_v27 = vmul.f32 %v1069_v1, %v6350_v28  ;;  %v1617_v52 = vmul.f32 %v1616_v55, %v6368_v46  ;;  %v1597_v26 = vmul.f32 %v5374_v49, %v1595_v29  ;;  %v1626_v40 = vmul.f32 3.8918573e-05, %v6368_v46 }
 0x14a   : > { %v2294_v42 = vmul.f32 %v2258_v8, %v6280_v0  ;;  %v6392_v24 = vadd.f32 1.0, %v1994_v20  ;;  %v1060_v7 = vadd.f32 0.05243302, %v1059_v3  ;;  %v2013_v48 = vmul.f32 %v6388_v14, %v6388_v14 }
 0x14b   : > { %v1071_v30 = vadd.f32 0.112945676, %v1070_v27  ;;  %v1598_v53 = vsub.f32 1.0, %v1597_v26  ;;  %vm1602_vm7 = vweird.f32 %v5374_v49  ;;  %v1618_v36 = vadd.f32 0.0036580483, %v1617_v52 }
 0x14c   : > { %2475 = vst.msk [vmem:[#allocation2 + $0x39] sm:$0xff] %vm2469_vm8, %v2294_v42  ;;  %v1585_v33 = vmul.f32 %v1584_v47, %v6237_v5  ;;  %v1984_v0 = vadd.f32 1.1283791, %v1983_v11  ;;  %5375 = vrcp.f32 %v6392_v24  ;;  %v6400_v9 = vmul.f32 0.5, %v6317_v13  ;;  %vm6405_vm9 = vmor %vm1601_vm6, %vm1602_vm7 }
 0x14d   : > { %v1599_v16 = vmul.f32 %v5374_v49, %v1598_v53  ;;  %v1061_v22 = vmul.f32 %v1060_v7, %v6350_v28  ;;  %v1072_v10 = vmul.f32 %v1071_v30, %v6350_v28  ;;  %v1619_v19 = vmul.f32 %v1618_v36, %v6368_v46 }
 0x14e   : > { %vm6409_vm10 = vcmp.eq.f32.partialorder %v1605_v50, 8.507059e+37  ;;  %v1608_v2 = vor.u32 1.1754944e-38, %v1607_v4  ;;  %v1627_v29 = vadd.f32 0.001143296, %v1626_v40  ;;  %v6413_v13 = vmin.f32 %v2013_v48, 16.0  ;;  %v577_v4 = vpop.f32.mrf.mxu0 }
 0x14f   : > { %v1600_v23 = vadd.f32 %v5374_v49, %v1599_v16  ;;  %v1062_v31 = vadd.f32 0.18741608, %v1061_v22  ;;  %v1073_v54 = vadd.f32 0.4994258, %v1072_v10  ;;  %v672_v38 = vmul.f32 %v6182_v15, %v574_v61  ;;  %v616_v10 = vpop.f32.mrf.mxu1 }
 0x150   : > { %v1985_v32 = vmul.f32 %v1984_v0, %v6295_v34  ;;  %v1628_v39 = vmul.f32 %v1627_v29, %v6368_v46  ;;  %v2015_v21 = vmul.f32 2.1237322e-06, %v6413_v13  ;;  %v2026_v43 = vmul.f32 3.8918573e-05, %v6413_v13 }
 0x151   : > { %v1604_v62 = vsel %vm6405_vm9, %v5374_v49, %v1600_v23  ;;  %v1063_v47 = vmul.f32 %v1062_v31, %v6350_v28  ;;  %v1074_v41 = vmul.f32 %v1073_v54, %v6350_v28  ;;  %v1620_v17 = vadd.f32 0.05243302, %v1619_v19 }
 0x152   : > { %v5376_v37 = vpop.eup %5375  ;;  %v1609_v44 = vsel %vm6409_vm10, %v1608_v2, %v1604_v62  ;;  %v1629_v57 = vadd.f32 0.014752088, %v1628_v39  ;;  %v2016_v34 = vadd.f32 0.00028619796, %v2015_v21  ;;  %v2027_v56 = vadd.f32 0.001143296, %v2026_v43 }
 0x153   : > { %v1610_v35 = vmul.f32 %v1609_v44, %v1585_v33  ;;  %v1997_v18 = vmul.f32 %v5376_v37, %v6392_v24  ;;  %v2005_v12 = vand.u32 2147483647, %v6392_v24  ;;  %v6429_v1 = vmul.f32 0.5, %v6321_v58 }
 0x154   : > { %v2007_v55 = vand.u32 2147483648, %v6392_v24  ;;  %v6432_v8 = vadd.f32 1.0, %v1074_v41  ;;  %v1630_v28 = vmul.f32 %v1629_v57, %v6368_v46  ;;  %v2017_v50 = vmul.f32 %v2016_v34, %v6413_v13 }
 0x155   : > { %v5216_v11 = vclamps-f32 %v1610_v35, 1.0  ;;  %v1998_v20 = vsub.f32 1.0, %v1997_v18  ;;  %v1621_v49 = vmul.f32 %v1620_v17, %v6368_v46  ;;  %v2028_v3 = vmul.f32 %v2027_v56, %v6413_v13 }
 0x156   : > { %vm2001_vm11 = vweird.f32 %v6392_v24  ;;  %v1064_v27 = vadd.f32 1.1283791, %v1063_v47  ;;  %5377 = vrcp.f32 %v6432_v8  ;;  %v6441_v58 = vadd.f32 %v6201_v60, %v672_v38 }
 0x157   : > { %v2272_v52 = vadd.f32 1.0, %v5216_v11  ;;  %v1999_v42 = vmul.f32 %v5376_v37, %v1998_v20  ;;  %vm2002_vm12 = vweird.f32 %v5376_v37  ;;  %v1631_v26 = vadd.f32 0.112945676, %v1630_v28 }
 0x158   : > { %vm6443_vm13 = vcmp.eq.f32.partialorder %v2005_v12, 8.507059e+37  ;;  %v2008_v40 = vor.u32 1.1754944e-38, %v2007_v55  ;;  %v2018_v7 = vadd.f32 0.0036580483, %v2017_v50  ;;  %v2029_v30 = vadd.f32 0.014752088, %v2028_v3  ;;  %vm2003_vm14 = vmor %vm2001_vm11, %vm2002_vm12  ;;  %v646_v3 = vpop.f32.mrf.mxu3 }
 0x159   : > { %v2308_v48 = vmul.f32 %v2272_v52, %v6380_v51  ;;  %v2000_v53 = vadd.f32 %v5376_v37, %v1999_v42  ;;  %v1622_v36 = vadd.f32 0.18741608, %v1621_v49  ;;  %v1632_v33 = vmul.f32 %v1631_v26, %v6368_v46 }
 0x15a   : > { %v1065_v0 = vmul.f32 %v1064_v27, %v6329_v45  ;;  %v2019_v61 = vmul.f32 %v2018_v7, %v6413_v13  ;;  %v2030_v16 = vmul.f32 %v2029_v30, %v6413_v13  ;;  %v6455_v22 = vmul.f32 0.70710677, %v6441_v58 }
 0x15b   : > { %2489 = vst.msk [vmem:[#allocation2 + $0xe1] sm:$0xff] %vm2469_vm8, %v2308_v48  ;;  %v2004_v51 = vsel %vm2003_vm14, %v5376_v37, %v2000_v53  ;;  %vm1081_vm15 = vweird.f32 %v6432_v8  ;;  %v1085_v19 = vand.u32 2147483647, %v6432_v8  ;;  %v1087_v24 = vand.u32 2147483648, %v6432_v8 }
 0x15c   : > { %v1633_v25 = vadd.f32 0.4994258, %v1632_v33  ;;  %v5378_v5 = vpop.eup %5377  ;;  %v2009_v45 = vsel %vm6443_vm13, %v2008_v40, %v2004_v51  ;;  %v2020_v2 = vadd.f32 0.05243302, %v2019_v61  ;;  %v2031_v29 = vadd.f32 0.112945676, %v2030_v16 }
 0x15d   : > { %v1093_v23 = vmul.f32 %v6455_v22, %v6455_v22  ;;  %v2010_v31 = vmul.f32 %v2009_v45, %v1985_v32  ;;  %v1077_v54 = vmul.f32 %v5378_v5, %v6432_v8  ;;  %v686_v39 = vmul.f32 %v6182_v15, %v616_v10 }
 0x15e   : > { %v1634_v38 = vmul.f32 %v1633_v25, %v6368_v46  ;;  %v1623_v21 = vmul.f32 %v1622_v36, %v6368_v46  ;;  %v2021_v43 = vmul.f32 %v2020_v2, %v6413_v13  ;;  %v2032_v62 = vmul.f32 %v2031_v29, %v6413_v13 }
 0x15f   : > { %v6471_v47 = vmin.f32 %v1093_v23, 16.0  ;;  %v5226_v41 = vclamps-f32 %v2010_v31, 1.0  ;;  %v1078_v17 = vsub.f32 1.0, %v1077_v54  ;;  %vm6473_vm2 = vcmp.eq.f32.partialorder %v1085_v19, 8.507059e+37 }
 0x160   : > { %v1635_v32 = vadd.f32 1.0, %v1634_v38  ;;  %vm1082_vm3 = vweird.f32 %v5378_v5  ;;  %v2022_v44 = vadd.f32 0.18741608, %v2021_v43  ;;  %v2033_v57 = vadd.f32 0.4994258, %v2032_v62 }
 0x161   : > { %v1095_v34 = vmul.f32 2.1237322e-06, %v6471_v47  ;;  %v2282_v56 = vadd.f32 1.0, %v5226_v41  ;;  %v1079_v46 = vmul.f32 %v5378_v5, %v1078_v17  ;;  %v6479_v35 = vadd.f32 %v6201_v60, %v686_v39  ;;  %vm1083_vm4 = vmor %vm1081_vm15, %vm1082_vm3 }
 0x162   : > { %5379 = vrcp.f32 %v1635_v32  ;;  %v1088_v18 = vor.u32 1.1754944e-38, %v1087_v24  ;;  %v1624_v12 = vadd.f32 1.1283791, %v1623_v21  ;;  %v2023_v55 = vmul.f32 %v2022_v44, %v6413_v13 }
 0x163   : > { %v2034_v28 = vmul.f32 %v2033_v57, %v6413_v13  ;;  %v2318_v50 = vmul.f32 %v2282_v56, %v6366_v63  ;;  %v1080_v11 = vadd.f32 %v5378_v5, %v1079_v46  ;;  %v1096_v20 = vadd.f32 0.00028619796, %v1095_v34 }
 0x164   : > { %v1106_v49 = vmul.f32 3.8918573e-05, %v6471_v47  ;;  %v1645_v27 = vand.u32 2147483647, %v1635_v32  ;;  %v1647_v52 = vand.u32 2147483648, %v1635_v32  ;;  %v1625_v8 = vmul.f32 %v1624_v12, %v6340_v59 }
 0x165   : > { %v2024_v42 = vadd.f32 1.1283791, %v2023_v55  ;;  %v6488_v26 = vadd.f32 1.0, %v2034_v28  ;;  %2499 = vst.msk [vmem:[#allocation2 + $0x159] sm:$0xff] %vm2469_vm8, %v2318_v50  ;;  %v1084_v13 = vsel %vm1083_vm4, %v5378_v5, %v1080_v11  ;;  %v1097_v63 = vmul.f32 %v1096_v20, %v6471_v47 }
 0x166   : > { %v1107_v40 = vadd.f32 0.001143296, %v1106_v49  ;;  %v6493_v7 = vmul.f32 0.70710677, %v6479_v35  ;;  %v1089_v30 = vsel %vm6473_vm2, %v1088_v18, %v1084_v13  ;;  %v696_v48 = vmul.f32 %v6182_v15, %v646_v3 }
 0x167   : > { %5381 = vrcp.f32 %v6488_v26  ;;  %v1090_v36 = vmul.f32 %v1089_v30, %v1065_v0  ;;  %vm1641_vm5 = vweird.f32 %v1635_v32  ;;  %v1098_v33 = vadd.f32 0.0036580483, %v1097_v63 }
 0x168   : > { %v5380_v53 = vpop.eup %5379  ;;  %v673_v61 = vmul.f32 %v6182_v15, %v577_v4  ;;  %vm6501_vm6 = vcmp.eq.f32.partialorder %v1645_v27, 8.507059e+37  ;;  %v1108_v51 = vmul.f32 %v1107_v40, %v6471_v47  ;;  %v1653_v59 = vmul.f32 %v6493_v7, %v6493_v7 }
 0x169   : > { %v1637_v16 = vmul.f32 %v5380_v53, %v1635_v32  ;;  %v5203_v19 = vclamps-f32 %v1090_v36, 1.0  ;;  %v1648_v24 = vor.u32 1.1754944e-38, %v1647_v52  ;;  %v2025_v25 = vmul.f32 %v2024_v42, %v6388_v14 }
 0x16a   : > { %v1099_v0 = vmul.f32 %v1098_v33, %v6471_v47  ;;  %vm1642_vm7 = vweird.f32 %v5380_v53  ;;  %v1109_v45 = vadd.f32 0.014752088, %v1108_v51  ;;  %v6510_v2 = vmin.f32 %v1653_v59, 16.0 }
 0x16b   : > { %v1638_v5 = vsub.f32 1.0, %v1637_v16  ;;  %v2259_v29 = vadd.f32 1.0, %v5203_v19  ;;  %vm2041_vm9 = vweird.f32 %v6488_v26  ;;  %v2045_v23 = vand.u32 2147483647, %v6488_v26  ;;  %vm6519_vm10 = vmor %vm1641_vm5, %vm1642_vm7 }
 0x16c   : > { %v1100_v31 = vadd.f32 0.05243302, %v1099_v0  ;;  %v1110_v39 = vmul.f32 %v1109_v45, %v6471_v47  ;;  %v1655_v21 = vmul.f32 2.1237322e-06, %v6510_v2  ;;  %v1666_v14 = vmul.f32 3.8918573e-05, %v6510_v2 }
 0x16d   : > { %v5382_v54 = vpop.eup %5381  ;;  %v1639_v38 = vmul.f32 %v5380_v53, %v1638_v5  ;;  %v2295_v43 = vmul.f32 %v2259_v29, %v6400_v9  ;;  %v6526_v37 = vadd.f32 %v6201_v60, %v696_v48  ;;  %v2047_v9 = vand.u32 2147483648, %v6488_v26 }
 0x16e   : > { %v2037_v41 = vmul.f32 %v5382_v54, %v6488_v26  ;;  %v1101_v17 = vmul.f32 %v1100_v31, %v6471_v47  ;;  %v1111_v57 = vadd.f32 0.112945676, %v1110_v39  ;;  %v1656_v34 = vadd.f32 0.00028619796, %v1655_v21 }
 0x16f   : > { %v1640_v44 = vadd.f32 %v5380_v53, %v1639_v38  ;;  %v1667_v56 = vadd.f32 0.001143296, %v1666_v14  ;;  %2476 = vst.msk [vmem:[#allocation2 + $0x49] sm:$0xff] %vm2469_vm8, %v2295_v43  ;;  %vm2042_vm11 = vweird.f32 %v5382_v54  ;;  %v6531_v32 = vadd.f32 %v6201_v60, %v673_v61 }
 0x170   : > { %v2038_v46 = vsub.f32 1.0, %v2037_v41  ;;  %v1112_v12 = vmul.f32 %v1111_v57, %v6471_v47  ;;  %v1657_v55 = vmul.f32 %v1656_v34, %v6510_v2  ;;  %v1102_v20 = vadd.f32 0.18741608, %v1101_v17  ;;  %vm2043_vm13 = vmor %vm2041_vm9, %vm2042_vm11 }
 0x171   : > { %v1644_v18 = vsel %vm6519_vm10, %v5380_v53, %v1640_v44  ;;  %v1668_v28 = vmul.f32 %v1667_v56, %v6510_v2  ;;  %v6541_v49 = vmul.f32 0.70710677, %v6526_v37  ;;  %vm2046_vm12 = vcmp.eq.f32.partialorder %v2045_v23, 8.507059e+37 }
 0x172   : > { %v1649_v50 = vsel %vm6501_vm6, %v1648_v24, %v1644_v18  ;;  %v2039_v11 = vmul.f32 %v5382_v54, %v2038_v46  ;;  %v1113_v27 = vadd.f32 0.4994258, %v1112_v12  ;;  %v1658_v52 = vadd.f32 0.0036580483, %v1657_v55 }
 0x173   : > { %v1650_v3 = vmul.f32 %v1649_v50, %v1625_v8  ;;  %v1669_v42 = vadd.f32 0.014752088, %v1668_v28  ;;  %v2048_v13 = vor.u32 1.1754944e-38, %v2047_v9  ;;  %v2053_v63 = vmul.f32 %v6541_v49, %v6541_v49 }
 0x174   : > { %v2040_v4 = vadd.f32 %v5382_v54, %v2039_v11  ;;  %v1114_v30 = vmul.f32 %v1113_v27, %v6471_v47  ;;  %v1659_v48 = vmul.f32 %v1658_v52, %v6510_v2  ;;  %v1103_v36 = vmul.f32 %v1102_v20, %v6471_v47  ;;  %v619_v47 = vpop.f32.mrf.mxu1 }
 0x175   : > { %v5217_v40 = vclamps-f32 %v1650_v3, 1.0  ;;  %v1670_v8 = vmul.f32 %v1669_v42, %v6510_v2  ;;  %v6552_v33 = vmin.f32 %v2053_v63, 16.0  ;;  %v6555_v61 = vmul.f32 0.70710677, %v6531_v32  ;;  %v649_v42 = vpop.f32.mrf.mxu3 }
 0x176   : > { %v2044_v53 = vsel %vm2043_vm13, %v5382_v54, %v2040_v4  ;;  %v6557_v51 = vadd.f32 1.0, %v1114_v30  ;;  %v1660_v26 = vadd.f32 0.05243302, %v1659_v48  ;;  %v1104_v29 = vadd.f32 1.1283791, %v1103_v36  ;;  %v580_v4 = vpop.f32.mrf.mxu0 }
 0x177   : > { %v2273_v16 = vadd.f32 1.0, %v5217_v40  ;;  %v2049_v10 = vsel %vm2046_vm12, %v2048_v13, %v2044_v53  ;;  %v1671_v19 = vadd.f32 0.112945676, %v1670_v8  ;;  %v2055_v24 = vmul.f32 2.1237322e-06, %v6552_v33 }
 0x178   : > { %v2050_v59 = vmul.f32 %v2049_v10, %v2025_v25  ;;  %v2066_v0 = vmul.f32 3.8918573e-05, %v6552_v33  ;;  %5383 = vrcp.f32 %v6557_v51  ;;  %v1661_v23 = vmul.f32 %v1660_v26, %v6510_v2 }
 0x179   : > { %v2309_v5 = vmul.f32 %v2273_v16, %v6429_v1  ;;  %v1672_v31 = vmul.f32 %v1671_v19, %v6510_v2  ;;  %v2056_v54 = vadd.f32 0.00028619796, %v2055_v24  ;;  %v1133_v38 = vmul.f32 %v6555_v61, %v6555_v61 }
 0x17a   : > { %v5227_v45 = vclamps-f32 %v2050_v59, 1.0  ;;  %v2067_v25 = vadd.f32 0.001143296, %v2066_v0  ;;  %v771_v39 = vmul.f32 0.5, %v6377_v6  ;;  %v687_v14 = vmul.f32 %v6182_v15, %v619_v47 }
 0x17b   : > { %2490 = vst.msk [vmem:[#allocation2 + $0xf1] sm:$0xff] %vm2469_vm8, %v2309_v5  ;;  %v1673_v1 = vadd.f32 0.4994258, %v1672_v31  ;;  %v6571_v43 = vmul.f32 0.5, %v6441_v58  ;;  %v2057_v62 = vmul.f32 %v2056_v54, %v6552_v33  ;;  %v6575_v17 = vmin.f32 %v1133_v38, 16.0 }
 0x17c   : > { %v2283_v21 = vadd.f32 1.0, %v5227_v45  ;;  %v2068_v41 = vmul.f32 %v2067_v25, %v6552_v33  ;;  %v1125_v57 = vand.u32 2147483647, %v6557_v51  ;;  %v1662_v34 = vadd.f32 0.18741608, %v1661_v23 }
 0x17d   : > { %v1674_v56 = vmul.f32 %v1673_v1, %v6510_v2  ;;  %v1105_v46 = vmul.f32 %v1104_v29, %v6455_v22  ;;  %v2058_v9 = vadd.f32 0.0036580483, %v2057_v62  ;;  %v1135_v58 = vmul.f32 2.1237322e-06, %v6575_v17 }
 0x17e   : > { %v2319_v44 = vmul.f32 %v2283_v21, %v771_v39  ;;  %v5384_v6 = vpop.eup %5383  ;;  %v2069_v18 = vadd.f32 0.014752088, %v2068_v41  ;;  %v1127_v55 = vand.u32 2147483648, %v6557_v51  ;;  %v6585_v50 = vadd.f32 %v6201_v60, %v687_v14 }
 0x17f   : > { %v1117_v12 = vmul.f32 %v5384_v6, %v6557_v51  ;;  %v1675_v28 = vadd.f32 1.0, %v1674_v56  ;;  %v2059_v11 = vmul.f32 %v2058_v9, %v6552_v33  ;;  %v1136_v3 = vadd.f32 0.00028619796, %v1135_v58 }
 0x180   : > { %2500 = vst.msk [vmem:[#allocation2 + $0x169] sm:$0xff] %vm2469_vm8, %v2319_v44  ;;  %v2070_v20 = vmul.f32 %v2069_v18, %v6552_v33  ;;  %v1146_v22 = vmul.f32 3.8918573e-05, %v6575_v17  ;;  %vm1121_vm14 = vweird.f32 %v6557_v51  ;;  %vm6591_vm15 = vcmp.eq.f32.partialorder %v1125_v57, 8.507059e+37 }
 0x181   : > { %v1118_v27 = vsub.f32 1.0, %v1117_v12  ;;  %5385 = vrcp.f32 %v1675_v28  ;;  %vm1122_vm2 = vweird.f32 %v5384_v6  ;;  %v1663_v60 = vmul.f32 %v1662_v34, %v6510_v2 }
 0x182   : > { %v2060_v13 = vadd.f32 0.05243302, %v2059_v11  ;;  %v1137_v63 = vmul.f32 %v1136_v3, %v6575_v17  ;;  %v2071_v30 = vadd.f32 0.112945676, %v2070_v20  ;;  %v1147_v48 = vadd.f32 0.001143296, %v1146_v22  ;;  %vm1123_vm3 = vmor %vm1121_vm14, %vm1122_vm2 }
 0x183   : > { %v1119_v40 = vmul.f32 %v5384_v6, %v1118_v27  ;;  %v6598_v8 = vmul.f32 0.70710677, %v6585_v50  ;;  %v1128_v53 = vor.u32 1.1754944e-38, %v1127_v55  ;;  %v697_v16 = vmul.f32 %v6182_v15, %v649_v42  ;;  %v6637_v22 = vld [vmem:[%s9315_s3] ss:$0 sm:$0xff] }
 0x184   : > { %v1138_v36 = vadd.f32 0.0036580483, %v1137_v63  ;;  %v674_v10 = vmul.f32 %v6182_v15, %v580_v4  ;;  %v2072_v59 = vmul.f32 %v2071_v30, %v6552_v33  ;;  %v1148_v2 = vmul.f32 %v1147_v48, %v6575_v17 }
 0x185   : > { %v1120_v26 = vadd.f32 %v5384_v6, %v1119_v40  ;;  %v1693_v19 = vmul.f32 %v6598_v8, %v6598_v8  ;;  %v1664_v24 = vadd.f32 1.1283791, %v1663_v60  ;;  %vm1681_vm4 = vweird.f32 %v1675_v28 }
 0x186   : > { %v2061_v0 = vmul.f32 %v2060_v13, %v6552_v33  ;;  %v1139_v5 = vmul.f32 %v1138_v36, %v6575_v17  ;;  %v1685_v45 = vand.u32 2147483647, %v1675_v28  ;;  %v2073_v29 = vadd.f32 0.4994258, %v2072_v59 }
 0x187   : > { %v5386_v47 = vpop.eup %5385  ;;  %v1124_v15 = vsel %vm1123_vm3, %v5384_v6, %v1120_v26  ;;  %v1149_v23 = vadd.f32 0.014752088, %v1148_v2  ;;  %v1687_v25 = vand.u32 2147483648, %v1675_v28  ;;  %v6613_v38 = vmin.f32 %v1693_v19, 16.0 }
 0x188   : > { %v1129_v31 = vsel %vm6591_vm15, %v1128_v53, %v1124_v15  ;;  %v1677_v54 = vmul.f32 %v5386_v47, %v1675_v28  ;;  %v2074_v39 = vmul.f32 %v2073_v29, %v6552_v33  ;;  %v1140_v21 = vadd.f32 0.05243302, %v1139_v5 }
 0x189   : > { %v1130_v51 = vmul.f32 %v1129_v31, %v1105_v46  ;;  %v1150_v1 = vmul.f32 %v1149_v23, %v6575_v17  ;;  %vm1682_vm5 = vweird.f32 %v5386_v47  ;;  %v2062_v62 = vadd.f32 0.18741608, %v2061_v0 }
 0x18a   : > { %v1678_v14 = vsub.f32 1.0, %v1677_v54  ;;  %v1695_v41 = vmul.f32 2.1237322e-06, %v6613_v38  ;;  %v6618_v57 = vadd.f32 1.0, %v2074_v39  ;;  %v1141_v34 = vmul.f32 %v1140_v21, %v6575_v17  ;;  %vm6627_vm7 = vmor %vm1681_vm4, %vm1682_vm5 }
 0x18b   : > { %v5204_v44 = vclamps-f32 %v1130_v51, 1.0  ;;  %v1151_v56 = vadd.f32 0.112945676, %v1150_v1  ;;  %v1665_v6 = vmul.f32 %v1664_v24, %v6493_v7  ;;  %vm6622_vm6 = vcmp.eq.f32.partialorder %v1685_v45, 8.507059e+37  ;;  %v6682_v51 = vld [vmem:[%s9314_s2] ss:$0 sm:$0xff] }
 0x18c   : > { %v1679_v9 = vmul.f32 %v5386_v47, %v1678_v14  ;;  %v1696_v18 = vadd.f32 0.00028619796, %v1695_v41  ;;  %v1688_v55 = vor.u32 1.1754944e-38, %v1687_v25  ;;  %5387 = vrcp.f32 %v6618_v57 }
 0x18d   : > { %v2260_v58 = vadd.f32 1.0, %v5204_v44  ;;  %v1706_v11 = vmul.f32 3.8918573e-05, %v6613_v38  ;;  %v1142_v3 = vadd.f32 0.18741608, %v1141_v34  ;;  %v1152_v7 = vmul.f32 %v1151_v56, %v6575_v17 }
 0x18e   : > { %v1680_v20 = vadd.f32 %v5386_v47, %v1679_v9  ;;  %v6640_v28 = vadd.f32 %v6637_v22, %v697_v16  ;;  %v2063_v52 = vmul.f32 %v2062_v62, %v6552_v33  ;;  %v1697_v42 = vmul.f32 %v1696_v18, %v6613_v38 }
 0x18f   : > { %v2296_v27 = vmul.f32 %v2260_v58, %v6571_v43  ;;  %v6646_v4 = vadd.f32 %v6637_v22, %v674_v10  ;;  %v762_v60 = vmul.f32 0.5, %v6479_v35  ;;  %v1153_v63 = vadd.f32 0.4994258, %v1152_v7 }
 0x190   : > { %v1684_v13 = vsel %vm6627_vm7, %v5386_v47, %v1680_v20  ;;  %v1143_v43 = vmul.f32 %v1142_v3, %v6575_v17  ;;  %v1698_v30 = vadd.f32 0.0036580483, %v1697_v42  ;;  %v1707_v33 = vadd.f32 0.001143296, %v1706_v11 }
 0x191   : > { %2477 = vst.msk [vmem:[#allocation2 + $0x51] sm:$0xff] %vm2469_vm8, %v2296_v27  ;;  %v1689_v40 = vsel %vm6622_vm6, %v1688_v55, %v1684_v13  ;;  %v6656_v53 = vmul.f32 0.5, %v6526_v37  ;;  %v1154_v36 = vmul.f32 %v1153_v63, %v6575_v17  ;;  %v6660_v35 = vmul.f32 0.70710677, %v6640_v28  ;;  %v622_v17 = vpop.f32.mrf.mxu1 }
 0x192   : > { %v1690_v48 = vmul.f32 %v1689_v40, %v1665_v6  ;;  %v5388_v16 = vpop.eup %5387  ;;  %v2064_v10 = vadd.f32 1.1283791, %v2063_v52  ;;  %v1699_v26 = vmul.f32 %v1698_v30, %v6613_v38  ;;  %v1708_v59 = vmul.f32 %v1707_v33, %v6613_v38 }
 0x193   : > { %v6665_v2 = vmul.f32 0.70710677, %v6646_v4  ;;  %v2077_v24 = vmul.f32 %v5388_v16, %v6618_v57  ;;  %v2085_v37 = vand.u32 2147483647, %v6618_v57  ;;  %v2087_v0 = vand.u32 2147483648, %v6618_v57 }
 0x194   : > { %v5218_v19 = vclamps-f32 %v1690_v48, 1.0  ;;  %v1144_v5 = vadd.f32 1.1283791, %v1143_v43  ;;  %v6670_v47 = vadd.f32 1.0, %v1154_v36  ;;  %v1709_v15 = vadd.f32 0.014752088, %v1708_v59 }
 0x195   : > { %v2093_v45 = vmul.f32 %v6660_v35, %v6660_v35  ;;  %v2078_v23 = vsub.f32 1.0, %v2077_v24  ;;  %v1700_v31 = vadd.f32 0.05243302, %v1699_v26  ;;  %v1173_v54 = vmul.f32 %v6665_v2, %v6665_v2 }
 0x196   : > { %v2274_v29 = vadd.f32 1.0, %v5218_v19  ;;  %v2065_v25 = vmul.f32 %v2064_v10, %v6541_v49  ;;  %vm2081_vm9 = vweird.f32 %v6618_v57  ;;  %5389 = vrcp.f32 %v6670_v47 }
 0x197   : > { %v688_v39 = vmul.f32 %v6682_v51, %v622_v17  ;;  %v2079_v1 = vmul.f32 %v5388_v16, %v2078_v23  ;;  %vm2082_vm10 = vweird.f32 %v5388_v16  ;;  %v1710_v14 = vmul.f32 %v1709_v15, %v6613_v38 }
 0x198   : > { %v2310_v21 = vmul.f32 %v2274_v29, %v762_v60  ;;  %vm6686_vm11 = vcmp.eq.f32.partialorder %v2085_v37, 8.507059e+37  ;;  %v2088_v49 = vor.u32 1.1754944e-38, %v2087_v0  ;;  %v6690_v41 = vmin.f32 %v2093_v45, 16.0  ;;  %vm2083_vm12 = vmor %vm2081_vm9, %vm2082_vm10 }
 0x199   : > { %v6692_v44 = vmin.f32 %v1173_v54, 16.0  ;;  %v2080_v34 = vadd.f32 %v5388_v16, %v2079_v1  ;;  %v1145_v56 = vmul.f32 %v1144_v5, %v6555_v61  ;;  %v1701_v6 = vmul.f32 %v1700_v31, %v6613_v38 }
 0x19a   : > { %2491 = vst.msk [vmem:[#allocation2 + $0xf9] sm:$0xff] %vm2469_vm8, %v2310_v21  ;;  %v1711_v9 = vadd.f32 0.112945676, %v1710_v14  ;;  %v2095_v46 = vmul.f32 2.1237322e-06, %v6690_v41  ;;  %v6703_v12 = vadd.f32 %v6637_v22, %v688_v39  ;;  %vm1161_vm13 = vweird.f32 %v6670_v47 }
 0x19b   : > { %v2106_v18 = vmul.f32 3.8918573e-05, %v6690_v41  ;;  %v1175_v58 = vmul.f32 2.1237322e-06, %v6692_v44  ;;  %v2084_v55 = vsel %vm2083_vm12, %v5388_v16, %v2080_v34  ;;  %v1165_v61 = vand.u32 2147483647, %v6670_v47  ;;  %v583_v34 = vpop.f32.mrf.mxu0 }
 0x19c   : > { %v1712_v11 = vmul.f32 %v1711_v9, %v6613_v38  ;;  %v1186_v20 = vmul.f32 3.8918573e-05, %v6692_v44  ;;  %v5390_v57 = vpop.eup %5389  ;;  %v2089_v3 = vsel %vm6686_vm11, %v2088_v49, %v2084_v55  ;;  %v2096_v7 = vadd.f32 0.00028619796, %v2095_v46 }
 0x19d   : > { %v2107_v27 = vadd.f32 0.001143296, %v2106_v18  ;;  %v1176_v52 = vadd.f32 0.00028619796, %v1175_v58  ;;  %v2090_v42 = vmul.f32 %v2089_v3, %v2065_v25  ;;  %v1157_v60 = vmul.f32 %v5390_v57, %v6670_v47  ;;  %v652_v25 = vpop.f32.mrf.mxu3 }
 0x19e   : > { %v1167_v13 = vand.u32 2147483648, %v6670_v47  ;;  %v1702_v63 = vadd.f32 0.18741608, %v1701_v6  ;;  %v1713_v40 = vadd.f32 0.4994258, %v1712_v11  ;;  %v2097_v43 = vmul.f32 %v2096_v7, %v6690_v41 }
 0x19f   : > { %v2108_v30 = vmul.f32 %v2107_v27, %v6690_v41  ;;  %v1177_v33 = vmul.f32 %v1176_v52, %v6692_v44  ;;  %v5228_v48 = vclamps-f32 %v2090_v42, 1.0  ;;  %v1158_v36 = vsub.f32 1.0, %v1157_v60 }
 0x1a0   : > { %vm1162_vm14 = vweird.f32 %v5390_v57  ;;  %v1187_v16 = vadd.f32 0.001143296, %v1186_v20  ;;  %v1714_v10 = vmul.f32 %v1713_v40, %v6613_v38  ;;  %v2098_v26 = vadd.f32 0.0036580483, %v2097_v43 }
 0x1a1   : > { %v2109_v59 = vadd.f32 0.014752088, %v2108_v30  ;;  %v1178_v19 = vadd.f32 0.0036580483, %v1177_v33  ;;  %v2284_v24 = vadd.f32 1.0, %v5228_v48  ;;  %v1159_v37 = vmul.f32 %v5390_v57, %v1158_v36  ;;  %vm1163_vm2 = vmor %vm1161_vm13, %vm1162_vm14 }
 0x1a2   : > { %v1188_v0 = vmul.f32 %v1187_v16, %v6692_v44  ;;  %v6719_v17 = vmul.f32 0.70710677, %v6703_v12  ;;  %v6721_v5 = vadd.f32 1.0, %v1714_v10  ;;  %v2099_v15 = vmul.f32 %v2098_v26, %v6690_v41 }
 0x1a3   : > { %v2110_v45 = vmul.f32 %v2109_v59, %v6690_v41  ;;  %v1179_v29 = vmul.f32 %v1178_v19, %v6692_v44  ;;  %v2320_v23 = vmul.f32 %v2284_v24, %v6656_v53  ;;  %v1160_v31 = vadd.f32 %v5390_v57, %v1159_v37 }
 0x1a4   : > { %vm1166_vm15 = vcmp.eq.f32.partialorder %v1165_v61, 8.507059e+37  ;;  %v1189_v54 = vadd.f32 0.014752088, %v1188_v0  ;;  %v1168_v39 = vor.u32 1.1754944e-38, %v1167_v13  ;;  %v1703_v21 = vmul.f32 %v1702_v63, %v6613_v38 }
 0x1a5   : > { %5391 = vrcp.f32 %v6721_v5  ;;  %v1733_v1 = vmul.f32 %v6719_v17, %v6719_v17  ;;  %2501 = vst.msk [vmem:[#allocation2 + $0x171] sm:$0xff] %vm2469_vm8, %v2320_v23  ;;  %v1164_v14 = vsel %vm1163_vm2, %v5390_v57, %v1160_v31  ;;  %v2100_v53 = vadd.f32 0.05243302, %v2099_v15 }
 0x1a6   : > { %v2111_v62 = vadd.f32 0.112945676, %v2110_v45  ;;  %v1190_v49 = vmul.f32 %v1189_v54, %v6692_v44  ;;  %v749_v6 = vmul.f32 0.5, %v6531_v32  ;;  %v1169_v47 = vsel %vm1166_vm15, %v1168_v39, %v1164_v14 }
 0x1a7   : > { %v1180_v9 = vadd.f32 0.05243302, %v1179_v29  ;;  %v698_v46 = vmul.f32 %v6682_v51, %v652_v25  ;;  %v1170_v38 = vmul.f32 %v1169_v47, %v1145_v56  ;;  %v2101_v18 = vmul.f32 %v2100_v53, %v6690_v41 }
 0x1a8   : > { %v2112_v58 = vmul.f32 %v2111_v62, %v6690_v41  ;;  %v1191_v55 = vadd.f32 0.112945676, %v1190_v49  ;;  %v1704_v61 = vadd.f32 1.1283791, %v1703_v21  ;;  %v6741_v20 = vmin.f32 %v1733_v1, 16.0 }
 0x1a9   : > { %v1181_v11 = vmul.f32 %v1180_v9, %v6692_v44  ;;  %v675_v57 = vmul.f32 %v6682_v51, %v583_v34  ;;  %v5205_v3 = vclamps-f32 %v1170_v38, 1.0  ;;  %v2102_v7 = vadd.f32 0.18741608, %v2101_v18 }
 0x1aa   : > { %v2113_v32 = vadd.f32 0.4994258, %v2112_v58  ;;  %v1192_v27 = vmul.f32 %v1191_v55, %v6692_v44  ;;  %vm1721_vm3 = vweird.f32 %v6721_v5  ;;  %v1725_v56 = vand.u32 2147483647, %v6721_v5 }
 0x1ab   : > { %v5392_v52 = vpop.eup %5391  ;;  %v1182_v42 = vadd.f32 0.18741608, %v1181_v11  ;;  %v1735_v60 = vmul.f32 2.1237322e-06, %v6741_v20  ;;  %v2261_v13 = vadd.f32 1.0, %v5205_v3  ;;  %v1727_v40 = vand.u32 2147483648, %v6721_v5 }
 0x1ac   : > { %v1717_v63 = vmul.f32 %v5392_v52, %v6721_v5  ;;  %v6751_v43 = vadd.f32 %v6637_v22, %v698_v46  ;;  %vm1722_vm4 = vweird.f32 %v5392_v52  ;;  %v2114_v30 = vmul.f32 %v2113_v32, %v6690_v41 }
 0x1ad   : > { %v1193_v33 = vadd.f32 0.4994258, %v1192_v27  ;;  %v1736_v48 = vadd.f32 0.00028619796, %v1735_v60  ;;  %v2297_v36 = vmul.f32 %v2261_v13, %v749_v6  ;;  %v2103_v10 = vmul.f32 %v2102_v7, %v6690_v41  ;;  %vm6769_vm5 = vmor %vm1721_vm3, %vm1722_vm4 }
 0x1ae   : > { %v1718_v16 = vsub.f32 1.0, %v1717_v63  ;;  %v1746_v26 = vmul.f32 3.8918573e-05, %v6741_v20  ;;  %v6756_v59 = vadd.f32 1.0, %v2114_v30  ;;  %v1183_v19 = vmul.f32 %v1182_v42, %v6692_v44 }
 0x1af   : > { %v1194_v24 = vmul.f32 %v1193_v33, %v6692_v44  ;;  %v1737_v37 = vmul.f32 %v1736_v48, %v6741_v20  ;;  %2478 = vst.msk [vmem:[#allocation2 + $0x61] sm:$0xff] %vm2469_vm8, %v2297_v36  ;;  %v6763_v45 = vmul.f32 0.70710677, %v6751_v43  ;;  %v1705_v29 = vmul.f32 %v1704_v61, %v6598_v8 }
 0x1b0   : > { %v1719_v0 = vmul.f32 %v5392_v52, %v1718_v16  ;;  %v1747_v15 = vadd.f32 0.001143296, %v1746_v26  ;;  %vm6773_vm6 = vcmp.eq.f32.partialorder %v1725_v56, 8.507059e+37  ;;  %v1728_v23 = vor.u32 1.1754944e-38, %v1727_v40  ;;  %v586_v26 = vpop.f32.mrf.mxu0 }
 0x1b1   : > { %5393 = vrcp.f32 %v6756_v59  ;;  %v2104_v54 = vadd.f32 1.1283791, %v2103_v10  ;;  %v6778_v25 = vadd.f32 1.0, %v1194_v24  ;;  %v1738_v39 = vadd.f32 0.0036580483, %v1737_v37 }
 0x1b2   : > { %v1720_v31 = vadd.f32 %v5392_v52, %v1719_v0  ;;  %v1184_v8 = vadd.f32 1.1283791, %v1183_v19  ;;  %v1748_v21 = vmul.f32 %v1747_v15, %v6741_v20  ;;  %v2133_v5 = vmul.f32 %v6763_v45, %v6763_v45 }
 0x1b3   : > { %v6784_v1 = vadd.f32 %v6637_v22, %v675_v57  ;;  %v2125_v53 = vand.u32 2147483647, %v6756_v59  ;;  %v2127_v62 = vand.u32 2147483648, %v6756_v59  ;;  %5395 = vrcp.f32 %v6778_v25 }
 0x1b4   : > { %v1724_v14 = vsel %vm6769_vm5, %v5392_v52, %v1720_v31  ;;  %v763_v49 = vmul.f32 0.5, %v6585_v50  ;;  %v1739_v6 = vmul.f32 %v1738_v39, %v6741_v20  ;;  %v1749_v47 = vadd.f32 0.014752088, %v1748_v21 }
 0x1b5   : > { %v1729_v34 = vsel %vm6773_vm6, %v1728_v23, %v1724_v14  ;;  %v2105_v46 = vmul.f32 %v2104_v54, %v6660_v35  ;;  %vm2121_vm7 = vweird.f32 %v6756_v59  ;;  %v6797_v38 = vmin.f32 %v2133_v5, 16.0 }
 0x1b6   : > { %v1730_v9 = vmul.f32 %v1729_v34, %v1705_v29  ;;  %v6800_v58 = vmul.f32 %v1184_v8, %v6665_v2  ;;  %v1740_v55 = vadd.f32 0.05243302, %v1739_v6  ;;  %v1750_v50 = vmul.f32 %v1749_v47, %v6741_v20 }
 0x1b7   : > { %v5394_v18 = vpop.eup %5393  ;;  %v6804_v61 = vmul.f32 0.70710677, %v6784_v1  ;;  %vm6807_vm9 = vcmp.eq.f32.partialorder %v2125_v53, 8.507059e+37  ;;  %v2128_v35 = vor.u32 1.1754944e-38, %v2127_v62  ;;  %v2135_v7 = vmul.f32 2.1237322e-06, %v6797_v38 }
 0x1b8   : > { %v5219_v11 = vclamps-f32 %v1730_v9, 1.0  ;;  %v2117_v57 = vmul.f32 %v5394_v18, %v6756_v59  ;;  %vm1201_vm10 = vweird.f32 %v6778_v25  ;;  %v1741_v2 = vmul.f32 %v1740_v55, %v6741_v20 }
 0x1b9   : > { %v1751_v32 = vadd.f32 0.112945676, %v1750_v50  ;;  %v2146_v27 = vmul.f32 3.8918573e-05, %v6797_v38  ;;  %v1213_v52 = vmul.f32 %v6804_v61, %v6804_v61  ;;  %v5396_v56 = vpop.eup %5395  ;;  %v1207_v13 = vand.u32 2147483648, %v6778_v25 }
 0x1ba   : > { %v2275_v42 = vadd.f32 1.0, %v5219_v11  ;;  %v2118_v60 = vsub.f32 1.0, %v2117_v57  ;;  %v2136_v63 = vadd.f32 0.00028619796, %v2135_v7  ;;  %vm2122_vm11 = vweird.f32 %v5394_v18 }
 0x1bb   : > { %v1197_v40 = vmul.f32 %v5396_v56, %v6778_v25  ;;  %v1205_v30 = vand.u32 2147483647, %v6778_v25  ;;  %v1752_v33 = vmul.f32 %v1751_v32, %v6741_v20  ;;  %v2147_v10 = vadd.f32 0.001143296, %v2146_v27  ;;  %vm2123_vm12 = vmor %vm2121_vm7, %vm2122_vm11  ;;  %v589_v32 = vpop.f32.mrf.mxu0 }
 0x1bc   : > { %v2311_v48 = vmul.f32 %v2275_v42, %v763_v49  ;;  %v2119_v36 = vmul.f32 %v5394_v18, %v2118_v60  ;;  %v2137_v16 = vmul.f32 %v2136_v63, %v6797_v38  ;;  %v1742_v24 = vadd.f32 0.18741608, %v1741_v2 }
 0x1bd   : > { %v1198_v19 = vsub.f32 1.0, %v1197_v40  ;;  %v1753_v37 = vadd.f32 0.4994258, %v1752_v33  ;;  %v6822_v0 = vmin.f32 %v1213_v52, 16.0  ;;  %v1208_v29 = vor.u32 1.1754944e-38, %v1207_v13 }
 0x1be   : > { %2492 = vst.msk [vmem:[#allocation2 + $0x109] sm:$0xff] %vm2469_vm8, %v2311_v48  ;;  %v2120_v15 = vadd.f32 %v5394_v18, %v2119_v36  ;;  %v2138_v41 = vadd.f32 0.0036580483, %v2137_v16  ;;  %v2148_v44 = vmul.f32 %v2147_v10, %v6797_v38  ;;  %vm1202_vm13 = vweird.f32 %v5396_v56 }
 0x1bf   : > { %v1199_v23 = vmul.f32 %v5396_v56, %v1198_v19  ;;  %v1754_v31 = vmul.f32 %v1753_v37, %v6741_v20  ;;  %v1215_v54 = vmul.f32 2.1237322e-06, %v6822_v0  ;;  %v676_v5 = vmul.f32 %v6682_v51, %v586_v26  ;;  %vm1203_vm14 = vmor %vm1201_vm10, %vm1202_vm13 }
 0x1c0   : > { %v2124_v39 = vsel %vm2123_vm12, %v5394_v18, %v2120_v15  ;;  %v2139_v8 = vmul.f32 %v2138_v41, %v6797_v38  ;;  %v2149_v21 = vadd.f32 0.014752088, %v2148_v44  ;;  %v1743_v62 = vmul.f32 %v1742_v24, %v6741_v20 }
 0x1c1   : > { %v2129_v14 = vsel %vm6807_vm9, %v2128_v35, %v2124_v39  ;;  %v1200_v53 = vadd.f32 %v5396_v56, %v1199_v23  ;;  %v1755_v59 = vadd.f32 1.0, %v1754_v31  ;;  %v1216_v6 = vadd.f32 0.00028619796, %v1215_v54 }
 0x1c2   : > { %v2130_v49 = vmul.f32 %v2129_v14, %v2105_v46  ;;  %v2150_v34 = vmul.f32 %v2149_v21, %v6797_v38  ;;  %v1226_v47 = vmul.f32 3.8918573e-05, %v6822_v0  ;;  %vm1206_vm15 = vcmp.eq.f32.partialorder %v1205_v30, 8.507059e+37 }
 0x1c3   : > { %v1204_v9 = vsel %vm1203_vm14, %v5396_v56, %v1200_v53  ;;  %5397 = vrcp.f32 %v1755_v59  ;;  %v2140_v18 = vadd.f32 0.05243302, %v2139_v8  ;;  %v6841_v11 = vadd.f32 %v6637_v22, %v676_v5 }
 0x1c4   : > { %v5229_v55 = vclamps-f32 %v2130_v49, 1.0  ;;  %v1209_v50 = vsel %vm1206_vm15, %v1208_v29, %v1204_v9  ;;  %v773_v20 = vmul.f32 0.5, %v6640_v28  ;;  %v2151_v25 = vadd.f32 0.112945676, %v2150_v34 }
 0x1c5   : > { %v1210_v46 = vmul.f32 %v1209_v50, %v6800_v58  ;;  %v1217_v57 = vmul.f32 %v1216_v6, %v6822_v0  ;;  %v750_v35 = vmul.f32 0.5, %v6646_v4  ;;  %v1744_v7 = vadd.f32 1.1283791, %v1743_v62 }
 0x1c6   : > { %v2285_v3 = vadd.f32 1.0, %v5229_v55  ;;  %v1227_v2 = vadd.f32 0.001143296, %v1226_v47  ;;  %v2141_v52 = vmul.f32 %v2140_v18, %v6797_v38  ;;  %v2152_v56 = vmul.f32 %v2151_v25, %v6797_v38  ;;  %v592_v47 = vpop.f32.mrf.mxu0 }
 0x1c7   : > { %v5206_v27 = vclamps-f32 %v1210_v46, 1.0  ;;  %v1218_v42 = vadd.f32 0.0036580483, %v1217_v57  ;;  %vm1761_vm2 = vweird.f32 %v1755_v59  ;;  %v6851_v58 = vmul.f32 0.70710677, %v6841_v11 }
 0x1c8   : > { %v2321_v60 = vmul.f32 %v2285_v3, %v773_v20  ;;  %v1228_v28 = vmul.f32 %v1227_v2, %v6822_v0  ;;  %v1765_v40 = vand.u32 2147483647, %v1755_v59  ;;  %v2153_v4 = vadd.f32 0.4994258, %v2152_v56 }
 0x1c9   : > { %v5398_v13 = vpop.eup %5397  ;;  %v2262_v63 = vadd.f32 1.0, %v5206_v27  ;;  %v677_v30 = vmul.f32 %v6682_v51, %v589_v32  ;;  %v1767_v48 = vand.u32 2147483648, %v1755_v59  ;;  %v1219_v36 = vmul.f32 %v1218_v42, %v6822_v0 }
 0x1ca   : > { %2502 = vst.msk [vmem:[#allocation2 + $0x181] sm:$0xff] %vm2469_vm8, %v2321_v60  ;;  %v1757_v33 = vmul.f32 %v5398_v13, %v1755_v59  ;;  %v1229_v16 = vadd.f32 0.014752088, %v1228_v28  ;;  %v2142_v26 = vadd.f32 0.18741608, %v2141_v52  ;;  %v2154_v19 = vmul.f32 %v2153_v4, %v6797_v38 }
 0x1cb   : > { %v2298_v10 = vmul.f32 %v2262_v63, %v750_v35  ;;  %v1253_v24 = vmul.f32 %v6851_v58, %v6851_v58  ;;  %vm1762_vm3 = vweird.f32 %v5398_v13  ;;  %v6861_v29 = vadd.f32 %v6637_v22, %v677_v30 }
 0x1cc   : > { %v1758_v37 = vsub.f32 1.0, %v1757_v33  ;;  %v1230_v15 = vmul.f32 %v1229_v16, %v6822_v0  ;;  %v6864_v41 = vadd.f32 1.0, %v2154_v19  ;;  %v1220_v31 = vadd.f32 0.05243302, %v1219_v36  ;;  %vm6873_vm4 = vmor %vm1761_vm2, %vm1762_vm3 }
 0x1cd   : > { %2479 = vst.msk [vmem:[#allocation2 + $0x69] sm:$0xff] %vm2469_vm8, %v2298_v10  ;;  %v6866_v44 = vmin.f32 %v1253_v24, 16.0  ;;  %v6869_v39 = vmul.f32 0.70710677, %v6861_v29  ;;  %v1745_v8 = vmul.f32 %v1744_v7, %v6719_v17  ;;  %v1768_v5 = vor.u32 1.1754944e-38, %v1767_v48 }
 0x1ce   : > { %v1759_v23 = vmul.f32 %v5398_v13, %v1758_v37  ;;  %v1231_v54 = vadd.f32 0.112945676, %v1230_v15  ;;  %v2143_v14 = vmul.f32 %v2142_v26, %v6797_v38  ;;  %5399 = vrcp.f32 %v6864_v41 }
 0x1cf   : > { %vm1766_vm5 = vcmp.eq.f32.partialorder %v1765_v40, 8.507059e+37  ;;  %v1255_v49 = vmul.f32 2.1237322e-06, %v6866_v44  ;;  %v764_v34 = vmul.f32 0.5, %v6703_v12  ;;  %v6883_v17 = vmul.f32 0.5, %v6751_v43 }
 0x1d0   : > { %v1760_v53 = vadd.f32 %v5398_v13, %v1759_v23  ;;  %v1232_v62 = vmul.f32 %v1231_v54, %v6822_v0  ;;  %v1266_v59 = vmul.f32 3.8918573e-05, %v6866_v44  ;;  %v1293_v6 = vmul.f32 %v6869_v39, %v6869_v39 }
 0x1d1   : > { %v1221_v9 = vmul.f32 %v1220_v31, %v6822_v0  ;;  %v1256_v55 = vadd.f32 0.00028619796, %v1255_v49  ;;  %v2144_v20 = vadd.f32 1.1283791, %v2143_v14  ;;  %v678_v3 = vmul.f32 %v6682_v51, %v592_v47 }
 0x1d2   : > { %v1764_v38 = vsel %vm6873_vm4, %v5398_v13, %v1760_v53  ;;  %v1233_v18 = vadd.f32 0.4994258, %v1232_v62  ;;  %v1267_v46 = vadd.f32 0.001143296, %v1266_v59  ;;  %v6891_v12 = vmin.f32 %v1293_v6, 16.0  ;;  %v2559_v59 = vld [vmem:[#allocation2 + $0xb0] sm:$0xff] }
 0x1d3   : > { %v1769_v50 = vsel %vm1766_vm5, %v1768_v5, %v1764_v38  ;;  %v1257_v57 = vmul.f32 %v1256_v55, %v6866_v44  ;;  %vm2161_vm6 = vweird.f32 %v6864_v41  ;;  %v2167_v56 = vand.u32 2147483648, %v6864_v41  ;;  %v6941_v6 = vld [vmem:[%s9316_s4] ss:$0 sm:$0xff]  ;;  %v2657_v55 = vld [vmem:[#allocation2 + $0xb1] sm:$0xff] }
 0x1d4   : > { %v1770_v43 = vmul.f32 %v1769_v50, %v1745_v8  ;;  %v1234_v25 = vmul.f32 %v1233_v18, %v6822_v0  ;;  %v5400_v35 = vpop.eup %5399  ;;  %v1268_v7 = vmul.f32 %v1267_v46, %v6866_v44  ;;  %v1295_v2 = vmul.f32 2.1237322e-06, %v6891_v12 }
 0x1d5   : > { %v1306_v32 = vmul.f32 3.8918573e-05, %v6891_v12  ;;  %v2157_v52 = vmul.f32 %v5400_v35, %v6864_v41  ;;  %v1222_v42 = vadd.f32 0.18741608, %v1221_v9  ;;  %v1258_v28 = vadd.f32 0.0036580483, %v1257_v57 }
 0x1d6   : > { %v5220_v27 = vclamps-f32 %v1770_v43, 1.0  ;;  %v6902_v60 = vadd.f32 1.0, %v1234_v25  ;;  %v1269_v13 = vadd.f32 0.014752088, %v1268_v7  ;;  %v1296_v40 = vadd.f32 0.00028619796, %v1295_v2 }
 0x1d7   : > { %v2158_v63 = vsub.f32 1.0, %v2157_v52  ;;  %v1307_v4 = vadd.f32 0.001143296, %v1306_v32  ;;  %vm2162_vm7 = vweird.f32 %v5400_v35  ;;  %v2165_v30 = vand.u32 2147483647, %v6864_v41 }
 0x1d8   : > { %v2276_v51 = vadd.f32 1.0, %v5220_v27  ;;  %5401 = vrcp.f32 %v6902_v60  ;;  %v6907_v33 = vadd.f32 %v6637_v22, %v678_v3  ;;  %v5550_v48 = vmov 0.0   ;;  %vm2163_vm10 = vmor %vm2161_vm6, %vm2162_vm7  ;;  %v6959_v27 = vld [vmem:[%s9316_s4 + $0x1] ss:$0 sm:$0xff] }
 0x1d9   : > { %2470 = vst.msk [vmem:[#allocation2 + $0x1] sm:$0xff] %vm2469_vm8, %v5550_v48  ;;  %v2159_v16 = vmul.f32 %v5400_v35, %v2158_v63  ;;  %v1259_v10 = vmul.f32 %v1258_v28, %v6866_v44  ;;  %v1270_v26 = vmul.f32 %v1269_v13, %v6866_v44  ;;  %v2168_v19 = vor.u32 1.1754944e-38, %v2167_v56 }
 0x1da   : > { %v2312_v36 = vmul.f32 %v2276_v51, %v764_v34  ;;  %2471 = vst.msk [vmem:[#allocation2 + $0x9] sm:$0xff] %vm2469_vm8, %v5550_v48  ;;  %v1223_v24 = vmul.f32 %v1222_v42, %v6822_v0  ;;  %v1297_v37 = vmul.f32 %v1296_v40, %v6891_v12  ;;  %v1308_v22 = vmul.f32 %v1307_v4, %v6891_v12 }
 0x1db   : > { %2504 = vst.msk [vmem:[#allocation2 + $0x199] sm:$0xff] %vm2469_vm8, %v5550_v48  ;;  %v2160_v15 = vadd.f32 %v5400_v35, %v2159_v16  ;;  %v1260_v23 = vadd.f32 0.05243302, %v1259_v10  ;;  %v1271_v31 = vadd.f32 0.112945676, %v1270_v26  ;;  %vm2506_vm9 = vcmask 253952  }
 0x1dc   : > { %2493 = vst.msk [vmem:[#allocation2 + $0x111] sm:$0xff] %vm2469_vm8, %v2312_v36  ;;  %v2145_v54 = vmul.f32 %v2144_v20, %v6763_v45  ;;  %v1298_v0 = vadd.f32 0.0036580483, %v1297_v37  ;;  %v1309_v8 = vadd.f32 0.014752088, %v1308_v22  ;;  %vm2166_vm11 = vcmp.eq.f32.partialorder %v2165_v30, 8.507059e+37 }
 0x1dd   : > { %v6926_v21 = vmul.f32 0.70710677, %v6907_v33  ;;  %v2164_v5 = vsel %vm2163_vm10, %v5400_v35, %v2160_v15  ;;  %v1261_v14 = vmul.f32 %v1260_v23, %v6866_v44  ;;  %v1272_v53 = vmul.f32 %v1271_v31, %v6866_v44  ;;  %2532 = vst.msk [vmem:[#allocation2 + $0xb9] sm:$0x1] %vm2506_vm9, %v5550_v48 }
 0x1de   : > { %v5402_v62 = vpop.eup %5401  ;;  %v2169_v45 = vsel %vm2166_vm11, %v2168_v19, %v2164_v5  ;;  %v1299_v49 = vmul.f32 %v1298_v0, %v6891_v12  ;;  %v1310_v41 = vmul.f32 %v1309_v8, %v6891_v12  ;;  %2533 = vst.msk [vmem:[#allocation2 + $0xd1] sm:$0x1] %vm2506_vm9, %v5550_v48  ;;  %v1224_v38 = vadd.f32 1.1283791, %v1223_v24  ;;  %v2854_v19 = vld [vmem:[#allocation2 + $0xc8] sm:$0xff] }
 0x1df   : > { %v1333_v34 = vmul.f32 %v6926_v21, %v6926_v21  ;;  %v2170_v47 = vmul.f32 %v2169_v45, %v2145_v54  ;;  %v1237_v9 = vmul.f32 %v5402_v62, %v6902_v60  ;;  %v1245_v18 = vand.u32 2147483647, %v6902_v60  ;;  %2534 = vst.msk [vmem:[#allocation2 + $0xe9] sm:$0x1] %vm2506_vm9, %v5550_v48  ;;  %v6990_v24 = vld [vmem:[%s9316_s4 + $0x3] ss:$0 sm:$0xff] }
 0x1e0   : > { %vm1241_vm12 = vweird.f32 %v6902_v60  ;;  %v1273_v50 = vadd.f32 0.4994258, %v1272_v53  ;;  %v1300_v20 = vadd.f32 0.05243302, %v1299_v49  ;;  %v1311_v46 = vadd.f32 0.112945676, %v1310_v41 }
 0x1e1   : > { %v5230_v43 = vclamps-f32 %v2170_v47, 1.0  ;;  %v1238_v25 = vsub.f32 1.0, %v1237_v9  ;;  %v1262_v57 = vadd.f32 0.18741608, %v1261_v14  ;;  %v6948_v3 = vmin.f32 %v1333_v34, 16.0  ;;  %2505 = vst.msk [vmem:[#allocation2 + $0x1a1] sm:$0xff] %vm2469_vm8, %v5550_v48 }
 0x1e2   : > { %v1247_v35 = vand.u32 2147483648, %v6902_v60  ;;  %v1274_v7 = vmul.f32 %v1273_v50, %v6866_v44  ;;  %v1312_v2 = vmul.f32 %v1311_v46, %v6891_v12  ;;  %v2592_v32 = vmul.f32 %v6941_v6, %v2559_v59  ;;  %2507 = vst.msk [vmem:[#allocation2] sm:$0x1] %vm2506_vm9, %v5550_v48  ;;  %v2952_v8 = vld [vmem:[#allocation2 + $0xc9] sm:$0xff]  ;;  %v7000_v5 = vld [vmem:[%s9316_s4 + $0x4] ss:$0 sm:$0xff] }
 0x1e3   : > { %v2286_v52 = vadd.f32 1.0, %v5230_v43  ;;  %v1239_v56 = vmul.f32 %v5402_v62, %v1238_v25  ;;  %vm1242_vm13 = vweird.f32 %v5402_v62  ;;  %v1335_v42 = vmul.f32 2.1237322e-06, %v6948_v3  ;;  %2508 = vst.msk [vmem:[#allocation2 + $0x18] sm:$0x1] %vm2506_vm9, %v5550_v48 }
 0x1e4   : > { %v6964_v28 = vadd.f32 1.0, %v1274_v7  ;;  %v1301_v13 = vmul.f32 %v1300_v20, %v6891_v12  ;;  %v1313_v51 = vadd.f32 0.4994258, %v1312_v2  ;;  %v2690_v63 = vmul.f32 %v6959_v27, %v2657_v55  ;;  %vm1243_vm14 = vmor %vm1241_vm12, %vm1242_vm13  ;;  %2509 = vst.msk [vmem:[#allocation2 + $0x30] sm:$0x1] %vm2506_vm9, %v5550_v48  ;;  %v2755_v60 = vld [vmem:[#allocation2 + $0xb2] sm:$0xff] }
 0x1e5   : > { %v2322_v40 = vmul.f32 %v2286_v52, %v6883_v17  ;;  %v1240_v4 = vadd.f32 %v5402_v62, %v1239_v56  ;;  %v1263_v30 = vmul.f32 %v1262_v57, %v6866_v44  ;;  %v1336_v36 = vadd.f32 0.00028619796, %v1335_v42  ;;  %v6980_v17 = vld [vmem:[%s9316_s4 + $0x2] ss:$0 sm:$0xff]  ;;  %2510 = vst.msk [vmem:[#allocation2 + $0x48] sm:$0x1] %vm2506_vm9, %v5550_v48 }
 0x1e6   : > { %v751_v16 = vmul.f32 0.5, %v6784_v1  ;;  %v1225_v10 = vmul.f32 %v1224_v38, %v6804_v61  ;;  %v1248_v26 = vor.u32 1.1754944e-38, %v1247_v35  ;;  %5403 = vrcp.f32 %v6964_v28  ;;  %2511 = vst.msk [vmem:[#allocation2 + $0x60] sm:$0x1] %vm2506_vm9, %v5550_v48  ;;  %v3050_v46 = vld [vmem:[#allocation2 + $0xca] sm:$0xff]  ;;  %v3149_v57 = vld [vmem:[#allocation2 + $0xe0] sm:$0xff] }
 0x1e7   : > { %2503 = vst.msk [vmem:[#allocation2 + $0x189] sm:$0xff] %vm2469_vm8, %v2322_v40  ;;  %v1244_v44 = vsel %vm1243_vm14, %v5402_v62, %v1240_v4  ;;  %vm1246_vm15 = vcmp.eq.f32.partialorder %v1245_v18, 8.507059e+37  ;;  %v1314_v1 = vmul.f32 %v1313_v51, %v6891_v12  ;;  %v1337_v61 = vmul.f32 %v1336_v36, %v6948_v3  ;;  %v7034_v25 = vld [vmem:[%s9316_s4 + $0x5] ss:$0 sm:$0xff]  ;;  %v2656_v52 = vld [vmem:[#allocation2 + $0xa9] sm:$0xff] }
 0x1e8   : > { %v1249_v37 = vsel %vm1246_vm15, %v1248_v26, %v1244_v44  ;;  %v1302_v22 = vadd.f32 0.18741608, %v1301_v13  ;;  %v1346_v15 = vmul.f32 3.8918573e-05, %v6948_v3  ;;  %v1264_v31 = vadd.f32 1.1283791, %v1263_v30 }
 0x1e9   : > { %v1250_v23 = vmul.f32 %v1249_v37, %v1225_v10  ;;  %v6995_v54 = vadd.f32 1.0, %v1314_v1  ;;  %v2722_v0 = vadd.f32 %v2690_v63, %v2592_v32  ;;  %v1285_v14 = vand.u32 2147483647, %v6964_v28  ;;  %2512 = vst.msk [vmem:[#allocation2 + $0x78] sm:$0x1] %vm2506_vm9, %v5550_v48  ;;  %v3247_v63 = vld [vmem:[#allocation2 + $0xe1] sm:$0xff] }
 0x1ea   : > { %v1347_v53 = vadd.f32 0.001143296, %v1346_v15  ;;  %v2788_v62 = vmul.f32 %v6980_v17, %v2755_v60  ;;  %v1338_v49 = vadd.f32 0.0036580483, %v1337_v61  ;;  %v2887_v41 = vmul.f32 %v6990_v24, %v2854_v19  ;;  %2513 = vst.msk [vmem:[#allocation2 + $0x90] sm:$0x1] %vm2506_vm9, %v5550_v48 }
 0x1eb   : > { %v5207_v45 = vclamps-f32 %v1250_v23, 1.0  ;;  %5405 = vrcp.f32 %v6995_v54  ;;  %v7013_v59 = vmul.f32 0.5, %v6841_v11  ;;  %v1287_v47 = vand.u32 2147483648, %v6964_v28  ;;  %2514 = vst.msk [vmem:[#allocation2 + $0xa8] sm:$0x1] %vm2506_vm9, %v5550_v48  ;;  %v2754_v10 = vld [vmem:[#allocation2 + $0xaa] sm:$0xff] }
 0x1ec   : > { %v7010_v34 = vpop.eup %5403  ;;  %v1303_v38 = vmul.f32 %v1302_v22, %v6891_v12  ;;  %v1348_v9 = vmul.f32 %v1347_v53, %v6948_v3  ;;  %v2820_v50 = vadd.f32 %v2788_v62, %v2722_v0  ;;  %v2985_v20 = vmul.f32 %v7000_v5, %v2952_v8  ;;  %2515 = vst.msk [vmem:[#allocation2 + $0xc0] sm:$0x1] %vm2506_vm9, %v5550_v48  ;;  %v3345_v0 = vld [vmem:[#allocation2 + $0xe2] sm:$0xff] }
 0x1ed   : > { %v2263_v18 = vadd.f32 1.0, %v5207_v45  ;;  %v1277_v55 = vmul.f32 %v7010_v34, %v6964_v28  ;;  %v1265_v11 = vmul.f32 %v1264_v31, %v6851_v58  ;;  %vm1281_vm2 = vweird.f32 %v6964_v28  ;;  %v7040_v58 = vld [vmem:[%s9316_s4 + $0x6] ss:$0 sm:$0xff]  ;;  %2516 = vst.msk [vmem:[#allocation2 + $0xd8] sm:$0x1] %vm2506_vm9, %v5550_v48 }
 0x1ee   : > { %vm7027_vm3 = vcmp.eq.f32.partialorder %v1285_v14, 8.507059e+37  ;;  %v1349_v43 = vadd.f32 0.014752088, %v1348_v9  ;;  %v1339_v2 = vmul.f32 %v1338_v49, %v6948_v3  ;;  %v2919_v32 = vadd.f32 %v2887_v41, %v2820_v50  ;;  %2517 = vst.msk [vmem:[#allocation2 + $0xf0] sm:$0x1] %vm2506_vm9, %v5550_v48 }
 0x1ef   : > { %v2299_v35 = vmul.f32 %v2263_v18, %v751_v16  ;;  %v1278_v7 = vsub.f32 1.0, %v1277_v55  ;;  %v1288_v56 = vor.u32 1.1754944e-38, %v1287_v47  ;;  %v1304_v42 = vadd.f32 1.1283791, %v1303_v38  ;;  %v7057_v16 = vld [vmem:[%s9316_s4 + $0x7] ss:$0 sm:$0xff] }
 0x1f0   : > { %v1350_v13 = vmul.f32 %v1349_v43, %v6948_v3  ;;  %v3083_v51 = vmul.f32 %v7034_v25, %v3050_v46  ;;  %vm1282_vm4 = vweird.f32 %v7010_v34  ;;  %v3017_v30 = vadd.f32 %v2985_v20, %v2919_v32  ;;  %2518 = vst.msk [vmem:[#allocation2 + $0x108] sm:$0x1] %vm2506_vm9, %v5550_v48  ;;  %v7082_v28 = vld [vmem:[%s9316_s4 + $0x8] ss:$0 sm:$0xff] }
 0x1f1   : > { %v7048_v40 = vpop.eup %5405  ;;  %2480 = vst.msk [vmem:[#allocation2 + $0x79] sm:$0xff] %vm2469_vm8, %v2299_v35  ;;  %v1279_v4 = vmul.f32 %v7010_v34, %v1278_v7  ;;  %v3182_v36 = vmul.f32 %v7040_v58, %v3149_v57  ;;  %v1325_v44 = vand.u32 2147483647, %v6995_v54  ;;  %v2689_v61 = vmul.f32 %v6959_v27, %v2656_v52  ;;  %vm1283_vm5 = vmor %vm1281_vm2, %vm1282_vm4 }
 0x1f2   : > { %v1317_v26 = vmul.f32 %v7048_v40, %v6995_v54  ;;  %v1351_v1 = vadd.f32 0.112945676, %v1350_v13  ;;  %v1340_v19 = vadd.f32 0.05243302, %v1339_v2  ;;  %v3115_v37 = vadd.f32 %v3083_v51, %v3017_v30  ;;  %2519 = vst.msk [vmem:[#allocation2 + $0x120] sm:$0x1] %vm2506_vm9, %v5550_v48 }
 0x1f3   : > { %v1280_v60 = vadd.f32 %v7010_v34, %v1279_v4  ;;  %v3280_v22 = vmul.f32 %v7057_v16, %v3247_v63  ;;  %vm1321_vm6 = vweird.f32 %v6995_v54  ;;  %v1327_v23 = vand.u32 2147483648, %v6995_v54  ;;  %v2558_v8 = vld [vmem:[#allocation2 + $0xa8] sm:$0xff]  ;;  %2520 = vst.msk [vmem:[#allocation2 + $0x138] sm:$0x1] %vm2506_vm9, %v5550_v48  ;;  %v2853_v55 = vld [vmem:[#allocation2 + $0xc0] sm:$0xff] }
 0x1f4   : > { %v1318_v15 = vsub.f32 1.0, %v1317_v26  ;;  %v1352_v31 = vmul.f32 %v1351_v1, %v6948_v3  ;;  %v3214_v53 = vadd.f32 %v3182_v36, %v3115_v37  ;;  %v2591_v62 = vmul.f32 %v6941_v6, %v2558_v8  ;;  %2521 = vst.msk [vmem:[#allocation2 + $0x150] sm:$0x1] %vm2506_vm9, %v5550_v48  ;;  %v7111_v2 = vld [vmem:[%s9317_s5] ss:$0 sm:$0xff]  ;;  %v3049_v63 = vld [vmem:[#allocation2 + $0xc2] sm:$0xff] }
 0x1f5   : > { %v1284_v14 = vsel %vm1283_vm5, %v7010_v34, %v1280_v60  ;;  %v2787_v45 = vmul.f32 %v6980_v17, %v2754_v10  ;;  %vm1322_vm7 = vweird.f32 %v7048_v40  ;;  %v1341_v38 = vmul.f32 %v1340_v19, %v6948_v3  ;;  %2522 = vst.msk [vmem:[#allocation2 + $0x168] sm:$0x1] %vm2506_vm9, %v5550_v48  ;;  %v7124_v13 = vld [vmem:[%s9318_s6] ss:$0 sm:$0xff] }
 0x1f6   : > { %v1289_v49 = vsel %vm7027_vm3, %v1288_v56, %v1284_v14  ;;  %v1319_v41 = vmul.f32 %v7048_v40, %v1318_v15  ;;  %v1353_v34 = vadd.f32 0.4994258, %v1352_v31  ;;  %v3312_v9 = vadd.f32 %v3280_v22, %v3214_v53  ;;  %2523 = vst.msk [vmem:[#allocation2 + $0x180] sm:$0x1] %vm2506_vm9, %v5550_v48  ;;  %vm1323_vm10 = vmor %vm1321_vm6, %vm1322_vm7 }
 0x1f7   : > { %v1290_v47 = vmul.f32 %v1289_v49, %v1265_v11  ;;  %v3378_v18 = vmul.f32 %v7082_v28, %v3345_v0  ;;  %v2721_v46 = vadd.f32 %v2689_v61, %v2591_v62  ;;  %v2886_v12 = vmul.f32 %v6990_v24, %v2853_v55  ;;  %v2951_v11 = vld [vmem:[#allocation2 + $0xc1] sm:$0xff]  ;;  %2524 = vst.msk [vmem:[#allocation2 + $0x198] sm:$0x1] %vm2506_vm9, %v5550_v48 }
 0x1f8   : > { %v1320_v50 = vadd.f32 %v7048_v40, %v1319_v41  ;;  %v1354_v20 = vmul.f32 %v1353_v34, %v6948_v3  ;;  %v1305_v57 = vmul.f32 %v1304_v42, %v6869_v39  ;;  %v1328_v35 = vor.u32 1.1754944e-38, %v1327_v23  ;;  %2525 = vst.msk [vmem:[#allocation2 + $0x11] sm:$0x1] %vm2506_vm9, %v5550_v48 }
 0x1f9   : > { %v5208_v43 = vclamps-f32 %v1290_v47, 1.0  ;;  %v3410_v7 = vadd.f32 %v3378_v18, %v3312_v9  ;;  %vm1326_vm11 = vcmp.eq.f32.partialorder %v1325_v44, 8.507059e+37  ;;  %v2819_v39 = vadd.f32 %v2787_v45, %v2721_v46  ;;  %2526 = vst.msk [vmem:[#allocation2 + $0x29] sm:$0x1] %vm2506_vm9, %v5550_v48 }
 0x1fa   : > { %v1324_v32 = vsel %vm1323_vm10, %v7048_v40, %v1320_v50  ;;  %v7116_v52 = vadd.f32 1.0, %v1354_v20  ;;  %v2984_v51 = vmul.f32 %v7000_v5, %v2951_v11  ;;  %v1342_v4 = vadd.f32 0.18741608, %v1341_v38  ;;  %2527 = vst.msk [vmem:[#allocation2 + $0x41] sm:$0x1] %vm2506_vm9, %v5550_v48  ;;  %v3344_v50 = vld [vmem:[#allocation2 + $0xda] sm:$0xff] }
 0x1fb   : > { %v2264_v54 = vadd.f32 1.0, %v5208_v43  ;;  %v1329_v56 = vsel %vm1326_vm11, %v1328_v35, %v1324_v32  ;;  %v3446_v42 = vmul.f32 %v7111_v2, %v3410_v7  ;;  %v2918_v30 = vadd.f32 %v2886_v12, %v2819_v39  ;;  %2528 = vst.msk [vmem:[#allocation2 + $0x59] sm:$0x1] %vm2506_vm9, %v5550_v48  ;;  %v7179_v43 = vld [vmem:[#allocation2 + $0x140] sm:$0xff]  ;;  %v7187_v32 = vld [vmem:[#allocation2 + $0x138] sm:$0xff] }
 0x1fc   : > { %v1330_v40 = vmul.f32 %v1329_v56, %v1305_v57  ;;  %5407 = vrcp.f32 %v7116_v52  ;;  %2529 = vst.msk [vmem:[#allocation2 + $0x71] sm:$0x1] %vm2506_vm9, %v5550_v48  ;;  %v3082_v44 = vmul.f32 %v7034_v25, %v3049_v63  ;;  %v753_v1 = vmul.f32 0.5, %v6861_v29  ;;  %v3246_v29 = vld [vmem:[#allocation2 + $0xd9] sm:$0xff]  ;;  %v7181_v57 = vld [vmem:[#allocation2 + $0x141] sm:$0xff] }
 0x1fd   : > { %v2300_v36 = vmul.f32 %v2264_v54, %v7013_v59  ;;  %v7134_v10 = vadd.f32 %v7124_v13, %v3446_v42  ;;  %v3148_v59 = vld [vmem:[#allocation2 + $0xd8] sm:$0xff]  ;;  %v1343_v19 = vmul.f32 %v1342_v4, %v6948_v3  ;;  %2530 = vst.msk [vmem:[#allocation2 + $0x89] sm:$0x1] %vm2506_vm9, %v5550_v48  ;;  %v3016_v37 = vadd.f32 %v2984_v51, %v2918_v30 }
 0x1fe   : > { %v5209_v26 = vclamps-f32 %v1330_v40, 1.0  ;;  %v3181_v22 = vmul.f32 %v7040_v58, %v3148_v59  ;;  %2531 = vst.msk [vmem:[#allocation2 + $0xa1] sm:$0x1] %vm2506_vm9, %v5550_v48  ;;  %v3279_v62 = vmul.f32 %v7057_v16, %v3246_v29  ;;  %v1365_v34 = vand.u32 2147483647, %v7116_v52 }
 0x1ff   : > { %2481 = vst.msk [vmem:[#allocation2 + $0x81] sm:$0xff] %vm2469_vm8, %v2300_v36  ;;  %v7144_v61 = vmul.f32 0.70710677, %v7134_v10  ;;  %v3114_v0 = vadd.f32 %v3082_v44, %v3016_v37  ;;  %v1344_v14 = vadd.f32 1.1283791, %v1343_v19  ;;  %v1367_v47 = vand.u32 2147483648, %v7116_v52 }
 0x200   : > { %v2265_v60 = vadd.f32 1.0, %v5209_v26  ;;  %2535 = vst.msk [vmem:[#allocation2 + $0x101] sm:$0x1] %vm2506_vm9, %v5550_v48  ;;  %vm1361_vm13 = vweird.f32 %v7116_v52  ;;  %v3377_v11 = vmul.f32 %v7082_v28, %v3344_v50  ;;  %vm1366_vm15 = vcmp.eq.f32.partialorder %v1365_v34, 8.507059e+37  ;;  %v7198_v36 = vld [vmem:[#allocation2 + $0x158] sm:$0xff] }
 0x201   : > { %v4163_v15 = vmul.f32 %v7144_v61, %v7144_v61  ;;  %2536 = vst.msk [vmem:[#allocation2 + $0x119] sm:$0x1] %vm2506_vm9, %v5550_v48  ;;  %v3213_v53 = vadd.f32 %v3181_v22, %v3114_v0  ;;  %v1345_v35 = vmul.f32 %v1344_v14, %v6926_v21  ;;  %v1368_v7 = vor.u32 1.1754944e-38, %v1367_v47  ;;  %v7193_v21 = vld [vmem:[#allocation2 + $0x150] sm:$0xff]  ;;  %v7200_v26 = vld [vmem:[#allocation2 + $0x159] sm:$0xff] }
 0x202   : > { %v5408_v23 = vpop.eup %5407  ;;  %v2301_v31 = vmul.f32 %v2265_v60, %v753_v1  ;;  %2537 = vst.msk [vmem:[#allocation2 + $0x131] sm:$0x1] %vm2506_vm9, %v5550_v48  ;;  %v7202_v44 = vld [vmem:[#allocation2 + $0x151] sm:$0xff]  ;;  %v2702_v1 = vmul.f32 %v6959_v27, %v7181_v57  ;;  %v2603_v59 = vmul.f32 %v6941_v6, %v7187_v32  ;;  %v7212_v19 = vld [vmem:[#allocation2 + $0x13a] sm:$0xff]  ;;  %v2704_v0 = vmul.f32 %v6959_v27, %v7200_v26 }
 0x203   : > { %v1357_v3 = vmul.f32 %v5408_v23, %v7116_v52  ;;  %v7157_v8 = vmin.f32 %v4163_v15, 16.0  ;;  %vm1362_vm12 = vweird.f32 %v5408_v23  ;;  %2538 = vst.msk [vmem:[#allocation2 + $0x149] sm:$0x1] %vm2506_vm9, %v5550_v48  ;;  %v3311_v55 = vadd.f32 %v3279_v62, %v3213_v53  ;;  %v7189_v52 = vld [vmem:[#allocation2 + $0x139] sm:$0xff] }
 0x204   : > { %2482 = vst.msk [vmem:[#allocation2 + $0x91] sm:$0xff] %vm2469_vm8, %v2301_v31  ;;  %vm1363_vm14 = vmor %vm1361_vm13, %vm1362_vm12  ;;  %v2701_v60 = vmul.f32 %v6959_v27, %v7189_v52  ;;  %v2606_v31 = vmul.f32 %v6941_v6, %v7198_v36  ;;  %v2703_v14 = vmul.f32 %v6959_v27, %v7202_v44  ;;  %v754_v53 = vmul.f32 0.5, %v6907_v33 }
 0x205   : > { %v1358_v45 = vsub.f32 1.0, %v1357_v3  ;;  %v4165_v49 = vmul.f32 2.1237322e-06, %v7157_v8  ;;  %v4176_v41 = vmul.f32 3.8918573e-05, %v7157_v8  ;;  %v3409_v42 = vadd.f32 %v3377_v11, %v3311_v55  ;;  %9396 = vst [vmem:[#allocation3_spill] sm:$0xff] %v7193_v21 }
 0x206   : > { %2539 = vst.msk [vmem:[#allocation2 + $0x161] sm:$0x1] %vm2506_vm9, %v5550_v48  ;;  %v2605_v3 = vmul.f32 %v6941_v6, %v7193_v21  ;;  %v2733_v11 = vadd.f32 %v2701_v60, %v2603_v59 }
 0x207   : > { %v1359_v38 = vmul.f32 %v5408_v23, %v1358_v45  ;;  %v4166_v9 = vadd.f32 0.00028619796, %v4165_v49  ;;  %v4177_v18 = vadd.f32 0.001143296, %v4176_v41  ;;  %2540 = vst.msk [vmem:[#allocation2 + $0x179] sm:$0x1] %vm2506_vm9, %v5550_v48  ;;  %v3445_v30 = vmul.f32 %v7111_v2, %v3409_v42 }
 0x208   : > { %2541 = vst.msk [vmem:[#allocation2 + $0x191] sm:$0x1] %vm2506_vm9, %v5550_v48 }
 0x209   : > { %v1360_v20 = vadd.f32 %v5408_v23, %v1359_v38  ;;  %v4167_v46 = vmul.f32 %v4166_v9, %v7157_v8  ;;  %v4178_v12 = vmul.f32 %v4177_v18, %v7157_v8  ;;  %2542 = vst.msk [vmem:[#allocation2 + $0x1a9] sm:$0x1] %vm2506_vm9, %v5550_v48  ;;  %v2604_v48 = vmul.f32 %v6941_v6, %v7179_v43 }
 0x20a   : > { %9397 = vst [vmem:[#allocation4_spill] sm:$0xff] %v7202_v44  ;;  %v3481_v29 = vadd.f32 %v7124_v13, %v3445_v30  ;;  %v7232_v47 = vld [vmem:[#allocation2 + $0x142] sm:$0xff]  ;;  %v2799_v38 = vmul.f32 %v6980_v17, %v7212_v19 }
 0x20b   : > { %v1364_v39 = vsel %vm1363_vm14, %v5408_v23, %v1360_v20  ;;  %v4168_v54 = vadd.f32 0.0036580483, %v4167_v46  ;;  %v4179_v56 = vadd.f32 0.014752088, %v4178_v12  ;;  %9398 = vst [vmem:[#allocation5_spill] sm:$0xff] %v7212_v19  ;;  %v7215_v23 = vld [vmem:[#allocation2 + $0x152] sm:$0xff]  ;;  %v2734_v33 = vadd.f32 %v2702_v1, %v2604_v48 }
 0x20c   : > { %v1369_v51 = vsel %vm1366_vm15, %v1368_v7, %v1364_v39  ;;  %9399 = vst [vmem:[#allocation6_spill] sm:$0xff] %v7215_v23  ;;  %v7228_v41 = vmul.f32 0.70710677, %v3481_v29  ;;  %v2801_v34 = vmul.f32 %v6980_v17, %v7215_v23  ;;  %v2736_v46 = vadd.f32 %v2704_v0, %v2606_v31  ;;  %v7245_v39 = vld [vmem:[#allocation2 + $0x168] sm:$0xff] }
 0x20d   : > { %v1370_v63 = vmul.f32 %v1369_v51, %v1345_v35  ;;  %v4169_v40 = vmul.f32 %v4168_v54, %v7157_v8  ;;  %v4180_v4 = vmul.f32 %v4179_v56, %v7157_v8  ;;  %v7236_v50 = vld [vmem:[#allocation2 + $0x15a] sm:$0xff]  ;;  %v2735_v12 = vadd.f32 %v2703_v14, %v2605_v3  ;;  %v7253_v51 = vld [vmem:[#allocation2 + $0x169] sm:$0xff] }
 0x20e   : > { %v4123_v20 = vmul.f32 %v7228_v41, %v7228_v41  ;;  %v7242_v35 = vmul.f32 0.5, %v7134_v10  ;;  %v2800_v54 = vmul.f32 %v6980_v17, %v7232_v47  ;;  %v2899_v56 = vmul.f32 %v6990_v24, %v7198_v36  ;;  %v7271_v0 = vld [vmem:[#allocation2 + $0x129] sm:$0xff] }
 0x20f   : > { %v5210_v37 = vclamps-f32 %v1370_v63, 1.0  ;;  %v4170_v22 = vadd.f32 0.05243302, %v4169_v40  ;;  %v4181_v15 = vadd.f32 0.112945676, %v4180_v4  ;;  %v2802_v63 = vmul.f32 %v6980_v17, %v7236_v50  ;;  %9400 = vst [vmem:[#allocation7_spill] sm:$0xff] %v7271_v0 }
 0x210   : > { %v7251_v42 = vmin.f32 %v4123_v20, 16.0  ;;  %v2833_v40 = vadd.f32 %v2801_v34, %v2735_v12  ;;  %v2831_v10 = vadd.f32 %v2799_v38, %v2733_v11  ;;  %v7260_v48 = vmul.f32 0.5, %v3481_v29  ;;  %v2673_v12 = vld [vmem:[#allocation2 + $0x171] sm:$0xff] }
 0x211   : > { %v2266_v62 = vadd.f32 1.0, %v5210_v37  ;;  %v4171_v45 = vmul.f32 %v4170_v22, %v7157_v8  ;;  %v4182_v49 = vmul.f32 %v4181_v15, %v7157_v8  ;;  %v2832_v1 = vadd.f32 %v2800_v54, %v2734_v33  ;;  %v2569_v15 = vld [vmem:[#allocation2 + $0x128] sm:$0xff] }
 0x212   : > { %v4125_v59 = vmul.f32 2.1237322e-06, %v7251_v42  ;;  %v4136_v60 = vmul.f32 3.8918573e-05, %v7251_v42  ;;  %v2834_v37 = vadd.f32 %v2802_v63, %v2736_v46  ;;  %v2900_v22 = vmul.f32 %v6990_v24, %v7245_v39  ;;  %v2575_v46 = vld [vmem:[#allocation2 + $0x170] sm:$0xff] }
 0x213   : > { %v2302_v9 = vmul.f32 %v2266_v62, %v754_v53  ;;  %v4172_v18 = vadd.f32 0.18741608, %v4171_v45  ;;  %v4183_v55 = vadd.f32 0.4994258, %v4182_v49  ;;  %v2607_v31 = vmul.f32 %v6941_v6, %v7245_v39 }
 0x214   : > { %v2931_v29 = vadd.f32 %v2899_v56, %v2832_v1  ;;  %v4126_v3 = vadd.f32 0.00028619796, %v4125_v59  ;;  %v4137_v14 = vadd.f32 0.001143296, %v4136_v60  ;;  %v2997_v53 = vmul.f32 %v7000_v5, %v7200_v26 }
 0x215   : > { %2483 = vst.msk [vmem:[#allocation2 + $0x99] sm:$0xff] %vm2469_vm8, %v2302_v9  ;;  %v4184_v7 = vmul.f32 %v4183_v55, %v7157_v8  ;;  %v4173_v4 = vmul.f32 %v4172_v18, %v7157_v8  ;;  %v2705_v8 = vmul.f32 %v6959_v27, %v7253_v51  ;;  %v3095_v62 = vmul.f32 %v7034_v25, %v7236_v50 }
 0x216   : > { %v2898_v49 = vmul.f32 %v6990_v24, %v7193_v21  ;;  %v7281_v34 = vmul.f32 %v7000_v5, %v7202_v44  ;;  %v7284_v38 = vmul.f32 %v6941_v6, %v2569_v15  ;;  %v4127_v9 = vmul.f32 %v4126_v3, %v7251_v42  ;;  %v7304_v3 = vld [vmem:[#allocation2 + $0x16a] sm:$0xff] }
 0x217   : > { %v7258_v30 = vadd.f32 1.0, %v4184_v7  ;;  %v4174_v45 = vadd.f32 1.1283791, %v4173_v4  ;;  %v4138_v18 = vmul.f32 %v4137_v14, %v7251_v42  ;;  %v2932_v55 = vadd.f32 %v2900_v22, %v2833_v40 }
 0x218   : > { %v7290_v33 = vmul.f32 %v6959_v27, %v7271_v0  ;;  %v2737_v11 = vadd.f32 %v2705_v8, %v2607_v31  ;;  %v2998_v7 = vmul.f32 %v7000_v5, %v7253_v51  ;;  %v3029_v54 = vadd.f32 %v2997_v53, %v2931_v29  ;;  %v2771_v29 = vld [vmem:[#allocation2 + $0x172] sm:$0xff] }
 0x219   : > { %5409 = vrcp.f32 %v7258_v30  ;;  %v4195_v20 = vand.u32 2147483647, %v7258_v30  ;;  %v4128_v56 = vadd.f32 0.0036580483, %v4127_v9  ;;  %v4139_v63 = vadd.f32 0.014752088, %v4138_v18 }
 0x21a   : > { %v2608_v4 = vmul.f32 %v6941_v6, %v2575_v46  ;;  %v2706_v1 = vmul.f32 %v6959_v27, %v2673_v12  ;;  %v4175_v59 = vmul.f32 %v4174_v45, %v7144_v61  ;;  %vm4191_vm9 = vweird.f32 %v7258_v30 }
 0x21b   : > { %v4197_v60 = vand.u32 2147483648, %v7258_v30  ;;  %v2901_v22 = vmul.f32 %v6990_v24, %v2575_v46  ;;  %v4129_v31 = vmul.f32 %v4128_v56, %v7251_v42  ;;  %v4140_v8 = vmul.f32 %v4139_v63, %v7251_v42 }
 0x21c   : > { %v3030_v6 = vadd.f32 %v2998_v7, %v2932_v55  ;;  %vm7306_vm2 = vcmp.eq.f32.partialorder %v4195_v20, 8.507059e+37  ;;  %v2738_v61 = vadd.f32 %v2706_v1, %v2608_v4  ;;  %v3127_v14 = vadd.f32 %v3095_v62, %v3029_v54  ;;  %v2870_v4 = vld [vmem:[#allocation2 + $0x188] sm:$0xff] }
 0x21d   : > { %v7310_v53 = vadd.f32 %v2898_v49, %v2831_v10  ;;  %v4130_v9 = vadd.f32 0.05243302, %v4129_v31  ;;  %v4141_v18 = vadd.f32 0.112945676, %v4140_v8  ;;  %v2933_v0 = vadd.f32 %v2901_v22, %v2834_v37  ;;  %v2968_v1 = vld [vmem:[#allocation2 + $0x189] sm:$0xff] }
 0x21e   : > { %v2804_v56 = vmul.f32 %v6980_v17, %v2771_v29  ;;  %v2803_v63 = vmul.f32 %v6980_v17, %v7304_v3  ;;  %v3096_v55 = vmul.f32 %v7034_v25, %v7304_v3  ;;  %v7319_v20 = vmul.f32 %v7034_v25, %v7215_v23 }
 0x21f   : > { %v5410_v40 = vpop.eup %5409  ;;  %v4142_v10 = vmul.f32 %v4141_v18, %v7251_v42  ;;  %v2999_v62 = vmul.f32 %v7000_v5, %v2673_v12  ;;  %v4198_v49 = vor.u32 1.1754944e-38, %v4197_v60  ;;  %v4131_v37 = vmul.f32 %v4130_v9, %v7251_v42  ;;  %v2869_v18 = vld [vmem:[#allocation2 + $0x180] sm:$0xff] }
 0x220   : > { %v4187_v15 = vmul.f32 %v5410_v40, %v7258_v30  ;;  %vm4192_vm3 = vweird.f32 %v5410_v40  ;;  %v2836_v54 = vadd.f32 %v2804_v56, %v2738_v61  ;;  %v3194_v22 = vmul.f32 %v7040_v58, %v2575_v46 }
 0x221   : > { %v4143_v31 = vadd.f32 0.4994258, %v4142_v10  ;;  %v2903_v8 = vmul.f32 %v6990_v24, %v2870_v4  ;;  %v3031_v23 = vadd.f32 %v2999_v62, %v2933_v0  ;;  %vm4193_vm4 = vmor %vm4191_vm9, %vm4192_vm3  ;;  %v3097_v44 = vmul.f32 %v7034_v25, %v2771_v29  ;;  %v3165_v10 = vld [vmem:[#allocation2 + $0x1a0] sm:$0xff] }
 0x222   : > { %v4188_v45 = vsub.f32 1.0, %v4187_v15  ;;  %v3128_v60 = vadd.f32 %v3096_v55, %v3030_v6  ;;  %v3292_v9 = vmul.f32 %v7057_v16, %v2673_v12  ;;  %v3001_v46 = vmul.f32 %v7000_v5, %v2968_v1  ;;  %v3263_v62 = vld [vmem:[#allocation2 + $0x1a1] sm:$0xff] }
 0x223   : > { %v4144_v56 = vmul.f32 %v4143_v31, %v7251_v42  ;;  %v2935_v21 = vadd.f32 %v2903_v8, %v2836_v54  ;;  %v4132_v30 = vadd.f32 0.18741608, %v4131_v37  ;;  %v3226_v19 = vadd.f32 %v3194_v22, %v3127_v14 }
 0x224   : > { %v4189_v7 = vmul.f32 %v5410_v40, %v4188_v45  ;;  %v2835_v45 = vadd.f32 %v2803_v63, %v2737_v11  ;;  %v2902_v11 = vmul.f32 %v6990_v24, %v2869_v18  ;;  %v2967_v63 = vld [vmem:[#allocation2 + $0x181] sm:$0xff]  ;;  %v3390_v8 = vmul.f32 %v7082_v28, %v2771_v29 }
 0x225   : > { %v7335_v55 = vadd.f32 1.0, %v4144_v56  ;;  %v3033_v12 = vadd.f32 %v3001_v46, %v2935_v21  ;;  %v3361_v24 = vld [vmem:[#allocation2 + $0x1a2] sm:$0xff]  ;;  %v3000_v14 = vmul.f32 %v7000_v5, %v2967_v63  ;;  %v3196_v29 = vmul.f32 %v7040_v58, %v2870_v4 }
 0x226   : > { %v4190_v15 = vadd.f32 %v5410_v40, %v4189_v7  ;;  %v3066_v7 = vld [vmem:[#allocation2 + $0x18a] sm:$0xff]  ;;  %v2934_v31 = vadd.f32 %v2902_v11, %v2835_v45  ;;  %v3065_v21 = vld [vmem:[#allocation2 + $0x182] sm:$0xff]  ;;  %v3394_v46 = vmul.f32 %v7082_v28, %v3361_v24  ;;  %v3293_v5 = vmul.f32 %v7057_v16, %v2967_v63 }
 0x227   : > { %v3099_v54 = vmul.f32 %v7034_v25, %v3066_v7  ;;  %5411 = vrcp.f32 %v7335_v55  ;;  %v3098_v45 = vmul.f32 %v7034_v25, %v3065_v21  ;;  %v3392_v25 = vmul.f32 %v7082_v28, %v3066_v7 }
 0x228   : > { %v4194_v61 = vsel %vm4193_vm4, %v5410_v40, %v4190_v15  ;;  %v3129_v40 = vadd.f32 %v3097_v44, %v3031_v23  ;;  %v3198_v15 = vmul.f32 %v7040_v58, %v3165_v10  ;;  %v3195_v44 = vmul.f32 %v7040_v58, %v2869_v18  ;;  %v3164_v10 = vld [vmem:[#allocation2 + $0x198] sm:$0xff] }
 0x229   : > { %v4199_v0 = vsel %vm7306_vm2, %v4198_v49, %v4194_v61  ;;  %v3296_v49 = vmul.f32 %v7057_v16, %v3263_v62  ;;  %v3131_v37 = vadd.f32 %v3099_v54, %v3033_v12  ;;  %v3324_v23 = vadd.f32 %v3292_v9, %v3226_v19  ;;  %v3262_v62 = vld [vmem:[#allocation2 + $0x199] sm:$0xff] }
 0x22a   : > { %v4200_v6 = vmul.f32 %v4199_v0, %v4175_v59  ;;  %v4133_v59 = vmul.f32 %v4132_v30, %v7251_v42  ;;  %v3032_v61 = vadd.f32 %v3000_v14, %v2934_v31  ;;  %v3294_v0 = vmul.f32 %v7057_v16, %v2968_v1  ;;  %v3360_v31 = vld [vmem:[#allocation2 + $0x19a] sm:$0xff] }
 0x22b   : > { %v3230_v56 = vadd.f32 %v3198_v15, %v3131_v37  ;;  %v3197_v18 = vmul.f32 %v7040_v58, %v3164_v10  ;;  %v3228_v19 = vadd.f32 %v3196_v29, %v3129_v40  ;;  %v3227_v11 = vadd.f32 %v3195_v44, %v3128_v60 }
 0x22c   : > { %v5248_v27 = vclamps-f32 %v4200_v6, 1.0  ;;  %v3130_v30 = vadd.f32 %v3098_v45, %v3032_v61  ;;  %v3391_v4 = vmul.f32 %v7082_v28, %v3065_v21  ;;  %v3295_v1 = vmul.f32 %v7057_v16, %v3262_v62 }
 0x22d   : > { %v3328_v9 = vadd.f32 %v3296_v49, %v3230_v56  ;;  %v5412_v6 = vpop.eup %5411  ;;  %v3326_v63 = vadd.f32 %v3294_v0, %v3228_v19  ;;  %v3422_v54 = vadd.f32 %v3390_v8, %v3324_v23  ;;  %v3325_v40 = vadd.f32 %v3293_v5, %v3227_v11 }
 0x22e   : > { %v4858_v22 = vadd.f32 1.0, %v5248_v27  ;;  %v3229_v12 = vadd.f32 %v3197_v18, %v3130_v30  ;;  %v3028_v27 = vadd.f32 %v7281_v34, %v7310_v53  ;;  %v4134_v7 = vadd.f32 1.1283791, %v4133_v59 }
 0x22f   : > { %v3426_v15 = vadd.f32 %v3394_v46, %v3328_v9  ;;  %v3393_v49 = vmul.f32 %v7082_v28, %v3360_v31  ;;  %v3424_v24 = vadd.f32 %v3392_v25, %v3326_v63  ;;  %v4157_v37 = vand.u32 2147483648, %v7335_v55 }
 0x230   : > { %v4890_v42 = vmul.f32 %v4858_v22, %v7242_v35  ;;  %v4147_v35 = vmul.f32 %v5412_v6, %v7335_v55  ;;  %v3327_v60 = vadd.f32 %v3295_v1, %v3229_v12  ;;  %v3423_v44 = vadd.f32 %v3391_v4, %v3325_v40 }
 0x231   : > { %v3462_v21 = vmul.f32 %v7111_v2, %v3426_v15  ;;  %v4155_v8 = vand.u32 2147483647, %v7335_v55  ;;  %v3460_v22 = vmul.f32 %v7111_v2, %v3424_v24  ;;  %v3458_v61 = vmul.f32 %v7111_v2, %v3422_v54 }
 0x232   : > { %5265 = vmatpush.xpose.msk.msrb.mxu1 %vm2469_vm8, %v4890_v42  ;;  %v4148_v14 = vsub.f32 1.0, %v4147_v35  ;;  %v3425_v23 = vadd.f32 %v3393_v49, %v3327_v60  ;;  %vm4152_vm5 = vweird.f32 %v5412_v6  ;;  %v3459_v53 = vmul.f32 %v7111_v2, %v3423_v44 }
 0x233   : > { %v7366_v34 = vadd.f32 %v7124_v13, %v3462_v21  ;;  %v4135_v59 = vmul.f32 %v4134_v7, %v7228_v41  ;;  %vm4151_vm6 = vweird.f32 %v7335_v55  ;;  %v7373_v56 = vadd.f32 %v7124_v13, %v3460_v22 }
 0x234   : > { %v4149_v45 = vmul.f32 %v5412_v6, %v4148_v14  ;;  %v3461_v29 = vmul.f32 %v7111_v2, %v3425_v23  ;;  %v4158_v10 = vor.u32 1.1754944e-38, %v4157_v37  ;;  %v7379_v5 = vadd.f32 %v7124_v13, %v3459_v53  ;;  %vm4153_vm7 = vmor %vm4151_vm6, %vm4152_vm5 }
 0x235   : > { %v7376_v0 = vmul.f32 0.70710677, %v7366_v34  ;;  %v7385_v41 = vmul.f32 0.70710677, %v7373_v56  ;;  %v7388_v55 = vadd.f32 %v7124_v13, %v3458_v61  ;;  %v3193_v30 = vmul.f32 %v7040_v58, %v7245_v39 }
 0x236   : > { %v4150_v46 = vadd.f32 %v5412_v6, %v4149_v45  ;;  %v7382_v42 = vadd.f32 %v7124_v13, %v3461_v29  ;;  %vm4156_vm10 = vcmp.eq.f32.partialorder %v4155_v8, 8.507059e+37  ;;  %v7395_v9 = vmul.f32 0.70710677, %v7379_v5 }
 0x237   : > { %v4803_v19 = vmul.f32 %v7376_v0, %v7376_v0  ;;  %v4723_v11 = vmul.f32 %v7385_v41, %v7385_v41  ;;  %v3126_v4 = vadd.f32 %v7319_v20, %v3028_v27  ;;  %v7409_v39 = vadd.f32 %v7290_v33, %v7284_v38 }
 0x238   : > { %v4154_v18 = vsel %vm4153_vm7, %v5412_v6, %v4150_v46  ;;  %v7398_v25 = vmul.f32 0.70710677, %v7382_v42  ;;  %v4683_v58 = vmul.f32 %v7395_v9, %v7395_v9  ;;  %v7416_v54 = vmul.f32 0.70710677, %v7388_v55 }
 0x239   : > { %v4159_v62 = vsel %vm4156_vm10, %v4158_v10, %v4154_v18  ;;  %v7403_v1 = vmin.f32 %v4803_v19, 16.0  ;;  %v7413_v63 = vmin.f32 %v4723_v11, 16.0  ;;  %v7418_v35 = vadd.f32 %v3193_v30, %v3126_v4 }
 0x23a   : > { %v4160_v12 = vmul.f32 %v4159_v62, %v4135_v59  ;;  %v4763_v6 = vmul.f32 %v7398_v25, %v7398_v25  ;;  %v7424_v40 = vmul.f32 %v7057_v16, %v7253_v51  ;;  %v7430_v7 = vmin.f32 %v4683_v58, 16.0 }
 0x23b   : > { %v4805_v15 = vmul.f32 2.1237322e-06, %v7403_v1  ;;  %v4816_v31 = vmul.f32 3.8918573e-05, %v7403_v1  ;;  %v4725_v33 = vmul.f32 2.1237322e-06, %v7413_v63  ;;  %v7434_v14 = vmul.f32 %v7082_v28, %v7304_v3 }
 0x23c   : > { %v5247_v20 = vclamps-f32 %v4160_v12, 1.0  ;;  %v7426_v38 = vmin.f32 %v4763_v6, 16.0  ;;  %v4736_v27 = vmul.f32 3.8918573e-05, %v7413_v63  ;;  %v7440_v21 = vmul.f32 %v7416_v54, %v7416_v54 }
 0x23d   : > { %v4806_v49 = vadd.f32 0.00028619796, %v4805_v15  ;;  %v4817_v24 = vadd.f32 0.001143296, %v4816_v31  ;;  %v4726_v51 = vadd.f32 0.00028619796, %v4725_v33 }
 0x23e   : > { %v4857_v60 = vadd.f32 1.0, %v5247_v20  ;;  %v4765_v37 = vmul.f32 2.1237322e-06, %v7426_v38  ;;  %v4776_v16 = vmul.f32 3.8918573e-05, %v7426_v38 }
 0x23f   : > { %v4807_v8 = vmul.f32 %v4806_v49, %v7403_v1  ;;  %v4818_v23 = vmul.f32 %v4817_v24, %v7403_v1  ;;  %v4737_v22 = vadd.f32 0.001143296, %v4736_v27  ;;  %v4727_v28 = vmul.f32 %v4726_v51, %v7413_v63 }
 0x240   : > { %v4889_v44 = vmul.f32 %v4857_v60, %v7260_v48  ;;  %v4766_v61 = vadd.f32 0.00028619796, %v4765_v37  ;;  %v4777_v45 = vadd.f32 0.001143296, %v4776_v16  ;;  %v4685_v3 = vmul.f32 2.1237322e-06, %v7430_v7 }
 0x241   : > { %v4808_v53 = vadd.f32 0.0036580483, %v4807_v8  ;;  %v4819_v59 = vadd.f32 0.014752088, %v4818_v23  ;;  %v4738_v29 = vmul.f32 %v4737_v22, %v7413_v63  ;;  %v4696_v46 = vmul.f32 3.8918573e-05, %v7430_v7 }
 0x242   : > { %5266 = vmatpush.xpose.msk.msrb.mxu1 %vm2469_vm8, %v4889_v44  ;;  %v4767_v48 = vmul.f32 %v4766_v61, %v7426_v38  ;;  %v4778_v10 = vmul.f32 %v4777_v45, %v7426_v38  ;;  %v4728_v30 = vadd.f32 0.0036580483, %v4727_v28  ;;  %v4686_v18 = vadd.f32 0.00028619796, %v4685_v3 }
 0x243   : > { %v4809_v19 = vmul.f32 %v4808_v53, %v7403_v1  ;;  %v4820_v62 = vmul.f32 %v4819_v59, %v7403_v1  ;;  %v4739_v11 = vadd.f32 0.014752088, %v4738_v29  ;;  %v4697_v4 = vadd.f32 0.001143296, %v4696_v46 }
 0x244   : > { %v4768_v12 = vadd.f32 0.0036580483, %v4767_v48  ;;  %v4779_v58 = vadd.f32 0.014752088, %v4778_v10  ;;  %v4729_v6 = vmul.f32 %v4728_v30, %v7413_v63  ;;  %v4687_v20 = vmul.f32 %v4686_v18, %v7430_v7 }
 0x245   : > { %v4810_v15 = vadd.f32 0.05243302, %v4809_v19  ;;  %v4821_v31 = vadd.f32 0.112945676, %v4820_v62  ;;  %v4740_v33 = vmul.f32 %v4739_v11, %v7413_v63  ;;  %v4698_v27 = vmul.f32 %v4697_v4, %v7430_v7  ;;  %v7470_v11 = vld [vmem:[#allocation2 + $0x12a] sm:$0xff] }
 0x246   : > { %v4769_v60 = vmul.f32 %v4768_v12, %v7426_v38  ;;  %v4780_v49 = vmul.f32 %v4779_v58, %v7426_v38  ;;  %v4730_v24 = vadd.f32 0.05243302, %v4729_v6  ;;  %v4688_v37 = vadd.f32 0.0036580483, %v4687_v20 }
 0x247   : > { %v4811_v16 = vmul.f32 %v4810_v15, %v7403_v1  ;;  %v4822_v51 = vmul.f32 %v4821_v31, %v7403_v1  ;;  %v4741_v44 = vadd.f32 0.112945676, %v4740_v33  ;;  %v4699_v8 = vadd.f32 0.014752088, %v4698_v27 }
 0x248   : > { %v4770_v23 = vadd.f32 0.05243302, %v4769_v60  ;;  %v4781_v22 = vadd.f32 0.112945676, %v4780_v49  ;;  %v4731_v61 = vmul.f32 %v4730_v24, %v7413_v63  ;;  %v4689_v45 = vmul.f32 %v4688_v37, %v7430_v7 }
 0x249   : > { %v4812_v28 = vadd.f32 0.18741608, %v4811_v16  ;;  %v4823_v3 = vadd.f32 0.4994258, %v4822_v51  ;;  %v4742_v53 = vmul.f32 %v4741_v44, %v7413_v63  ;;  %v4700_v59 = vmul.f32 %v4699_v8, %v7430_v7 }
 0x24a   : > { %v4771_v29 = vmul.f32 %v4770_v23, %v7426_v38  ;;  %v4782_v46 = vmul.f32 %v4781_v22, %v7426_v38  ;;  %v4732_v48 = vadd.f32 0.18741608, %v4731_v61  ;;  %v4690_v10 = vadd.f32 0.05243302, %v4689_v45 }
 0x24b   : > { %v4813_v30 = vmul.f32 %v4812_v28, %v7403_v1  ;;  %v4824_v18 = vmul.f32 %v4823_v3, %v7403_v1  ;;  %v4743_v19 = vadd.f32 0.4994258, %v4742_v53  ;;  %v4701_v62 = vadd.f32 0.112945676, %v4700_v59 }
 0x24c   : > { %v4772_v4 = vadd.f32 0.18741608, %v4771_v29  ;;  %v4783_v12 = vadd.f32 0.4994258, %v4782_v46  ;;  %v4691_v58 = vmul.f32 %v4690_v10, %v7430_v7  ;;  %v3323_v6 = vadd.f32 %v7424_v40, %v7418_v35 }
 0x24d   : > { %v7475_v20 = vadd.f32 1.0, %v4824_v18  ;;  %v4733_v15 = vmul.f32 %v4732_v48, %v7413_v63  ;;  %v4744_v31 = vmul.f32 %v4743_v19, %v7413_v63  ;;  %v4702_v33 = vmul.f32 %v4701_v62, %v7430_v7 }
 0x24e   : > { %v7481_v1 = vmul.f32 0.5, %v7366_v34  ;;  %v4784_v27 = vmul.f32 %v4783_v12, %v7426_v38  ;;  %v4692_v60 = vadd.f32 0.18741608, %v4691_v58  ;;  %v2798_v49 = vmul.f32 %v6980_v17, %v7470_v11 }
 0x24f   : > { %v4814_v24 = vadd.f32 1.1283791, %v4813_v30  ;;  %5413 = vrcp.f32 %v7475_v20  ;;  %v4773_v35 = vmul.f32 %v4772_v4, %v7426_v38  ;;  %v3421_v40 = vadd.f32 %v7434_v14, %v3323_v6  ;;  %v7503_v38 = vld [vmem:[%s9316_s4 + $0x3] ss:$0 sm:$0xff] }
 0x250   : > { %v7490_v63 = vmul.f32 0.5, %v7382_v42  ;;  %v7492_v37 = vadd.f32 1.0, %v4784_v27  ;;  %v7495_v34 = vmin.f32 %v7440_v21, 16.0  ;;  %v2830_v16 = vadd.f32 %v2798_v49, %v7409_v39 }
 0x251   : > { %v4734_v51 = vadd.f32 1.1283791, %v4733_v15  ;;  %v7498_v44 = vadd.f32 1.0, %v4744_v31  ;;  %v4703_v17 = vadd.f32 0.4994258, %v4702_v33  ;;  %v2897_v42 = vmul.f32 %v7503_v38, %v7179_v43 }
 0x252   : > { %v4835_v14 = vand.u32 2147483647, %v7475_v20  ;;  %v4837_v8 = vand.u32 2147483648, %v7475_v20  ;;  %5415 = vrcp.f32 %v7492_v37  ;;  %v4693_v39 = vmul.f32 %v4692_v60, %v7430_v7 }
 0x253   : > { %v4815_v21 = vmul.f32 %v4814_v24, %v7376_v0  ;;  %v4774_v23 = vadd.f32 1.1283791, %v4773_v35  ;;  %5417 = vrcp.f32 %v7498_v44  ;;  %v3457_v22 = vmul.f32 %v7111_v2, %v3421_v40 }
 0x254   : > { %vm4831_vm11 = vweird.f32 %v7475_v20  ;;  %v4795_v61 = vand.u32 2147483647, %v7492_v37  ;;  %v4797_v43 = vand.u32 2147483648, %v7492_v37  ;;  %v4704_v45 = vmul.f32 %v4703_v17, %v7430_v7 }
 0x255   : > { %v5414_v28 = vpop.eup %5413  ;;  %v7519_v3 = vmul.f32 %v4734_v51, %v7385_v41  ;;  %v4757_v53 = vand.u32 2147483648, %v7498_v44  ;;  %v4645_v0 = vmul.f32 2.1237322e-06, %v7495_v34  ;;  %v4656_v59 = vmul.f32 3.8918573e-05, %v7495_v34 }
 0x256   : > { %v4827_v2 = vmul.f32 %v5414_v28, %v7475_v20  ;;  %vm7525_vm12 = vcmp.eq.f32.partialorder %v4835_v14, 8.507059e+37  ;;  %v4838_v46 = vor.u32 1.1754944e-38, %v4837_v8  ;;  %v4755_v48 = vand.u32 2147483647, %v7498_v44  ;;  %v7557_v14 = vld [vmem:[%s9316_s4 + $0x4] ss:$0 sm:$0xff] }
 0x257   : > { %v4694_v7 = vadd.f32 1.1283791, %v4693_v39  ;;  %v4775_v10 = vmul.f32 %v4774_v23, %v7398_v25  ;;  %v7531_v41 = vadd.f32 1.0, %v4704_v45  ;;  %v4646_v30 = vadd.f32 0.00028619796, %v4645_v0 }
 0x258   : > { %v4657_v18 = vadd.f32 0.001143296, %v4656_v59  ;;  %v5416_v19 = vpop.eup %5415  ;;  %v4828_v62 = vsub.f32 1.0, %v4827_v2  ;;  %vm4791_vm13 = vweird.f32 %v7492_v37  ;;  %v4798_v4 = vor.u32 1.1754944e-38, %v4797_v43 }
 0x259   : > { %vm4751_vm14 = vweird.f32 %v7498_v44  ;;  %v5418_v12 = vpop.eup %5417  ;;  %vm4832_vm15 = vweird.f32 %v5414_v28  ;;  %v4787_v58 = vmul.f32 %v5416_v19, %v7492_v37  ;;  %vm7536_vm9 = vcmp.eq.f32.partialorder %v4795_v61, 8.507059e+37 }
 0x25a   : > { %v4758_v25 = vor.u32 1.1754944e-38, %v4757_v53  ;;  %5419 = vrcp.f32 %v7531_v41  ;;  %v4829_v15 = vmul.f32 %v5414_v28, %v4828_v62  ;;  %v4747_v31 = vmul.f32 %v5418_v12, %v7498_v44  ;;  %vm4833_vm4 = vmor %vm4831_vm11, %vm4832_vm15 }
 0x25b   : > { %vm7542_vm2 = vcmp.eq.f32.partialorder %v4755_v48, 8.507059e+37  ;;  %v7547_v27 = vmul.f32 %v4694_v7, %v7395_v9  ;;  %v7550_v60 = vadd.f32 %v7124_v13, %v3457_v22  ;;  %v4788_v49 = vsub.f32 1.0, %v4787_v58 }
 0x25c   : > { %v4647_v24 = vmul.f32 %v4646_v30, %v7495_v34  ;;  %v4658_v35 = vmul.f32 %v4657_v18, %v7495_v34  ;;  %v2929_v40 = vadd.f32 %v2897_v42, %v2830_v16  ;;  %v4830_v51 = vadd.f32 %v5414_v28, %v4829_v15 }
 0x25d   : > { %vm4792_vm3 = vweird.f32 %v5416_v19  ;;  %v4748_v17 = vsub.f32 1.0, %v4747_v31  ;;  %v2995_v9 = vmul.f32 %v7557_v14, %v7181_v57  ;;  %v4789_v13 = vmul.f32 %v5416_v19, %v4788_v49 }
 0x25e   : > { %vm4752_vm5 = vweird.f32 %v5418_v12  ;;  %v4648_v8 = vadd.f32 0.0036580483, %v4647_v24  ;;  %v4659_v39 = vadd.f32 0.014752088, %v4658_v35  ;;  %v4834_v16 = vsel %vm4833_vm4, %v5414_v28, %v4830_v51  ;;  %vm4793_vm6 = vmor %vm4791_vm13, %vm4792_vm3 }
 0x25f   : > { %v4749_v42 = vmul.f32 %v5418_v12, %v4748_v17  ;;  %v4715_v23 = vand.u32 2147483647, %v7531_v41  ;;  %v7566_v22 = vmul.f32 0.70710677, %v7550_v60  ;;  %v4839_v43 = vsel %vm7525_vm12, %v4838_v46, %v4834_v16  ;;  %vm4753_vm7 = vmor %vm4751_vm14, %vm4752_vm5 }
 0x260   : > { %v5420_v61 = vpop.eup %5419  ;;  %v4790_v57 = vadd.f32 %v5416_v19, %v4789_v13  ;;  %v4649_v45 = vmul.f32 %v4648_v8, %v7495_v34  ;;  %v4660_v20 = vmul.f32 %v4659_v39, %v7495_v34  ;;  %v4840_v53 = vmul.f32 %v4839_v43, %v4815_v21 }
 0x261   : > { %v4750_v28 = vadd.f32 %v5418_v12, %v4749_v42  ;;  %v4707_v0 = vmul.f32 %v5420_v61, %v7531_v41  ;;  %v4717_v59 = vand.u32 2147483648, %v7531_v41  ;;  %v4603_v48 = vmul.f32 %v7566_v22, %v7566_v22 }
 0x262   : > { %v4794_v2 = vsel %vm4793_vm6, %v5416_v19, %v4790_v57  ;;  %v4650_v29 = vadd.f32 0.05243302, %v4649_v45  ;;  %v4661_v46 = vadd.f32 0.112945676, %v4660_v20  ;;  %v5264_v21 = vclamps-f32 %v4840_v53, 1.0  ;;  %v7616_v53 = vld [vmem:[#allocation2 + $0x121] sm:$0xff] }
 0x263   : > { %v4799_v37 = vsel %vm7536_vm9, %v4798_v4, %v4794_v2  ;;  %v4754_v7 = vsel %vm4753_vm7, %v5418_v12, %v4750_v28  ;;  %v4708_v30 = vsub.f32 1.0, %v4707_v0  ;;  %vm4712_vm10 = vweird.f32 %v5420_v61  ;;  %v7618_v28 = vld [vmem:[#allocation2 + $0x122] sm:$0xff] }
 0x264   : > { %v4800_v18 = vmul.f32 %v4799_v37, %v4775_v10  ;;  %v4759_v62 = vsel %vm7542_vm2, %v4758_v25, %v4754_v7  ;;  %v4662_v19 = vmul.f32 %v4661_v46, %v7495_v34  ;;  %v4874_v44 = vadd.f32 1.0, %v5264_v21  ;;  %v7638_v37 = vld [vmem:[%s9316_s4] ss:$0 sm:$0xff]  ;;  %v7645_v7 = vld [vmem:[%s9316_s4 + $0x1] ss:$0 sm:$0xff] }
 0x265   : > { %v4760_v58 = vmul.f32 %v4759_v62, %v7519_v3  ;;  %v4709_v15 = vmul.f32 %v5420_v61, %v4708_v30  ;;  %v7588_v31 = vmin.f32 %v4603_v48, 16.0  ;;  %vm4711_vm11 = vweird.f32 %v7531_v41  ;;  %v7631_v48 = vld [vmem:[%s9316_s4 + $0x7] ss:$0 sm:$0xff] }
 0x266   : > { %v5263_v49 = vclamps-f32 %v4800_v18, 1.0  ;;  %v4651_v4 = vmul.f32 %v4650_v29, %v7495_v34  ;;  %v4663_v12 = vadd.f32 0.4994258, %v4662_v19  ;;  %v4906_v10 = vmul.f32 %v4874_v44, %v7481_v1  ;;  %vm4713_vm12 = vmor %vm4711_vm11, %vm4712_vm10 }
 0x267   : > { %v5262_v6 = vclamps-f32 %v4760_v58, 1.0  ;;  %v4710_v33 = vadd.f32 %v5420_v61, %v4709_v15  ;;  %v4605_v25 = vmul.f32 2.1237322e-06, %v7588_v31  ;;  %v4718_v35 = vor.u32 1.1754944e-38, %v4717_v59 }
 0x268   : > { %v4873_v24 = vadd.f32 1.0, %v5263_v49  ;;  %v4664_v3 = vmul.f32 %v4663_v12, %v7495_v34  ;;  %v4616_v51 = vmul.f32 3.8918573e-05, %v7588_v31  ;;  %5282 = vmatpush.xpose.msk.msra.mxu2 %vm2469_vm8, %v4906_v10  ;;  %vm4716_vm13 = vcmp.eq.f32.partialorder %v4715_v23, 8.507059e+37  ;;  %v7607_v23 = vld [vmem:[%s9316_s4 + $0x5] ss:$0 sm:$0xff] }
 0x269   : > { %v4714_v41 = vsel %vm4713_vm12, %v5420_v61, %v4710_v33  ;;  %v4606_v17 = vadd.f32 0.00028619796, %v4605_v25  ;;  %v3027_v13 = vadd.f32 %v2995_v9, %v2929_v40  ;;  %v4872_v8 = vadd.f32 1.0, %v5262_v6  ;;  %v7611_v9 = vld [vmem:[#allocation2 + $0x120] sm:$0xff]  ;;  %v7663_v49 = vld [vmem:[%s9316_s4 + $0x8] ss:$0 sm:$0xff] }
 0x26a   : > { %v4719_v1 = vsel %vm4716_vm13, %v4718_v35, %v4714_v41  ;;  %v4652_v39 = vadd.f32 0.18741608, %v4651_v4  ;;  %v7598_v16 = vadd.f32 1.0, %v4664_v3  ;;  %v4905_v42 = vmul.f32 %v4873_v24, %v7490_v63 }
 0x26b   : > { %v4720_v43 = vmul.f32 %v4719_v1, %v7547_v27  ;;  %v4607_v57 = vmul.f32 %v4606_v17, %v7588_v31  ;;  %v4617_v45 = vadd.f32 0.001143296, %v4616_v51  ;;  %v3093_v40 = vmul.f32 %v7607_v23, %v7232_v47  ;;  %v7624_v47 = vld [vmem:[%s9316_s4 + $0x6] ss:$0 sm:$0xff] }
 0x26c   : > { %5421 = vrcp.f32 %v7598_v16  ;;  %5283 = vmatpush.xpose.msk.msra.mxu2 %vm2469_vm8, %v4905_v42  ;;  %v3528_v63 = vmul.f32 0.5, %v7373_v56  ;;  %v4653_v0 = vmul.f32 %v4652_v39, %v7495_v34  ;;  %v3192_v2 = vmul.f32 %v7624_v47, %v7198_v36  ;;  %v9409_v1 = vld [vmem:[#allocation5_spill] sm:$0xff] }
 0x26d   : > { %v5261_v27 = vclamps-f32 %v4720_v43, 1.0  ;;  %v4608_v61 = vadd.f32 0.0036580483, %v4607_v57  ;;  %v4618_v20 = vmul.f32 %v4617_v45, %v7588_v31  ;;  %v3125_v59 = vadd.f32 %v3093_v40, %v3027_v13  ;;  %v7687_v45 = vld [vmem:[%s9318_s6] ss:$0 sm:$0xff] }
 0x26e   : > { %v4904_v56 = vmul.f32 %v4872_v8, %v3528_v63  ;;  %v3290_v34 = vmul.f32 %v7631_v48, %v7200_v26  ;;  %v2601_v36 = vmul.f32 %v7638_v37, %v7611_v9  ;;  %v2699_v30 = vmul.f32 %v7645_v7, %v7616_v53  ;;  %v7652_v26 = vld [vmem:[%s9316_s4 + $0x2] ss:$0 sm:$0xff] }
 0x26f   : > { %v4871_v29 = vadd.f32 1.0, %v5261_v27  ;;  %v4619_v46 = vadd.f32 0.014752088, %v4618_v20  ;;  %v3224_v21 = vadd.f32 %v3192_v2, %v3125_v59  ;;  %v2797_v18 = vmul.f32 %v7652_v26, %v7618_v28  ;;  %v9410_v27 = vld [vmem:[#allocation3_spill] sm:$0xff] }
 0x270   : > { %5284 = vmatpush.xpose.msk.msra.mxu2 %vm2469_vm8, %v4904_v56  ;;  %v3527_v62 = vmul.f32 0.5, %v7379_v5  ;;  %v4609_v19 = vmul.f32 %v4608_v61, %v7588_v31  ;;  %v3388_v4 = vmul.f32 %v7663_v49, %v7236_v50  ;;  %v2731_v12 = vadd.f32 %v2699_v30, %v2601_v36  ;;  %v7676_v50 = vld [vmem:[%s9317_s5] ss:$0 sm:$0xff] }
 0x271   : > { %v4620_v44 = vmul.f32 %v4619_v46, %v7588_v31  ;;  %v3322_v15 = vadd.f32 %v3290_v34, %v3224_v21  ;;  %v2896_v10 = vmul.f32 %v7503_v38, %v7187_v32  ;;  %v4654_v25 = vadd.f32 1.1283791, %v4653_v0  ;;  %v9411_v21 = vld [vmem:[#allocation4_spill] sm:$0xff] }
 0x272   : > { %v5422_v58 = vpop.eup %5421  ;;  %v4903_v6 = vmul.f32 %v4871_v29, %v3527_v62  ;;  %v2829_v35 = vadd.f32 %v2797_v18, %v2731_v12  ;;  %v4677_v51 = vand.u32 2147483648, %v7598_v16  ;;  %v4610_v41 = vadd.f32 0.05243302, %v4609_v19  ;;  %v9412_v62 = vld [vmem:[#allocation6_spill] sm:$0xff] }
 0x273   : > { %v4667_v5 = vmul.f32 %v5422_v58, %v7598_v16  ;;  %v4621_v33 = vadd.f32 0.112945676, %v4620_v44  ;;  %v3420_v24 = vadd.f32 %v3388_v4, %v3322_v15  ;;  %v2994_v8 = vmul.f32 %v7557_v14, %v7189_v52 }
 0x274   : > { %5285 = vmatpush.xpose.msk.msra.mxu2 %vm2469_vm8, %v4903_v6  ;;  %v2928_v13 = vadd.f32 %v2896_v10, %v2829_v35  ;;  %v3092_v39 = vmul.f32 %v7607_v23, %v9409_v1  ;;  %vm4672_vm14 = vweird.f32 %v5422_v58  ;;  %v4675_v43 = vand.u32 2147483647, %v7598_v16  ;;  %v7722_v1 = vld [vmem:[#allocation2 + $0xb1] sm:$0xff] }
 0x275   : > { %v4668_v3 = vsub.f32 1.0, %v4667_v5  ;;  %v4622_v17 = vmul.f32 %v4621_v33, %v7588_v31  ;;  %v3456_v32 = vmul.f32 %v7676_v50, %v3420_v24  ;;  %v3191_v52 = vmul.f32 %v7624_v47, %v9410_v27 }
 0x276   : > { %v3026_v63 = vadd.f32 %v2994_v8, %v2928_v13  ;;  %vm4671_vm15 = vweird.f32 %v7598_v16  ;;  %v4611_v20 = vmul.f32 %v4610_v41, %v7588_v31  ;;  %v4655_v59 = vmul.f32 %v4654_v25, %v7416_v54 }
 0x277   : > { %v4669_v42 = vmul.f32 %v5422_v58, %v4668_v3  ;;  %v4623_v57 = vadd.f32 0.4994258, %v4622_v17  ;;  %v7690_v40 = vadd.f32 %v7687_v45, %v3456_v32  ;;  %vm4673_vm9 = vmor %vm4671_vm15, %vm4672_vm14  ;;  %v4678_v2 = vor.u32 1.1754944e-38, %v4677_v51  ;;  %v7717_v17 = vld [vmem:[#allocation2 + $0xb0] sm:$0xff] }
 0x278   : > { %v3124_v29 = vadd.f32 %v3092_v39, %v3026_v63  ;;  %vm4676_vm2 = vcmp.eq.f32.partialorder %v4675_v43, 8.507059e+37  ;;  %v3289_v36 = vmul.f32 %v7631_v48, %v9411_v21  ;;  %v3387_v54 = vmul.f32 %v7663_v49, %v9412_v62  ;;  %v3147_v43 = vld [vmem:[#allocation2 + $0xc8] sm:$0xff] }
 0x279   : > { %v4670_v61 = vadd.f32 %v5422_v58, %v4669_v42  ;;  %v4624_v0 = vmul.f32 %v4623_v57, %v7588_v31  ;;  %v7699_v56 = vmul.f32 0.70710677, %v7690_v40  ;;  %v4612_v44 = vadd.f32 0.18741608, %v4611_v20  ;;  %v7731_v42 = vld [vmem:[#allocation2 + $0xb2] sm:$0xff] }
 0x27a   : > { %v3223_v18 = vadd.f32 %v3191_v52, %v3124_v29  ;;  %v3526_v5 = vmul.f32 0.5, %v7388_v55  ;;  %v7726_v55 = vmul.f32 0.5, %v7550_v60  ;;  %v7735_v52 = vmul.f32 %v7503_v38, %v7717_v17 }
 0x27b   : > { %v4674_v46 = vsel %vm4673_vm9, %v5422_v58, %v4670_v61  ;;  %v7701_v34 = vadd.f32 1.0, %v4624_v0  ;;  %v4563_v30 = vmul.f32 %v7699_v56, %v7699_v56  ;;  %v4613_v25 = vmul.f32 %v4612_v44, %v7588_v31  ;;  %v3245_v61 = vld [vmem:[#allocation2 + $0xc9] sm:$0xff] }
 0x27c   : > { %v4679_v16 = vsel %vm4676_vm2, %v4678_v2, %v4674_v46  ;;  %v3321_v58 = vadd.f32 %v3289_v36, %v3223_v18  ;;  %v3343_v2 = vld [vmem:[#allocation2 + $0xca] sm:$0xff]  ;;  %v7758_v18 = vmul.f32 %v7631_v48, %v3245_v61  ;;  %v3146_v61 = vld [vmem:[#allocation2 + $0xc0] sm:$0xff] }
 0x27d   : > { %v4680_v19 = vmul.f32 %v4679_v16, %v4655_v59  ;;  %5423 = vrcp.f32 %v7701_v34  ;;  %v7710_v15 = vmin.f32 %v4563_v30, 16.0  ;;  %v4614_v31 = vadd.f32 1.1283791, %v4613_v25 }
 0x27e   : > { %v3419_v6 = vadd.f32 %v3387_v54, %v3321_v58  ;;  %v4635_v20 = vand.u32 2147483647, %v7701_v34  ;;  %v4637_v60 = vand.u32 2147483648, %v7701_v34  ;;  %v7744_v59 = vmul.f32 %v7557_v14, %v7722_v1 }
 0x27f   : > { %v5260_v4 = vclamps-f32 %v4680_v19, 1.0  ;;  %v4565_v12 = vmul.f32 2.1237322e-06, %v7710_v15  ;;  %v4576_v10 = vmul.f32 3.8918573e-05, %v7710_v15  ;;  %v7752_v16 = vmul.f32 %v7607_v23, %v7731_v42 }
 0x280   : > { %v3455_v3 = vmul.f32 %v7676_v50, %v3419_v6  ;;  %v7755_v30 = vmul.f32 %v7624_v47, %v3147_v43  ;;  %vm4631_vm4 = vweird.f32 %v7701_v34  ;;  %v7762_v19 = vmul.f32 %v7663_v49, %v3343_v2 }
 0x281   : > { %v4870_v33 = vadd.f32 1.0, %v5260_v4  ;;  %v4566_v24 = vadd.f32 0.00028619796, %v4565_v12  ;;  %v4577_v35 = vadd.f32 0.001143296, %v4576_v10  ;;  %v4638_v44 = vor.u32 1.1754944e-38, %v4637_v60 }
 0x282   : > { %v7729_v39 = vadd.f32 %v7687_v45, %v3455_v3  ;;  %v7765_v58 = vmul.f32 0.5, %v7690_v40  ;;  %v4615_v10 = vmul.f32 %v4614_v31, %v7566_v22  ;;  %vm4636_vm6 = vcmp.eq.f32.partialorder %v4635_v20, 8.507059e+37 }
 0x283   : > { %v5424_v51 = vpop.eup %5423  ;;  %v4902_v41 = vmul.f32 %v4870_v33, %v3526_v5  ;;  %v4567_v13 = vmul.f32 %v4566_v24, %v7710_v15  ;;  %v4578_v8 = vmul.f32 %v4577_v35, %v7710_v15  ;;  %v5488_v24 = vld [vmem:[#allocation2 + $0x128] sm:$0xff]  ;;  %v7782_v22 = vmul.f32 %v7607_v23, %v7470_v11 }
 0x284   : > { %v4627_v32 = vmul.f32 %v5424_v51, %v7701_v34  ;;  %v7740_v0 = vmul.f32 0.70710677, %v7729_v39  ;;  %vm4632_vm3 = vweird.f32 %v5424_v51  ;;  %v7774_v35 = vmul.f32 %v5488_v24, %v7503_v38  ;;  %v5490_v11 = vld [vmem:[#allocation2 + $0x141] sm:$0xff] }
 0x285   : > { %5286 = vmatpush.xpose.msk.msra.mxu2 %vm2469_vm8, %v4902_v41  ;;  %v4568_v63 = vadd.f32 0.0036580483, %v4567_v13  ;;  %v4579_v27 = vadd.f32 0.014752088, %v4578_v8  ;;  %vm4633_vm5 = vmor %vm4631_vm4, %vm4632_vm3  ;;  %v9413_v41 = vld [vmem:[#allocation7_spill] sm:$0xff]  ;;  %v7796_v2 = vmul.f32 %v5490_v11, %v7631_v48 }
 0x286   : > { %v4628_v57 = vsub.f32 1.0, %v4627_v32  ;;  %v4523_v36 = vmul.f32 %v7740_v0, %v7740_v0  ;;  %v7778_v32 = vmul.f32 %v7557_v14, %v9413_v41  ;;  %v7786_v13 = vld [vmem:[#allocation2 + $0xa9] sm:$0xff] }
 0x287   : > { %v4569_v46 = vmul.f32 %v4568_v63, %v7710_v15  ;;  %v4580_v21 = vmul.f32 %v4579_v27, %v7710_v15  ;;  %v7792_v27 = vld [vmem:[#allocation2 + $0xaa] sm:$0xff] }
 0x288   : > { %v4629_v29 = vmul.f32 %v5424_v51, %v4628_v57  ;;  %v7767_v12 = vmin.f32 %v4523_v36, 16.0  ;;  %v5489_v57 = vld [vmem:[#allocation2 + $0x140] sm:$0xff]  ;;  %v7825_v41 = vld [vmem:[#allocation2 + $0x110] sm:$0xff] }
 0x289   : > { %v4581_v54 = vadd.f32 0.112945676, %v4580_v21  ;;  %v4570_v4 = vadd.f32 0.05243302, %v4569_v46  ;;  %v7790_v63 = vmul.f32 %v5489_v57, %v7624_v47  ;;  %v3244_v21 = vld [vmem:[#allocation2 + $0xc1] sm:$0xff]  ;;  %v7834_v57 = vmul.f32 %v7503_v38, %v7611_v9 }
 0x28a   : > { %v4630_v62 = vadd.f32 %v5424_v51, %v4629_v29  ;;  %v4525_v34 = vmul.f32 2.1237322e-06, %v7767_v12  ;;  %v4536_v25 = vmul.f32 3.8918573e-05, %v7767_v12  ;;  %v5491_v29 = vld [vmem:[#allocation2 + $0x142] sm:$0xff]  ;;  %v2600_v9 = vmul.f32 %v7638_v37, %v7825_v41 }
 0x28b   : > { %v4582_v5 = vmul.f32 %v4581_v54, %v7710_v15  ;;  %v4571_v8 = vmul.f32 %v4570_v4, %v7710_v15  ;;  %v7799_v46 = vmul.f32 %v5491_v29, %v7663_v49  ;;  %v3342_v4 = vld [vmem:[#allocation2 + $0xc2] sm:$0xff] }
 0x28c   : > { %v4634_v6 = vsel %vm4633_vm5, %v5424_v51, %v4630_v62  ;;  %v7784_v51 = vld [vmem:[#allocation2 + $0xa8] sm:$0xff]  ;;  %v4526_v31 = vadd.f32 0.00028619796, %v4525_v34  ;;  %v4537_v43 = vadd.f32 0.001143296, %v4536_v25 }
 0x28d   : > { %v4639_v33 = vsel %vm4636_vm6, %v4638_v44, %v4634_v6  ;;  %v4583_v3 = vadd.f32 0.4994258, %v4582_v5  ;;  %v7805_v54 = vmul.f32 %v7503_v38, %v7784_v51  ;;  %v7809_v44 = vmul.f32 %v7557_v14, %v7786_v13 }
 0x28e   : > { %v4640_v40 = vmul.f32 %v4639_v33, %v4615_v10  ;;  %v4527_v36 = vmul.f32 %v4526_v31, %v7767_v12  ;;  %v4538_v62 = vmul.f32 %v4537_v43, %v7767_v12  ;;  %v7815_v5 = vmul.f32 %v7607_v23, %v7792_v27  ;;  %v7827_v31 = vld [vmem:[#allocation2 + $0x111] sm:$0xff] }
 0x28f   : > { %v4584_v60 = vmul.f32 %v4583_v3, %v7710_v15  ;;  %9414 = vst [vmem:[#allocation5_spill] sm:$0xff] %v7805_v54  ;;  %v7818_v33 = vmul.f32 %v7624_v47, %v3146_v61  ;;  %v4572_v34 = vadd.f32 0.18741608, %v4571_v8  ;;  %v7830_v43 = vmul.f32 %v7663_v49, %v3342_v4 }
 0x290   : > { %v5259_v20 = vclamps-f32 %v4640_v40, 1.0  ;;  %9415 = vst [vmem:[#allocation3_spill] sm:$0xff] %v7809_v44  ;;  %v4528_v25 = vadd.f32 0.0036580483, %v4527_v36  ;;  %v4539_v24 = vadd.f32 0.014752088, %v4538_v62  ;;  %v7821_v40 = vmul.f32 %v7631_v48, %v3244_v21 }
 0x291   : > { %v7811_v6 = vadd.f32 1.0, %v4584_v60  ;;  %9416 = vst [vmem:[#allocation4_spill] sm:$0xff] %v7815_v5  ;;  %v7846_v60 = vmul.f32 %v7607_v23, %v7618_v28  ;;  %v2698_v11 = vmul.f32 %v7645_v7, %v7827_v31  ;;  %v5492_v21 = vld [vmem:[#allocation2 + $0x138] sm:$0xff]  ;;  %v4573_v62 = vmul.f32 %v4572_v34, %v7710_v15 }
 0x292   : > { %v4869_v10 = vadd.f32 1.0, %v5259_v20  ;;  %9417 = vst [vmem:[#allocation6_spill] sm:$0xff] %v7818_v33  ;;  %v4529_v8 = vmul.f32 %v4528_v25, %v7767_v12  ;;  %v4540_v61 = vmul.f32 %v4539_v24, %v7767_v12  ;;  %v7838_v20 = vld [vmem:[#allocation2 + $0x112] sm:$0xff]  ;;  %v7856_v36 = vmul.f32 %v5492_v21, %v7624_v47  ;;  %v3253_v24 = vld [vmem:[#allocation2 + $0x129] sm:$0xff]  ;;  %v5494_v33 = vld [vmem:[#allocation2 + $0x13a] sm:$0xff] }
 0x293   : > { %9418 = vst [vmem:[#allocation7_spill] sm:$0xff] %v7821_v40  ;;  %5425 = vrcp.f32 %v7811_v6  ;;  %v2796_v29 = vmul.f32 %v7652_v26, %v7838_v20  ;;  %v2730_v40 = vadd.f32 %v2698_v11, %v2600_v9  ;;  %v7866_v5 = vmul.f32 %v5494_v33, %v7663_v49  ;;  %v7885_v9 = vld [vmem:[#allocation2 + $0x98] sm:$0xff] }
 0x294   : > { %v4901_v3 = vmul.f32 %v4869_v10, %v7726_v55  ;;  %9419 = vst [vmem:[#allocation8_spill] sm:$0xff] %v7830_v43  ;;  %v7842_v55 = vmul.f32 %v7557_v14, %v7616_v53  ;;  %v3155_v53 = vld [vmem:[#allocation2 + $0x128] sm:$0xff]  ;;  %v4530_v28 = vadd.f32 0.05243302, %v4529_v8  ;;  %v4541_v4 = vadd.f32 0.112945676, %v4540_v61 }
 0x295   : > { %v5493_v10 = vld [vmem:[#allocation2 + $0x139] sm:$0xff]  ;;  %v7863_v43 = vmul.f32 0.5, %v7729_v39  ;;  %9421 = vst [vmem:[#allocation10_spill] sm:$0xff] %v7866_v5  ;;  %v7870_v21 = vmul.f32 %v7624_v47, %v7717_v17  ;;  %v7875_v34 = vmul.f32 %v7631_v48, %v7722_v1  ;;  %v7879_v8 = vmul.f32 %v7663_v49, %v7731_v42 }
 0x296   : > { %5287 = vmatpush.xpose.msk.msra.mxu2 %vm2469_vm8, %v4901_v3  ;;  %v7860_v25 = vmul.f32 %v5493_v10, %v7631_v48  ;;  %v3351_v3 = vld [vmem:[#allocation2 + $0x12a] sm:$0xff]  ;;  %v4542_v15 = vmul.f32 %v4541_v4, %v7767_v12  ;;  %v7882_v39 = vmul.f32 %v7624_v47, %v3155_v53  ;;  %v4531_v33 = vmul.f32 %v4530_v28, %v7767_v12  ;;  %v7887_v17 = vld [vmem:[#allocation2 + $0x99] sm:$0xff] }
 0x297   : > { %9420 = vst [vmem:[#allocation9_spill] sm:$0xff] %v7863_v43  ;;  %v2828_v11 = vadd.f32 %v2796_v29, %v2730_v40  ;;  %v2565_v4 = vld [vmem:[#allocation2 + $0xf8] sm:$0xff]  ;;  %v7890_v10 = vmul.f32 %v7631_v48, %v3253_v24  ;;  %v7893_v1 = vmul.f32 %v7663_v49, %v3351_v3  ;;  %v4574_v42 = vadd.f32 1.1283791, %v4573_v62 }
 0x298   : > { %9422 = vst [vmem:[#allocation11_spill] sm:$0xff] %v7870_v21  ;;  %v4543_v53 = vadd.f32 0.4994258, %v4542_v15  ;;  %v7900_v28 = vmul.f32 %v7624_v47, %v7784_v51  ;;  %v4595_v21 = vand.u32 2147483647, %v7811_v6  ;;  %v2590_v40 = vmul.f32 %v7638_v37, %v7885_v9  ;;  %v2663_v62 = vld [vmem:[#allocation2 + $0xf9] sm:$0xff] }
 0x299   : > { %9423 = vst [vmem:[#allocation12_spill] sm:$0xff] %v7875_v34  ;;  %v5426_v61 = vpop.eup %5425  ;;  %v7896_v34 = vld [vmem:[#allocation2 + $0x9a] sm:$0xff]  ;;  %v2688_v29 = vmul.f32 %v7645_v7, %v7887_v17  ;;  %v2927_v24 = vadd.f32 %v7774_v35, %v2828_v11  ;;  %v4597_v15 = vand.u32 2147483648, %v7811_v6  ;;  %v2598_v54 = vmul.f32 %v7638_v37, %v2565_v4  ;;  %v2564_v4 = vld [vmem:[#allocation2 + $0xf0] sm:$0xff] }
 0x29a   : > { %9424 = vst [vmem:[#allocation13_spill] sm:$0xff] %v7879_v8  ;;  %v4587_v8 = vmul.f32 %v5426_v61, %v7811_v6  ;;  %v4544_v44 = vmul.f32 %v4543_v53, %v7767_v12  ;;  %v4532_v51 = vadd.f32 0.18741608, %v4531_v33  ;;  %v2786_v43 = vmul.f32 %v7652_v26, %v7896_v34 }
 0x29b   : > { %9425 = vst [vmem:[#allocation14_spill] sm:$0xff] %v7885_v9  ;;  %v3025_v9 = vadd.f32 %v7778_v32, %v2927_v24  ;;  %vm4592_vm7 = vweird.f32 %v5426_v61  ;;  %v2696_v35 = vmul.f32 %v7645_v7, %v2663_v62  ;;  %v4575_v11 = vmul.f32 %v4574_v42, %v7699_v56  ;;  %v7927_v24 = vld [vmem:[#allocation2 + $0x109] sm:$0xff]  ;;  %v3252_v62 = vld [vmem:[#allocation2 + $0x121] sm:$0xff] }
 0x29c   : > { %9426 = vst [vmem:[#allocation15_spill] sm:$0xff] %v7887_v17  ;;  %v4588_v3 = vsub.f32 1.0, %v4587_v8  ;;  %v7914_v17 = vadd.f32 1.0, %v4544_v44  ;;  %v2761_v8 = vld [vmem:[#allocation2 + $0xfa] sm:$0xff]  ;;  %vm4591_vm10 = vweird.f32 %v7811_v6  ;;  %vm7920_vm11 = vcmp.eq.f32.partialorder %v4595_v21, 8.507059e+37  ;;  %v7925_v44 = vld [vmem:[#allocation2 + $0x108] sm:$0xff] }
 0x29d   : > { %9427 = vst [vmem:[#allocation16_spill] sm:$0xff] %v7896_v34  ;;  %v3123_v33 = vadd.f32 %v7782_v22, %v3025_v9  ;;  %v4598_v32 = vor.u32 1.1754944e-38, %v4597_v15  ;;  %vm4593_vm12 = vmor %vm4591_vm10, %vm4592_vm7  ;;  %v4533_v56 = vmul.f32 %v4532_v51, %v7767_v12  ;;  %v2728_v21 = vadd.f32 %v2696_v35, %v2598_v54 }
 0x29e   : > { %9428 = vst [vmem:[#allocation17_spill] sm:$0xff] %v7900_v28  ;;  %v2720_v28 = vadd.f32 %v2688_v29, %v2590_v40  ;;  %v4589_v5 = vmul.f32 %v5426_v61, %v4588_v3  ;;  %v2662_v40 = vld [vmem:[#allocation2 + $0xf1] sm:$0xff]  ;;  %5427 = vrcp.f32 %v7914_v17  ;;  %v2597_v9 = vmul.f32 %v7638_v37, %v2564_v4 }
 0x29f   : > { %v3222_v6 = vadd.f32 %v7790_v63, %v3123_v33  ;;  %v2695_v42 = vmul.f32 %v7645_v7, %v2662_v40  ;;  %v2697_v12 = vmul.f32 %v7645_v7, %v7927_v24  ;;  %v7950_v51 = vmul.f32 %v7663_v49, %v7792_v27  ;;  %v7960_v33 = vld [vmem:[#allocation2 + $0x10a] sm:$0xff] }
 0x2a0   : > { %v2818_v53 = vadd.f32 %v2786_v43, %v2720_v28  ;;  %v4590_v29 = vadd.f32 %v5426_v61, %v4589_v5  ;;  %v2794_v5 = vmul.f32 %v7652_v26, %v2761_v8  ;;  %v3154_v28 = vld [vmem:[#allocation2 + $0x120] sm:$0xff]  ;;  %v4534_v34 = vadd.f32 1.1283791, %v4533_v56 }
 0x2a1   : > { %v3320_v54 = vadd.f32 %v7796_v2, %v3222_v6  ;;  %v7954_v35 = vmul.f32 %v7624_v47, %v3154_v28  ;;  %v7957_v8 = vmul.f32 %v7631_v48, %v3252_v62  ;;  %v2727_v4 = vadd.f32 %v2695_v42, %v2597_v9  ;;  %v2760_v42 = vld [vmem:[#allocation2 + $0xf2] sm:$0xff] }
 0x2a2   : > { %v2917_v22 = vadd.f32 %v7735_v52, %v2818_v53  ;;  %v4594_v43 = vsel %vm4593_vm12, %v5426_v61, %v4590_v29  ;;  %v2599_v52 = vmul.f32 %v7638_v37, %v7925_v44  ;;  %v7946_v61 = vmul.f32 %v7631_v48, %v7786_v13 }
 0x2a3   : > { %v4599_v3 = vsel %vm7920_vm11, %v4598_v32, %v4594_v43  ;;  %v3418_v2 = vadd.f32 %v7799_v46, %v3320_v54  ;;  %v2826_v13 = vadd.f32 %v2794_v5, %v2728_v21  ;;  %v2795_v47 = vmul.f32 %v7652_v26, %v7960_v33  ;;  %v3350_v54 = vld [vmem:[#allocation2 + $0x122] sm:$0xff] }
 0x2a4   : > { %v3015_v15 = vadd.f32 %v7744_v59, %v2917_v22  ;;  %v4600_v63 = vmul.f32 %v4599_v3, %v4575_v11  ;;  %v5428_v11 = vpop.eup %5427  ;;  %v2729_v29 = vadd.f32 %v2697_v12, %v2599_v52  ;;  %v2893_v32 = vmul.f32 %v7503_v38, %v7825_v41 }
 0x2a5   : > { %v4547_v27 = vmul.f32 %v5428_v11, %v7914_v17  ;;  %v3454_v48 = vmul.f32 %v7676_v50, %v3418_v2  ;;  %v2991_v46 = vmul.f32 %v7557_v14, %v7827_v31  ;;  %v4555_v22 = vand.u32 2147483647, %v7914_v17 }
 0x2a6   : > { %v3113_v59 = vadd.f32 %v7752_v16, %v3015_v15  ;;  %v5258_v53 = vclamps-f32 %v4600_v63, 1.0  ;;  %v2827_v5 = vadd.f32 %v2795_v47, %v2729_v29  ;;  %v4557_v43 = vand.u32 2147483648, %v7914_v17 }
 0x2a7   : > { %v4548_v56 = vsub.f32 1.0, %v4547_v27  ;;  %v3490_v21 = vadd.f32 %v7687_v45, %v3454_v48  ;;  %v2925_v9 = vadd.f32 %v2893_v32, %v2826_v13  ;;  %vm4552_vm13 = vweird.f32 %v5428_v11 }
 0x2a8   : > { %v3212_v40 = vadd.f32 %v7755_v30, %v3113_v59  ;;  %v4868_v16 = vadd.f32 1.0, %v5258_v53  ;;  %v2926_v31 = vadd.f32 %v7834_v57, %v2827_v5  ;;  %v4535_v62 = vmul.f32 %v4534_v34, %v7740_v0 }
 0x2a9   : > { %v4549_v28 = vmul.f32 %v5428_v11, %v4548_v56  ;;  %v3023_v3 = vadd.f32 %v2991_v46, %v2925_v9  ;;  %vm4551_vm14 = vweird.f32 %v7914_v17  ;;  %v2793_v12 = vmul.f32 %v7652_v26, %v2760_v42  ;;  %v8015_v56 = vld [vmem:[#allocation2 + $0x91] sm:$0xff]  ;;  %v9431_v9 = vld [vmem:[#allocation10_spill] sm:$0xff] }
 0x2aa   : > { %v3310_v6 = vadd.f32 %v7758_v18, %v3212_v40  ;;  %v4900_v30 = vmul.f32 %v4868_v16, %v7765_v58  ;;  %v7980_v18 = vmul.f32 0.70710677, %v3490_v21  ;;  %v3089_v58 = vmul.f32 %v7607_v23, %v7838_v20  ;;  %vm4553_vm15 = vmor %vm4551_vm14, %vm4552_vm13 }
 0x2ab   : > { %v4550_v15 = vadd.f32 %v5428_v11, %v4549_v28  ;;  %v3024_v0 = vadd.f32 %v7842_v55, %v2926_v31  ;;  %vm4556_vm9 = vcmp.eq.f32.partialorder %v4555_v22, 8.507059e+37  ;;  %v2892_v17 = vmul.f32 %v7503_v38, %v7925_v44  ;;  %v8007_v44 = vld [vmem:[#allocation2 + $0x90] sm:$0xff] }
 0x2ac   : > { %v3408_v41 = vadd.f32 %v7762_v19, %v3310_v6  ;;  %5288 = vmatpush.xpose.msk.msra.mxu2 %vm2469_vm8, %v4900_v30  ;;  %v4558_v19 = vor.u32 1.1754944e-38, %v4557_v43  ;;  %v4483_v57 = vmul.f32 %v7980_v18, %v7980_v18  ;;  %v3121_v63 = vadd.f32 %v3089_v58, %v3023_v3 }
 0x2ad   : > { %v4554_v34 = vsel %vm4553_vm15, %v5428_v11, %v4550_v15  ;;  %v3122_v2 = vadd.f32 %v7846_v60, %v3024_v0  ;;  %v2825_v40 = vadd.f32 %v2793_v12, %v2727_v4  ;;  %v8003_v11 = vmul.f32 %v7663_v49, %v3350_v54  ;;  %v8040_v0 = vld [vmem:[#allocation2 + $0x92] sm:$0xff] }
 0x2ae   : > { %v3444_v52 = vmul.f32 %v7676_v50, %v3408_v41  ;;  %v4559_v59 = vsel %vm4556_vm9, %v4558_v19, %v4554_v34  ;;  %v7995_v53 = vmin.f32 %v4483_v57, 16.0  ;;  %v3220_v13 = vadd.f32 %v7882_v39, %v3121_v63  ;;  %v8029_v41 = vld [vmem:[#allocation2 + $0x78] sm:$0xff]  ;;  %v8042_v63 = vld [vmem:[#allocation2 + $0x80] sm:$0xff] }
 0x2af   : > { %v4560_v27 = vmul.f32 %v4559_v59, %v4535_v62  ;;  %v3221_v16 = vadd.f32 %v7856_v36, %v3122_v2  ;;  %v2924_v32 = vadd.f32 %v2892_v17, %v2825_v40  ;;  %v2990_v4 = vmul.f32 %v7557_v14, %v7927_v24 }
 0x2b0   : > { %v7991_v20 = vadd.f32 %v7687_v45, %v3444_v52  ;;  %v4485_v29 = vmul.f32 2.1237322e-06, %v7995_v53  ;;  %v4496_v47 = vmul.f32 3.8918573e-05, %v7995_v53  ;;  %v3318_v60 = vadd.f32 %v7890_v10, %v3220_v13  ;;  %v8053_v13 = vld [vmem:[#allocation2 + $0x81] sm:$0xff] }
 0x2b1   : > { %v5257_v48 = vclamps-f32 %v4560_v27, 1.0  ;;  %v3319_v22 = vadd.f32 %v7860_v25, %v3221_v16  ;;  %v8021_v10 = vmul.f32 0.5, %v3490_v21  ;;  %v2589_v30 = vmul.f32 %v7638_v37, %v8007_v44  ;;  %v8031_v25 = vld [vmem:[#allocation2 + $0x79] sm:$0xff] }
 0x2b2   : > { %v8000_v55 = vmul.f32 0.70710677, %v7991_v20  ;;  %v4486_v49 = vadd.f32 0.00028619796, %v4485_v29  ;;  %v4497_v46 = vadd.f32 0.001143296, %v4496_v47  ;;  %v3416_v6 = vadd.f32 %v7893_v1, %v3318_v60 }
 0x2b3   : > { %v4867_v5 = vadd.f32 1.0, %v5257_v48  ;;  %v3417_v42 = vadd.f32 %v9431_v9, %v3319_v22  ;;  %v9432_v1 = vld [vmem:[#allocation9_spill] sm:$0xff]  ;;  %v2687_v3 = vmul.f32 %v7645_v7, %v8015_v56  ;;  %v3022_v12 = vadd.f32 %v2990_v4, %v2924_v32 }
 0x2b4   : > { %v4083_v39 = vmul.f32 %v8000_v55, %v8000_v55  ;;  %v4487_v43 = vmul.f32 %v4486_v49, %v7995_v53  ;;  %v4498_v24 = vmul.f32 %v4497_v46, %v7995_v53  ;;  %v3452_v28 = vmul.f32 %v7676_v50, %v3416_v6  ;;  %v8066_v4 = vld [vmem:[#allocation2 + $0x7a] sm:$0xff] }
 0x2b5   : > { %v4899_v31 = vmul.f32 %v4867_v5, %v9432_v1  ;;  %v3453_v52 = vmul.f32 %v7676_v50, %v3417_v42  ;;  %v2587_v54 = vmul.f32 %v7638_v37, %v8029_v41  ;;  %v2685_v34 = vmul.f32 %v7645_v7, %v8031_v25  ;;  %v8082_v42 = vld [vmem:[#allocation2 + $0x82] sm:$0xff] }
 0x2b6   : > { %v8019_v36 = vmin.f32 %v4083_v39, 16.0  ;;  %v4488_v58 = vadd.f32 0.0036580483, %v4487_v43  ;;  %v4499_v15 = vadd.f32 0.014752088, %v4498_v24  ;;  %v8056_v27 = vadd.f32 %v7687_v45, %v3452_v28 }
 0x2b7   : > { %5289 = vmatpush.xpose.msk.msra.mxu2 %vm2469_vm8, %v4899_v31  ;;  %v8051_v2 = vadd.f32 %v7687_v45, %v3453_v52  ;;  %v2719_v47 = vadd.f32 %v2687_v3, %v2589_v30  ;;  %v3088_v16 = vmul.f32 %v7607_v23, %v7960_v33  ;;  %v2785_v39 = vmul.f32 %v7652_v26, %v8040_v0 }
 0x2b8   : > { %v4085_v21 = vmul.f32 2.1237322e-06, %v8019_v36  ;;  %v4096_v62 = vmul.f32 3.8918573e-05, %v8019_v36  ;;  %v4489_v17 = vmul.f32 %v4488_v58, %v7995_v53  ;;  %v4500_v59 = vmul.f32 %v4499_v15, %v7995_v53 }
 0x2b9   : > { %v2588_v32 = vmul.f32 %v7638_v37, %v8042_v63  ;;  %v8069_v22 = vmul.f32 0.70710677, %v8051_v2  ;;  %v2686_v6 = vmul.f32 %v7645_v7, %v8053_v13  ;;  %v8076_v30 = vmul.f32 0.70710677, %v8056_v27 }
 0x2ba   : > { %v4086_v19 = vadd.f32 0.00028619796, %v4085_v21  ;;  %v4097_v57 = vadd.f32 0.001143296, %v4096_v62  ;;  %v4490_v60 = vadd.f32 0.05243302, %v4489_v17  ;;  %v2717_v43 = vadd.f32 %v2685_v34, %v2587_v54 }
 0x2bb   : > { %v4501_v48 = vadd.f32 0.112945676, %v4500_v59  ;;  %v4443_v9 = vmul.f32 %v8069_v22, %v8069_v22  ;;  %v3120_v28 = vadd.f32 %v3088_v16, %v3022_v12  ;;  %v2817_v31 = vadd.f32 %v2785_v39, %v2719_v47 }
 0x2bc   : > { %v4087_v40 = vmul.f32 %v4086_v19, %v8019_v36  ;;  %v4098_v29 = vmul.f32 %v4097_v57, %v8019_v36  ;;  %v4491_v33 = vmul.f32 %v4490_v60, %v7995_v53  ;;  %v2783_v21 = vmul.f32 %v7652_v26, %v8066_v4 }
 0x2bd   : > { %v4502_v5 = vmul.f32 %v4501_v48, %v7995_v53  ;;  %v8086_v58 = vmin.f32 %v4443_v9, 16.0  ;;  %v2718_v15 = vadd.f32 %v2686_v6, %v2588_v32  ;;  %v2784_v19 = vmul.f32 %v7652_v26, %v8082_v42  ;;  %v8120_v9 = vld [vmem:[%s9316_s4 + $0x3] ss:$0 sm:$0xff] }
 0x2be   : > { %v4088_v49 = vadd.f32 0.0036580483, %v4087_v40  ;;  %v4099_v46 = vadd.f32 0.014752088, %v4098_v29  ;;  %v4492_v1 = vadd.f32 0.18741608, %v4491_v33  ;;  %v4403_v57 = vmul.f32 %v8076_v30, %v8076_v30 }
 0x2bf   : > { %v4503_v7 = vadd.f32 0.4994258, %v4502_v5  ;;  %v2882_v12 = vmul.f32 %v7503_v38, %v8007_v44  ;;  %v4445_v59 = vmul.f32 2.1237322e-06, %v8086_v58  ;;  %v9433_v29 = vld [vmem:[#allocation5_spill] sm:$0xff]  ;;  %v2815_v16 = vadd.f32 %v2783_v21, %v2717_v43  ;;  %v9434_v33 = vld [vmem:[#allocation3_spill] sm:$0xff] }
 0x2c0   : > { %v4089_v37 = vmul.f32 %v4088_v49, %v8019_v36  ;;  %v4100_v24 = vmul.f32 %v4099_v46, %v8019_v36  ;;  %v4493_v17 = vmul.f32 %v4492_v1, %v7995_v53  ;;  %v2916_v47 = vadd.f32 %v9433_v29, %v2817_v31  ;;  %v9435_v1 = vld [vmem:[#allocation14_spill] sm:$0xff]  ;;  %v9436_v21 = vld [vmem:[#allocation4_spill] sm:$0xff] }
 0x2c1   : > { %v4504_v52 = vmul.f32 %v4503_v7, %v7995_v53  ;;  %v4456_v26 = vmul.f32 3.8918573e-05, %v8086_v58  ;;  %v4446_v39 = vadd.f32 0.00028619796, %v4445_v59  ;;  %v2816_v32 = vadd.f32 %v2784_v19, %v2718_v15  ;;  %v9438_v59 = vld [vmem:[#allocation6_spill] sm:$0xff] }
 0x2c2   : > { %v4090_v62 = vadd.f32 0.05243302, %v4089_v37  ;;  %v4101_v3 = vadd.f32 0.112945676, %v4100_v24  ;;  %v8104_v38 = vmin.f32 %v4403_v57, 16.0  ;;  %v8106_v44 = vadd.f32 %v2882_v12, %v2815_v16  ;;  %v9437_v12 = vld [vmem:[#allocation15_spill] sm:$0xff] }
 0x2c3   : > { %v8099_v40 = vadd.f32 1.0, %v4504_v52  ;;  %v8110_v53 = vmul.f32 %v7557_v14, %v8015_v56  ;;  %v4494_v6 = vadd.f32 1.1283791, %v4493_v17  ;;  %v3014_v5 = vadd.f32 %v9434_v33, %v2916_v47 }
 0x2c4   : > { %v4091_v54 = vmul.f32 %v4090_v62, %v8019_v36  ;;  %v4102_v34 = vmul.f32 %v4101_v3, %v8019_v36  ;;  %v4447_v37 = vmul.f32 %v4446_v39, %v8086_v58  ;;  %v4457_v24 = vadd.f32 0.001143296, %v4456_v26 }
 0x2c5   : > { %5429 = vrcp.f32 %v8099_v40  ;;  %v4515_v43 = vand.u32 2147483647, %v8099_v40  ;;  %v2883_v56 = vmul.f32 %v8120_v9, %v9435_v1  ;;  %v3112_v62 = vadd.f32 %v9436_v21, %v3014_v5 }
 0x2c6   : > { %v4092_v60 = vadd.f32 0.18741608, %v4091_v54  ;;  %v4103_v48 = vadd.f32 0.4994258, %v4102_v34  ;;  %v4448_v3 = vadd.f32 0.0036580483, %v4447_v37  ;;  %v4458_v15 = vmul.f32 %v4457_v24, %v8086_v58 }
 0x2c7   : > { %v2915_v52 = vadd.f32 %v2883_v56, %v2816_v32  ;;  %v8130_v19 = vadd.f32 %v7954_v35, %v3120_v28  ;;  %v4495_v57 = vmul.f32 %v4494_v6, %v7980_v18  ;;  %v2981_v54 = vmul.f32 %v7557_v14, %v9437_v12  ;;  %v9442_v6 = vld [vmem:[#allocation16_spill] sm:$0xff] }
 0x2c8   : > { %v4093_v49 = vmul.f32 %v4092_v60, %v8019_v36  ;;  %v4104_v46 = vmul.f32 %v4103_v48, %v8019_v36  ;;  %v4517_v36 = vand.u32 2147483648, %v8099_v40  ;;  %v4405_v34 = vmul.f32 2.1237322e-06, %v8104_v38  ;;  %v9441_v48 = vld [vmem:[#allocation7_spill] sm:$0xff] }
 0x2c9   : > { %vm4511_vm2 = vweird.f32 %v8099_v40  ;;  %v3211_v29 = vadd.f32 %v9438_v59, %v3112_v62  ;;  %v4449_v47 = vmul.f32 %v4448_v3, %v8086_v58  ;;  %v4459_v26 = vadd.f32 0.014752088, %v4458_v15  ;;  %v9444_v59 = vld [vmem:[#allocation11_spill] sm:$0xff] }
 0x2ca   : > { %v4094_v7 = vadd.f32 1.1283791, %v4093_v49  ;;  %v8124_v31 = vadd.f32 1.0, %v4104_v46  ;;  %vm8144_vm3 = vcmp.eq.f32.partialorder %v4515_v43, 8.507059e+37  ;;  %v4518_v14 = vor.u32 1.1754944e-38, %v4517_v36  ;;  %v9443_v43 = vld [vmem:[#allocation8_spill] sm:$0xff] }
 0x2cb   : > { %v5430_v17 = vpop.eup %5429  ;;  %v3013_v16 = vadd.f32 %v2981_v54, %v2915_v52  ;;  %v3309_v39 = vadd.f32 %v9441_v48, %v3211_v29  ;;  %v4450_v32 = vadd.f32 0.05243302, %v4449_v47  ;;  %v4460_v49 = vmul.f32 %v4459_v26, %v8086_v58 }
 0x2cc   : > { %5431 = vrcp.f32 %v8124_v31  ;;  %v8141_v35 = vmul.f32 %v4094_v7, %v8000_v55  ;;  %v4507_v28 = vmul.f32 %v5430_v17, %v8099_v40  ;;  %v4115_v60 = vand.u32 2147483647, %v8124_v31 }
 0x2cd   : > { %v3079_v55 = vmul.f32 %v7607_v23, %v9442_v6  ;;  %v4406_v33 = vadd.f32 0.00028619796, %v4405_v34  ;;  %v4416_v5 = vmul.f32 3.8918573e-05, %v8104_v38  ;;  %vm4512_vm4 = vweird.f32 %v5430_v17 }
 0x2ce   : > { %v4508_v46 = vsub.f32 1.0, %v4507_v28  ;;  %v3407_v37 = vadd.f32 %v9443_v43, %v3309_v39  ;;  %v4451_v24 = vmul.f32 %v4450_v32, %v8086_v58  ;;  %v4461_v1 = vadd.f32 0.112945676, %v4460_v49  ;;  %vm4513_vm6 = vmor %vm4511_vm2, %vm4512_vm4  ;;  %v9445_v32 = vld [vmem:[#allocation12_spill] sm:$0xff] }
 0x2cf   : > { %v3111_v36 = vadd.f32 %v3079_v55, %v3013_v16  ;;  %v4407_v21 = vmul.f32 %v4406_v33, %v8104_v38  ;;  %v4417_v62 = vadd.f32 0.001143296, %v4416_v5  ;;  %v4117_v15 = vand.u32 2147483648, %v8124_v31 }
 0x2d0   : > { %v4509_v7 = vmul.f32 %v5430_v17, %v4508_v46  ;;  %v3443_v52 = vmul.f32 %v7676_v50, %v3407_v37  ;;  %v4452_v12 = vadd.f32 0.18741608, %v4451_v24  ;;  %v4462_v34 = vmul.f32 %v4461_v1, %v8086_v58 }
 0x2d1   : > { %v3210_v29 = vadd.f32 %v9444_v59, %v3111_v36  ;;  %v4408_v47 = vadd.f32 0.0036580483, %v4407_v21  ;;  %v4418_v16 = vmul.f32 %v4417_v62, %v8104_v38  ;;  %vm4111_vm7 = vweird.f32 %v8124_v31 }
 0x2d2   : > { %v5432_v56 = vpop.eup %5431  ;;  %v4510_v54 = vadd.f32 %v5430_v17, %v4509_v7  ;;  %v8166_v28 = vadd.f32 %v7687_v45, %v3443_v52  ;;  %v4463_v39 = vadd.f32 0.4994258, %v4462_v34  ;;  %v4453_v40 = vmul.f32 %v4452_v12, %v8086_v58 }
 0x2d3   : > { %v4107_v3 = vmul.f32 %v5432_v56, %v8124_v31  ;;  %vm4112_vm5 = vweird.f32 %v5432_v56  ;;  %v3308_v49 = vadd.f32 %v9445_v32, %v3210_v29  ;;  %v4409_v46 = vmul.f32 %v4408_v47, %v8104_v38 }
 0x2d4   : > { %v4514_v48 = vsel %vm4513_vm6, %v5430_v17, %v4510_v54  ;;  %v8174_v33 = vmul.f32 0.70710677, %v8166_v28  ;;  %v4464_v43 = vmul.f32 %v4463_v39, %v8086_v58  ;;  %v9446_v17 = vld [vmem:[#allocation13_spill] sm:$0xff]  ;;  %v4419_v36 = vadd.f32 0.014752088, %v4418_v16  ;;  %vm4113_vm10 = vmor %vm4111_vm7, %vm4112_vm5 }
 0x2d5   : > { %v4108_v26 = vsub.f32 1.0, %v4107_v3  ;;  %v4519_v55 = vsel %vm8144_vm3, %v4518_v14, %v4514_v48  ;;  %v3406_v37 = vadd.f32 %v9446_v17, %v3308_v49  ;;  %v4410_v7 = vadd.f32 0.05243302, %v4409_v46 }
 0x2d6   : > { %v4520_v5 = vmul.f32 %v4519_v55, %v4495_v57  ;;  %v4043_v1 = vmul.f32 %v8174_v33, %v8174_v33  ;;  %v4118_v18 = vor.u32 1.1754944e-38, %v4117_v15  ;;  %v8183_v21 = vadd.f32 1.0, %v4464_v43 }
 0x2d7   : > { %v4109_v6 = vmul.f32 %v5432_v56, %v4108_v26  ;;  %v3442_v62 = vmul.f32 %v7676_v50, %v3406_v37  ;;  %vm4116_vm11 = vcmp.eq.f32.partialorder %v4115_v60, 8.507059e+37  ;;  %v4454_v58 = vadd.f32 1.1283791, %v4453_v40 }
 0x2d8   : > { %v5256_v14 = vclamps-f32 %v4520_v5, 1.0  ;;  %v8186_v57 = vmin.f32 %v4043_v1, 16.0  ;;  %5433 = vrcp.f32 %v8183_v21  ;;  %v4411_v12 = vmul.f32 %v4410_v7, %v8104_v38  ;;  %v9449_v7 = vld [vmem:[#allocation17_spill] sm:$0xff] }
 0x2d9   : > { %v4110_v24 = vadd.f32 %v5432_v56, %v4109_v6  ;;  %v4420_v59 = vmul.f32 %v4419_v36, %v8104_v38  ;;  %v4475_v60 = vand.u32 2147483647, %v8183_v21  ;;  %v3078_v29 = vmul.f32 %v7607_v23, %v8040_v0 }
 0x2da   : > { %v4866_v52 = vadd.f32 1.0, %v5256_v14  ;;  %v4045_v15 = vmul.f32 2.1237322e-06, %v8186_v57  ;;  %v4056_v34 = vmul.f32 3.8918573e-05, %v8186_v57  ;;  %v3512_v47 = vmul.f32 0.5, %v7991_v20 }
 0x2db   : > { %v4114_v31 = vsel %vm4113_vm10, %v5432_v56, %v4110_v24  ;;  %v8197_v56 = vadd.f32 %v7687_v45, %v3442_v62  ;;  %v4455_v48 = vmul.f32 %v4454_v58, %v8069_v22  ;;  %v3012_v45 = vadd.f32 %v8110_v53, %v8106_v44 }
 0x2dc   : > { %v4119_v3 = vsel %vm4116_vm11, %v4118_v18, %v4114_v31  ;;  %v4898_v50 = vmul.f32 %v4866_v52, %v8021_v10  ;;  %v4057_v16 = vadd.f32 0.001143296, %v4056_v34  ;;  %v4412_v10 = vadd.f32 0.18741608, %v4411_v12 }
 0x2dd   : > { %v4120_v54 = vmul.f32 %v4119_v3, %v8141_v35  ;;  %v4046_v35 = vadd.f32 0.00028619796, %v4045_v15  ;;  %v8205_v39 = vmul.f32 0.70710677, %v8197_v56  ;;  %vm4471_vm12 = vweird.f32 %v8183_v21 }
 0x2de   : > { %5290 = vmatpush.xpose.msk.msra.mxu2 %vm2469_vm8, %v4898_v50  ;;  %v4058_v23 = vmul.f32 %v4057_v16, %v8186_v57  ;;  %v4421_v20 = vadd.f32 0.112945676, %v4420_v59  ;;  %v5434_v0 = vpop.eup %5433  ;;  %v4477_v46 = vand.u32 2147483648, %v8183_v21  ;;  %v3110_v6 = vadd.f32 %v3078_v29, %v3012_v45  ;;  %v8248_v45 = vld [vmem:[%s9317_s5] ss:$0 sm:$0xff] }
 0x2df   : > { %v5246_v26 = vclamps-f32 %v4120_v54, 1.0  ;;  %v4047_v49 = vmul.f32 %v4046_v35, %v8186_v57  ;;  %v4003_v22 = vmul.f32 %v8205_v39, %v8205_v39  ;;  %v3317_v55 = vadd.f32 %v7957_v8, %v8130_v19 }
 0x2e0   : > { %v4059_v53 = vadd.f32 0.014752088, %v4058_v23  ;;  %v4467_v5 = vmul.f32 %v5434_v0, %v8183_v21  ;;  %vm8218_vm13 = vcmp.eq.f32.partialorder %v4475_v60, 8.507059e+37  ;;  %vm4472_vm14 = vweird.f32 %v5434_v0 }
 0x2e1   : > { %v4856_v32 = vadd.f32 1.0, %v5246_v26  ;;  %v4048_v44 = vadd.f32 0.0036580483, %v4047_v49  ;;  %v8222_v17 = vmin.f32 %v4003_v22, 16.0  ;;  %v4413_v37 = vmul.f32 %v4412_v10, %v8104_v38  ;;  %vm4473_vm15 = vmor %vm4471_vm12, %vm4472_vm14 }
 0x2e2   : > { %v4422_v24 = vmul.f32 %v4421_v20, %v8104_v38  ;;  %v4060_v19 = vmul.f32 %v4059_v53, %v8186_v57  ;;  %v4468_v1 = vsub.f32 1.0, %v4467_v5  ;;  %v3209_v36 = vadd.f32 %v9449_v7, %v3110_v6 }
 0x2e3   : > { %v4888_v40 = vmul.f32 %v4856_v32, %v3512_v47  ;;  %v4049_v8 = vmul.f32 %v4048_v44, %v8186_v57  ;;  %v4005_v18 = vmul.f32 2.1237322e-06, %v8222_v17  ;;  %v4016_v14 = vmul.f32 3.8918573e-05, %v8222_v17 }
 0x2e4   : > { %v4423_v62 = vadd.f32 0.4994258, %v4422_v24  ;;  %v3415_v31 = vadd.f32 %v8003_v11, %v3317_v55  ;;  %v4061_v3 = vadd.f32 0.112945676, %v4060_v19  ;;  %v4469_v52 = vmul.f32 %v5434_v0, %v4468_v1 }
 0x2e5   : > { %5267 = vmatpush.xpose.msk.msrb.mxu1 %vm2469_vm8, %v4888_v40  ;;  %v4050_v58 = vadd.f32 0.05243302, %v4049_v8  ;;  %v3307_v12 = vadd.f32 %v7946_v61, %v3209_v36  ;;  %v4478_v54 = vor.u32 1.1754944e-38, %v4477_v46  ;;  %v4006_v15 = vadd.f32 0.00028619796, %v4005_v18 }
 0x2e6   : > { %v4017_v34 = vadd.f32 0.001143296, %v4016_v14  ;;  %v4424_v59 = vmul.f32 %v4423_v62, %v8104_v38  ;;  %v4062_v60 = vmul.f32 %v4061_v3, %v8186_v57  ;;  %v4470_v29 = vadd.f32 %v5434_v0, %v4469_v52 }
 0x2e7   : > { %v4051_v50 = vmul.f32 %v4050_v58, %v8186_v57  ;;  %v3405_v47 = vadd.f32 %v7950_v51, %v3307_v12  ;;  %v4007_v11 = vmul.f32 %v4006_v15, %v8222_v17  ;;  %v4414_v26 = vadd.f32 1.1283791, %v4413_v37  ;;  %v8296_v58 = vld [vmem:[#allocation2 + $0x69] sm:$0xff] }
 0x2e8   : > { %v4018_v61 = vmul.f32 %v4017_v34, %v8222_v17  ;;  %v8243_v35 = vadd.f32 1.0, %v4424_v59  ;;  %v4063_v38 = vadd.f32 0.4994258, %v4062_v60  ;;  %v4474_v10 = vsel %vm4473_vm15, %v5434_v0, %v4470_v29 }
 0x2e9   : > { %v4052_v16 = vadd.f32 0.18741608, %v4051_v50  ;;  %v3451_v51 = vmul.f32 %v8248_v45, %v3415_v31  ;;  %v4479_v21 = vsel %vm8218_vm13, %v4478_v54, %v4474_v10  ;;  %v4008_v32 = vadd.f32 0.0036580483, %v4007_v11  ;;  %v8294_v31 = vld [vmem:[#allocation2 + $0x68] sm:$0xff] }
 0x2ea   : > { %v4019_v49 = vadd.f32 0.014752088, %v4018_v61  ;;  %5435 = vrcp.f32 %v8243_v35  ;;  %v4064_v20 = vmul.f32 %v4063_v38, %v8186_v57  ;;  %v4480_v46 = vmul.f32 %v4479_v21, %v4455_v48  ;;  %v8322_v11 = vld [vmem:[%s9316_s4 + $0x1] ss:$0 sm:$0xff] }
 0x2eb   : > { %v4053_v23 = vmul.f32 %v4052_v16, %v8186_v57  ;;  %v3441_v0 = vmul.f32 %v8248_v45, %v3405_v47  ;;  %v3521_v22 = vmul.f32 0.5, %v8051_v2  ;;  %v4009_v6 = vmul.f32 %v4008_v32, %v8222_v17 }
 0x2ec   : > { %v4020_v55 = vmul.f32 %v4019_v49, %v8222_v17  ;;  %v8261_v40 = vmul.f32 0.5, %v8056_v27  ;;  %v8263_v44 = vadd.f32 1.0, %v4064_v20  ;;  %v5255_v53 = vclamps-f32 %v4480_v46, 1.0  ;;  %v8277_v27 = vld [vmem:[%s9318_s6] ss:$0 sm:$0xff] }
 0x2ed   : > { %v4435_v5 = vand.u32 2147483647, %v8243_v35  ;;  %v4437_v43 = vand.u32 2147483648, %v8243_v35  ;;  %v8268_v57 = vmul.f32 0.5, %v8166_v28  ;;  %v4010_v48 = vadd.f32 0.05243302, %v4009_v6 }
 0x2ee   : > { %v4021_v37 = vadd.f32 0.112945676, %v4020_v55  ;;  %v8271_v2 = vmul.f32 %v4414_v26, %v8076_v30  ;;  %v4054_v24 = vadd.f32 1.1283791, %v4053_v23  ;;  %5437 = vrcp.f32 %v8263_v44  ;;  %v8326_v26 = vld [vmem:[#allocation2 + $0x6a] sm:$0xff] }
 0x2ef   : > { %v8280_v8 = vadd.f32 %v8277_v27, %v3441_v0  ;;  %v8283_v19 = vadd.f32 %v8277_v27, %v3451_v51  ;;  %v4865_v1 = vadd.f32 1.0, %v5255_v53  ;;  %v4011_v7 = vmul.f32 %v4010_v48, %v8222_v17 }
 0x2f0   : > { %v5436_v28 = vpop.eup %5435  ;;  %v4022_v30 = vmul.f32 %v4021_v37, %v8222_v17  ;;  %vm4431_vm9 = vweird.f32 %v8243_v35  ;;  %v4075_v36 = vand.u32 2147483647, %v8263_v44  ;;  %vm8290_vm2 = vcmp.eq.f32.partialorder %v4435_v5, 8.507059e+37 }
 0x2f1   : > { %v4427_v18 = vmul.f32 %v5436_v28, %v8243_v35  ;;  %v4438_v62 = vor.u32 1.1754944e-38, %v4437_v43  ;;  %v4077_v3 = vand.u32 2147483648, %v8263_v44  ;;  %v4897_v52 = vmul.f32 %v4865_v1, %v3521_v22  ;;  %v8346_v22 = vld [vmem:[%s9316_s4 + $0x2] ss:$0 sm:$0xff] }
 0x2f2   : > { %v4012_v12 = vadd.f32 0.18741608, %v4011_v7  ;;  %v4023_v54 = vadd.f32 0.4994258, %v4022_v30  ;;  %v8300_v15 = vmul.f32 %v4054_v24, %v8174_v33  ;;  %v8303_v59 = vmul.f32 0.70710677, %v8280_v8 }
 0x2f3   : > { %v4428_v34 = vsub.f32 1.0, %v4427_v18  ;;  %v8306_v50 = vmul.f32 0.70710677, %v8283_v19  ;;  %vm4071_vm3 = vweird.f32 %v8263_v44  ;;  %5291 = vmatpush.xpose.msk.msra.mxu2 %vm2469_vm8, %v4897_v52  ;;  %v8315_v33 = vld [vmem:[%s9316_s4] ss:$0 sm:$0xff]  ;;  %v2684_v61 = vmul.f32 %v8322_v11, %v8296_v58 }
 0x2f4   : > { %v4013_v60 = vmul.f32 %v4012_v12, %v8222_v17  ;;  %v4024_v29 = vmul.f32 %v4023_v54, %v8222_v17  ;;  %v2586_v47 = vmul.f32 %v8315_v33, %v8294_v31  ;;  %v5438_v16 = vpop.eup %5437  ;;  %vm4432_vm4 = vweird.f32 %v5436_v28 }
 0x2f5   : > { %v4429_v17 = vmul.f32 %v5436_v28, %v4428_v34  ;;  %v3963_v38 = vmul.f32 %v8303_v59, %v8303_v59  ;;  %v4363_v10 = vmul.f32 %v8306_v50, %v8306_v50  ;;  %v4067_v51 = vmul.f32 %v5438_v16, %v8263_v44  ;;  %vm4433_vm7 = vmor %vm4431_vm9, %vm4432_vm4 }
 0x2f6   : > { %vm8333_vm5 = vcmp.eq.f32.partialorder %v4075_v36, 8.507059e+37  ;;  %v4078_v32 = vor.u32 1.1754944e-38, %v4077_v3  ;;  %v4014_v49 = vadd.f32 1.1283791, %v4013_v60  ;;  %v8337_v23 = vadd.f32 1.0, %v4024_v29 }
 0x2f7   : > { %v4430_v20 = vadd.f32 %v5436_v28, %v4429_v17  ;;  %v8339_v46 = vmin.f32 %v3963_v38, 16.0  ;;  %v8341_v0 = vmin.f32 %v4363_v10, 16.0  ;;  %v2782_v6 = vmul.f32 %v8346_v22, %v8326_v26 }
 0x2f8   : > { %v4068_v55 = vsub.f32 1.0, %v4067_v51  ;;  %vm4072_vm6 = vweird.f32 %v5438_v16  ;;  %5439 = vrcp.f32 %v8337_v23  ;;  %v2716_v53 = vadd.f32 %v2684_v61, %v2586_v47 }
 0x2f9   : > { %v8355_v5 = vmul.f32 %v4014_v49, %v8205_v39  ;;  %v4037_v43 = vand.u32 2147483648, %v8337_v23  ;;  %v4434_v48 = vsel %vm4433_vm7, %v5436_v28, %v4430_v20  ;;  %v3965_v37 = vmul.f32 2.1237322e-06, %v8339_v46  ;;  %vm4073_vm10 = vmor %vm4071_vm3, %vm4072_vm6 }
 0x2fa   : > { %v4069_v24 = vmul.f32 %v5438_v16, %v4068_v55  ;;  %v4439_v1 = vsel %vm8290_vm2, %v4438_v62, %v4434_v48  ;;  %v3976_v7 = vmul.f32 3.8918573e-05, %v8339_v46  ;;  %v4365_v30 = vmul.f32 2.1237322e-06, %v8341_v0 }
 0x2fb   : > { %v4035_v35 = vand.u32 2147483647, %v8337_v23  ;;  %v8364_v36 = vor.u32 1.1754944e-38, %v4037_v43  ;;  %v4440_v39 = vmul.f32 %v4439_v1, %v8271_v2  ;;  %v3966_v18 = vadd.f32 0.00028619796, %v3965_v37 }
 0x2fc   : > { %v4070_v3 = vadd.f32 %v5438_v16, %v4069_v24  ;;  %v3977_v52 = vadd.f32 0.001143296, %v3976_v7  ;;  %v4366_v28 = vadd.f32 0.00028619796, %v4365_v30  ;;  %v4376_v12 = vmul.f32 3.8918573e-05, %v8341_v0 }
 0x2fd   : > { %vm4031_vm11 = vweird.f32 %v8337_v23  ;;  %v5254_v14 = vclamps-f32 %v4440_v39, 1.0  ;;  %v3967_v62 = vmul.f32 %v3966_v18, %v8339_v46  ;;  %v2814_v54 = vadd.f32 %v2782_v6, %v2716_v53  ;;  %v8394_v1 = vld [vmem:[%s9316_s4 + $0x4] ss:$0 sm:$0xff]  ;;  %v8401_v7 = vld [vmem:[%s9316_s4 + $0x5] ss:$0 sm:$0xff] }
 0x2fe   : > { %v2881_v34 = vmul.f32 %v8120_v9, %v8042_v63  ;;  %v5440_v2 = vpop.eup %5439  ;;  %v4074_v60 = vsel %vm4073_vm10, %v5438_v16, %v4070_v3  ;;  %v3978_v29 = vmul.f32 %v3977_v52, %v8339_v46  ;;  %v4367_v47 = vmul.f32 %v4366_v28, %v8341_v0  ;;  %v8408_v52 = vld [vmem:[%s9316_s4 + $0x6] ss:$0 sm:$0xff] }
 0x2ff   : > { %v4377_v61 = vadd.f32 0.001143296, %v4376_v12  ;;  %v4079_v44 = vsel %vm8333_vm5, %v4078_v32, %v4074_v60  ;;  %v4027_v17 = vmul.f32 %v5440_v2, %v8337_v23  ;;  %vm4032_vm12 = vweird.f32 %v5440_v2  ;;  %v3143_v32 = vld [vmem:[#allocation2 + $0x98] sm:$0xff]  ;;  %v8427_v23 = vld [vmem:[#allocation2 + $0xe1] sm:$0xff] }
 0x300   : > { %vm8380_vm13 = vcmp.eq.f32.partialorder %v4035_v35, 8.507059e+37  ;;  %v4864_v10 = vadd.f32 1.0, %v5254_v14  ;;  %v4080_v63 = vmul.f32 %v4079_v44, %v8300_v15  ;;  %v3968_v51 = vadd.f32 0.0036580483, %v3967_v62  ;;  %v3241_v35 = vld [vmem:[#allocation2 + $0x99] sm:$0xff]  ;;  %vm4033_vm14 = vmor %vm4031_vm11, %vm4032_vm12 }
 0x301   : > { %v3979_v16 = vadd.f32 0.014752088, %v3978_v29  ;;  %v4368_v49 = vadd.f32 0.0036580483, %v4367_v47  ;;  %v4028_v20 = vsub.f32 1.0, %v4027_v17  ;;  %v4378_v55 = vmul.f32 %v4377_v61, %v8341_v0 }
 0x302   : > { %v4896_v6 = vmul.f32 %v4864_v10, %v8261_v40  ;;  %v2913_v21 = vadd.f32 %v2881_v34, %v2814_v54  ;;  %v5245_v53 = vclamps-f32 %v4080_v63, 1.0  ;;  %v3969_v43 = vmul.f32 %v3968_v51, %v8339_v46  ;;  %v3339_v54 = vld [vmem:[#allocation2 + $0x9a] sm:$0xff]  ;;  %v8421_v29 = vld [vmem:[%s9316_s4 + $0x7] ss:$0 sm:$0xff] }
 0x303   : > { %v3980_v48 = vmul.f32 %v3979_v16, %v8339_v46  ;;  %v4369_v37 = vmul.f32 %v4368_v49, %v8341_v0  ;;  %v4029_v24 = vmul.f32 %v5440_v2, %v4028_v20  ;;  %v4379_v15 = vadd.f32 0.014752088, %v4378_v55  ;;  %v8425_v10 = vld [vmem:[#allocation2 + $0xe0] sm:$0xff] }
 0x304   : > { %5292 = vmatpush.xpose.msk.msra.mxu2 %vm2469_vm8, %v4896_v6  ;;  %v2979_v40 = vmul.f32 %v8394_v1, %v8053_v13  ;;  %v3077_v30 = vmul.f32 %v8401_v7, %v8082_v42  ;;  %v4855_v39 = vadd.f32 1.0, %v5245_v53  ;;  %v3970_v18 = vadd.f32 0.05243302, %v3969_v43 }
 0x305   : > { %v3981_v3 = vadd.f32 0.112945676, %v3980_v48  ;;  %v3176_v28 = vmul.f32 %v8408_v52, %v3143_v32  ;;  %v4030_v13 = vadd.f32 %v5440_v2, %v4029_v24  ;;  %v4370_v12 = vadd.f32 0.05243302, %v4369_v37  ;;  %v8441_v32 = vld [vmem:[#allocation2 + $0xe2] sm:$0xff] }
 0x306   : > { %v4380_v14 = vmul.f32 %v4379_v15, %v8341_v0  ;;  %v3011_v62 = vadd.f32 %v2979_v40, %v2913_v21  ;;  %v4887_v34 = vmul.f32 %v4855_v39, %v8268_v57  ;;  %v3971_v42 = vmul.f32 %v3970_v18, %v8339_v46 }
 0x307   : > { %v3982_v60 = vmul.f32 %v3981_v3, %v8339_v46  ;;  %v3274_v47 = vmul.f32 %v8421_v29, %v3241_v35  ;;  %v4034_v61 = vsel %vm4033_vm14, %v5440_v2, %v4030_v13  ;;  %v4371_v44 = vmul.f32 %v4370_v12, %v8341_v0  ;;  %v8436_v2 = vld [vmem:[%s9316_s4 + $0x8] ss:$0 sm:$0xff] }
 0x308   : > { %v4381_v17 = vadd.f32 0.112945676, %v4380_v14  ;;  %v3109_v57 = vadd.f32 %v3077_v30, %v3011_v62  ;;  %5268 = vmatpush.xpose.msk.msrb.mxu1 %vm2469_vm8, %v4887_v34  ;;  %v4039_v63 = vsel %vm8380_vm13, %v8364_v36, %v4034_v61  ;;  %v3972_v51 = vadd.f32 0.18741608, %v3971_v42  ;;  %v5506_v34 = vld [vmem:[#allocation2 + $0xf8] sm:$0xff] }
 0x309   : > { %v3983_v16 = vadd.f32 0.4994258, %v3982_v60  ;;  %v3372_v49 = vmul.f32 %v8436_v2, %v3339_v54  ;;  %v4040_v20 = vmul.f32 %v4039_v63, %v8355_v5  ;;  %v4372_v6 = vadd.f32 0.18741608, %v4371_v44  ;;  %v3153_v60 = vld [vmem:[#allocation2 + $0x110] sm:$0xff] }
 0x30a   : > { %v4382_v55 = vmul.f32 %v4381_v17, %v8341_v0  ;;  %v3208_v21 = vadd.f32 %v3176_v28, %v3109_v57  ;;  %v3973_v38 = vmul.f32 %v3972_v51, %v8339_v46  ;;  %v2596_v53 = vmul.f32 %v8315_v33, %v8425_v10  ;;  %v5507_v17 = vld [vmem:[#allocation2 + $0xf9] sm:$0xff]  ;;  %v3251_v63 = vld [vmem:[#allocation2 + $0x111] sm:$0xff] }
 0x30b   : > { %v3984_v36 = vmul.f32 %v3983_v16, %v8339_v46  ;;  %v2694_v43 = vmul.f32 %v8322_v11, %v8427_v23  ;;  %v5244_v48 = vclamps-f32 %v4040_v20, 1.0  ;;  %v4373_v37 = vmul.f32 %v4372_v6, %v8341_v0  ;;  %v8475_v51 = vld [vmem:[#allocation2 + $0x60] sm:$0xff]  ;;  %v3349_v20 = vld [vmem:[#allocation2 + $0x112] sm:$0xff] }
 0x30c   : > { %v4383_v5 = vadd.f32 0.4994258, %v4382_v55  ;;  %v3306_v24 = vadd.f32 %v3274_v47, %v3208_v21  ;;  %v2792_v30 = vmul.f32 %v8346_v22, %v8441_v32  ;;  %v3510_v35 = vmul.f32 0.5, %v8197_v56  ;;  %v8483_v6 = vld [vmem:[#allocation2 + $0x61] sm:$0xff] }
 0x30d   : > { %v8450_v15 = vadd.f32 1.0, %v3984_v36  ;;  %v2726_v40 = vadd.f32 %v2694_v43, %v2596_v53  ;;  %v4854_v46 = vadd.f32 1.0, %v5244_v48  ;;  %v3974_v3 = vadd.f32 1.1283791, %v3973_v38  ;;  %v5508_v36 = vld [vmem:[#allocation2 + $0xfa] sm:$0xff]  ;;  %v8490_v48 = vld [vmem:[#allocation2 + $0x62] sm:$0xff] }
 0x30e   : > { %v4384_v39 = vmul.f32 %v4383_v5, %v8341_v0  ;;  %v3404_v18 = vadd.f32 %v3372_v49, %v3306_v24  ;;  %v4374_v12 = vadd.f32 1.1283791, %v4373_v37  ;;  %v2891_v42 = vmul.f32 %v5506_v34, %v8120_v9 }
 0x30f   : > { %5441 = vrcp.f32 %v8450_v15  ;;  %v4886_v28 = vmul.f32 %v4854_v46, %v3510_v35  ;;  %v3997_v13 = vand.u32 2147483648, %v8450_v15  ;;  %v2824_v54 = vadd.f32 %v2792_v30, %v2726_v40 }
 0x310   : > { %v8458_v14 = vadd.f32 1.0, %v4384_v39  ;;  %v3440_v62 = vmul.f32 %v8248_v45, %v3404_v18  ;;  %v8464_v56 = vmul.f32 0.5, %v8280_v8  ;;  %v3995_v0 = vand.u32 2147483647, %v8450_v15  ;;  %v8508_v18 = vld [vmem:[#allocation2 + $0xd9] sm:$0xff] }
 0x311   : > { %5269 = vmatpush.xpose.msk.msrb.mxu1 %vm2469_vm8, %v4886_v28  ;;  %v8469_v47 = vmul.f32 %v3974_v3, %v8303_v59  ;;  %v2923_v44 = vadd.f32 %v2891_v42, %v2824_v54  ;;  %v2989_v57 = vmul.f32 %v5507_v17, %v8394_v1  ;;  %vm3991_vm15 = vweird.f32 %v8450_v15  ;;  %9459 = vst [vmem:[#allocation9_spill] sm:$0xff] %v8508_v18  ;;  %v8510_v3 = vld [vmem:[#allocation2 + $0xda] sm:$0xff] }
 0x312   : > { %5443 = vrcp.f32 %v8458_v14  ;;  %v8472_v61 = vadd.f32 %v8277_v27, %v3440_v62  ;;  %v3998_v8 = vor.u32 1.1754944e-38, %v3997_v13  ;;  %v8479_v16 = vmul.f32 %v4374_v12, %v8306_v50  ;;  %v8492_v50 = vld [vmem:[#allocation2 + $0xd8] sm:$0xff]  ;;  %9460 = vst [vmem:[#allocation5_spill] sm:$0xff] %v8510_v3 }
 0x313   : > { %v4395_v49 = vand.u32 2147483647, %v8458_v14  ;;  %v4397_v59 = vand.u32 2147483648, %v8458_v14  ;;  %v3021_v38 = vadd.f32 %v2989_v57, %v2923_v44  ;;  %v3087_v53 = vmul.f32 %v5508_v36, %v8401_v7  ;;  %9456 = vst [vmem:[#allocation10_spill] sm:$0xff] %v8492_v50 }
 0x314   : > { %v8486_v21 = vmul.f32 0.70710677, %v8472_v61  ;;  %v3186_v43 = vmul.f32 %v8408_v52, %v3153_v60  ;;  %vm8495_vm2 = vcmp.eq.f32.partialorder %v3995_v0, 8.507059e+37  ;;  %v3284_v24 = vmul.f32 %v8421_v29, %v3251_v63 }
 0x315   : > { %v5442_v55 = vpop.eup %5441  ;;  %v2585_v40 = vmul.f32 %v8315_v33, %v8475_v51  ;;  %vm4391_vm3 = vweird.f32 %v8458_v14  ;;  %v3119_v35 = vadd.f32 %v3087_v53, %v3021_v38  ;;  %v3382_v46 = vmul.f32 %v8436_v2, %v3349_v20 }
 0x316   : > { %v3987_v37 = vmul.f32 %v5442_v55, %v8450_v15  ;;  %vm3992_vm9 = vweird.f32 %v5442_v55  ;;  %v3923_v30 = vmul.f32 %v8486_v21, %v8486_v21  ;;  %v2683_v39 = vmul.f32 %v8322_v11, %v8483_v6 }
 0x317   : > { %v2781_v12 = vmul.f32 %v8346_v22, %v8490_v48  ;;  %v2880_v62 = vmul.f32 %v8120_v9, %v8029_v41  ;;  %v2595_v54 = vmul.f32 %v8315_v33, %v8492_v50  ;;  %vm8519_vm5 = vcmp.eq.f32.partialorder %v4395_v49, 8.507059e+37  ;;  %vm3993_vm6 = vmor %vm3991_vm15, %vm3992_vm9 }
 0x318   : > { %v5444_v28 = vpop.eup %5443  ;;  %v3988_v13 = vsub.f32 1.0, %v3987_v37  ;;  %v8523_v0 = vmin.f32 %v3923_v30, 16.0  ;;  %v3218_v60 = vadd.f32 %v3186_v43, %v3119_v35  ;;  %v2715_v17 = vadd.f32 %v2683_v39, %v2585_v40  ;;  %v5509_v30 = vld [vmem:[#allocation2 + $0xf0] sm:$0xff] }
 0x319   : > { %v4387_v34 = vmul.f32 %v5444_v28, %v8458_v14  ;;  %vm4392_vm4 = vweird.f32 %v5444_v28  ;;  %v2693_v57 = vmul.f32 %v8322_v11, %v8508_v18  ;;  %v2791_v41 = vmul.f32 %v8346_v22, %v8510_v3 }
 0x31a   : > { %v3989_v44 = vmul.f32 %v5442_v55, %v3988_v13  ;;  %v3925_v20 = vmul.f32 2.1237322e-06, %v8523_v0  ;;  %v3936_v38 = vmul.f32 3.8918573e-05, %v8523_v0  ;;  %v3316_v49 = vadd.f32 %v3284_v24, %v3218_v60  ;;  %vm4393_vm7 = vmor %vm4391_vm3, %vm4392_vm4 }
 0x31b   : > { %v4388_v63 = vsub.f32 1.0, %v4387_v34  ;;  %v2813_v53 = vadd.f32 %v2781_v12, %v2715_v17  ;;  %v2725_v37 = vadd.f32 %v2693_v57, %v2595_v54  ;;  %v2890_v43 = vmul.f32 %v5509_v30, %v8120_v9 }
 0x31c   : > { %v3990_v36 = vadd.f32 %v5442_v55, %v3989_v44  ;;  %v3926_v35 = vadd.f32 0.00028619796, %v3925_v20  ;;  %v3937_v39 = vadd.f32 0.001143296, %v3936_v38  ;;  %v3414_v13 = vadd.f32 %v3382_v46, %v3316_v49  ;;  %v3142_v49 = vld [vmem:[#allocation2 + $0x90] sm:$0xff] }
 0x31d   : > { %v4389_v40 = vmul.f32 %v5444_v28, %v4388_v63  ;;  %v4398_v3 = vor.u32 1.1754944e-38, %v4397_v59  ;;  %v2912_v18 = vadd.f32 %v2880_v62, %v2813_v53  ;;  %v2823_v50 = vadd.f32 %v2791_v41, %v2725_v37  ;;  %v5510_v62 = vld [vmem:[#allocation2 + $0xf1] sm:$0xff]  ;;  %v3152_v53 = vld [vmem:[#allocation2 + $0x108] sm:$0xff] }
 0x31e   : > { %v3994_v34 = vsel %vm3993_vm6, %v5442_v55, %v3990_v36  ;;  %v3927_v54 = vmul.f32 %v3926_v35, %v8523_v0  ;;  %v3938_v60 = vmul.f32 %v3937_v39, %v8523_v0  ;;  %v3450_v15 = vmul.f32 %v8248_v45, %v3414_v13  ;;  %v3348_v13 = vld [vmem:[#allocation2 + $0x10a] sm:$0xff] }
 0x31f   : > { %v3999_v24 = vsel %vm8495_vm2, %v3998_v8, %v3994_v34  ;;  %v4390_v12 = vadd.f32 %v5444_v28, %v4389_v40  ;;  %v2978_v59 = vmul.f32 %v8394_v1, %v8031_v25  ;;  %v2922_v55 = vadd.f32 %v2890_v43, %v2823_v50  ;;  %v3250_v43 = vld [vmem:[#allocation2 + $0x109] sm:$0xff] }
 0x320   : > { %v4000_v44 = vmul.f32 %v3999_v24, %v8469_v47  ;;  %v3928_v5 = vadd.f32 0.0036580483, %v3927_v54  ;;  %v3939_v8 = vadd.f32 0.014752088, %v3938_v60  ;;  %v2988_v17 = vmul.f32 %v5510_v62, %v8394_v1  ;;  %v8568_v60 = vld [vmem:[#allocation2 + $0x50] sm:$0xff] }
 0x321   : > { %v4394_v46 = vsel %vm4393_vm7, %v5444_v28, %v4390_v12  ;;  %v8550_v41 = vadd.f32 %v8277_v27, %v3450_v15  ;;  %v3076_v14 = vmul.f32 %v8401_v7, %v8066_v4  ;;  %v3010_v28 = vadd.f32 %v2978_v59, %v2912_v18  ;;  %v8575_v59 = vld [vmem:[#allocation2 + $0x51] sm:$0xff] }
 0x322   : > { %v5243_v57 = vclamps-f32 %v4000_v44, 1.0  ;;  %v4399_v47 = vsel %vm8519_vm5, %v4398_v3, %v4394_v46  ;;  %v3929_v25 = vmul.f32 %v3928_v5, %v8523_v0  ;;  %v3940_v50 = vmul.f32 %v3939_v8, %v8523_v0  ;;  %v5511_v3 = vld [vmem:[#allocation2 + $0xf2] sm:$0xff] }
 0x323   : > { %v4400_v63 = vmul.f32 %v4399_v47, %v8479_v16  ;;  %v8558_v38 = vmul.f32 0.70710677, %v8550_v41  ;;  %v3020_v42 = vadd.f32 %v2988_v17, %v2922_v55  ;;  %v3086_v36 = vmul.f32 %v5511_v3, %v8401_v7  ;;  %v3240_v8 = vld [vmem:[#allocation2 + $0x91] sm:$0xff] }
 0x324   : > { %v4853_v20 = vadd.f32 1.0, %v5243_v57  ;;  %v3930_v30 = vadd.f32 0.05243302, %v3929_v25  ;;  %v3941_v4 = vadd.f32 0.112945676, %v3940_v50  ;;  %v3175_v16 = vmul.f32 %v8408_v52, %v3142_v49  ;;  %v3338_v49 = vld [vmem:[#allocation2 + $0x92] sm:$0xff] }
 0x325   : > { %v5253_v37 = vclamps-f32 %v4400_v63, 1.0  ;;  %v3519_v18 = vmul.f32 0.5, %v8283_v19  ;;  %v4323_v35 = vmul.f32 %v8558_v38, %v8558_v38  ;;  %v3108_v39 = vadd.f32 %v3076_v14, %v3010_v28  ;;  %v8587_v3 = vld [vmem:[#allocation2 + $0x52] sm:$0xff] }
 0x326   : > { %v4885_v40 = vmul.f32 %v4853_v20, %v8464_v56  ;;  %v3931_v24 = vmul.f32 %v3930_v30, %v8523_v0  ;;  %v3942_v12 = vmul.f32 %v3941_v4, %v8523_v0  ;;  %v3118_v54 = vadd.f32 %v3086_v36, %v3020_v42 }
 0x327   : > { %v4863_v34 = vadd.f32 1.0, %v5253_v37  ;;  %v8571_v44 = vmin.f32 %v4323_v35, 16.0  ;;  %v3207_v56 = vadd.f32 %v3175_v16, %v3108_v39  ;;  %v3185_v19 = vmul.f32 %v8408_v52, %v3152_v53 }
 0x328   : > { %5270 = vmatpush.xpose.msk.msrb.mxu1 %vm2469_vm8, %v4885_v40  ;;  %v3283_v15 = vmul.f32 %v8421_v29, %v3250_v43  ;;  %v3932_v46 = vadd.f32 0.18741608, %v3931_v24  ;;  %v3943_v5 = vadd.f32 0.4994258, %v3942_v12  ;;  %v3381_v62 = vmul.f32 %v8436_v2, %v3348_v13 }
 0x329   : > { %v4895_v55 = vmul.f32 %v4863_v34, %v3519_v18  ;;  %v4325_v17 = vmul.f32 2.1237322e-06, %v8571_v44  ;;  %v4336_v57 = vmul.f32 3.8918573e-05, %v8571_v44  ;;  %v3217_v47 = vadd.f32 %v3185_v19, %v3118_v54 }
 0x32a   : > { %v2584_v14 = vmul.f32 %v8315_v33, %v8568_v60  ;;  %v3944_v63 = vmul.f32 %v3943_v5, %v8523_v0  ;;  %v2682_v25 = vmul.f32 %v8322_v11, %v8575_v59  ;;  %v3273_v20 = vmul.f32 %v8421_v29, %v3240_v8 }
 0x32b   : > { %5293 = vmatpush.xpose.msk.msra.mxu2 %vm2469_vm8, %v4895_v55  ;;  %v4326_v50 = vadd.f32 0.00028619796, %v4325_v17  ;;  %v4337_v28 = vadd.f32 0.001143296, %v4336_v57  ;;  %v3315_v42 = vadd.f32 %v3283_v15, %v3217_v47  ;;  %v3933_v36 = vmul.f32 %v3932_v46, %v8523_v0  ;;  %v3141_v46 = vld [vmem:[#allocation2 + $0x80] sm:$0xff] }
 0x32c   : > { %v8590_v53 = vadd.f32 1.0, %v3944_v63  ;;  %v3371_v37 = vmul.f32 %v8436_v2, %v3338_v49  ;;  %v2714_v30 = vadd.f32 %v2682_v25, %v2584_v14  ;;  %v3305_v43 = vadd.f32 %v3273_v20, %v3207_v56  ;;  %v3337_v17 = vld [vmem:[#allocation2 + $0x82] sm:$0xff] }
 0x32d   : > { %v4327_v4 = vmul.f32 %v4326_v50, %v8571_v44  ;;  %v4338_v16 = vmul.f32 %v4337_v28, %v8571_v44  ;;  %v3413_v40 = vadd.f32 %v3381_v62, %v3315_v42  ;;  %v2780_v18 = vmul.f32 %v8346_v22, %v8587_v3 }
 0x32e   : > { %5445 = vrcp.f32 %v8590_v53  ;;  %v2879_v35 = vmul.f32 %v8120_v9, %v8294_v31  ;;  %v3957_v0 = vand.u32 2147483648, %v8590_v53  ;;  %v3403_v34 = vadd.f32 %v3371_v37, %v3305_v43  ;;  %v3239_v9 = vld [vmem:[#allocation2 + $0x81] sm:$0xff] }
 0x32f   : > { %v4328_v39 = vadd.f32 0.0036580483, %v4327_v4  ;;  %v4339_v13 = vadd.f32 0.014752088, %v4338_v16  ;;  %v3934_v24 = vadd.f32 1.1283791, %v3933_v36  ;;  %v3449_v12 = vmul.f32 %v8248_v45, %v3413_v40 }
 0x330   : > { %v2812_v54 = vadd.f32 %v2780_v18, %v2714_v30  ;;  %v3439_v15 = vmul.f32 %v8248_v45, %v3403_v34  ;;  %v2977_v55 = vmul.f32 %v8394_v1, %v8296_v58  ;;  %v3955_v31 = vand.u32 2147483647, %v8590_v53  ;;  %v2561_v58 = vld [vmem:[#allocation2 + $0xc8] sm:$0xff] }
 0x331   : > { %v4329_v56 = vmul.f32 %v4328_v39, %v8571_v44  ;;  %v4340_v19 = vmul.f32 %v4339_v13, %v8571_v44  ;;  %v8609_v5 = vadd.f32 %v8277_v27, %v3449_v12  ;;  %v3075_v62 = vmul.f32 %v8401_v7, %v8326_v26  ;;  %v2659_v26 = vld [vmem:[#allocation2 + $0xc9] sm:$0xff] }
 0x332   : > { %v2911_v8 = vadd.f32 %v2879_v35, %v2812_v54  ;;  %vm3951_vm10 = vweird.f32 %v8590_v53  ;;  %v3958_v57 = vor.u32 1.1754944e-38, %v3957_v0  ;;  %v8615_v63 = vadd.f32 %v8277_v27, %v3439_v15  ;;  %v2757_v18 = vld [vmem:[#allocation2 + $0xca] sm:$0xff] }
 0x333   : > { %v4330_v47 = vadd.f32 0.05243302, %v4329_v56  ;;  %v4341_v14 = vadd.f32 0.112945676, %v4340_v19  ;;  %v8618_v50 = vmul.f32 0.70710677, %v8609_v5  ;;  %v3174_v20 = vmul.f32 %v8408_v52, %v3141_v46 }
 0x334   : > { %v5446_v25 = vpop.eup %5445  ;;  %v3009_v28 = vadd.f32 %v2977_v55, %v2911_v8  ;;  %v3272_v49 = vmul.f32 %v8421_v29, %v3239_v9  ;;  %v3370_v30 = vmul.f32 %v8436_v2, %v3337_v17  ;;  %v8627_v4 = vmul.f32 0.70710677, %v8615_v63 }
 0x335   : > { %v3947_v42 = vmul.f32 %v5446_v25, %v8590_v53  ;;  %v4331_v36 = vmul.f32 %v4330_v47, %v8571_v44  ;;  %v4342_v37 = vmul.f32 %v4341_v14, %v8571_v44  ;;  %v4283_v16 = vmul.f32 %v8618_v50, %v8618_v50 }
 0x336   : > { %v3107_v43 = vadd.f32 %v3075_v62, %v3009_v28  ;;  %v2594_v40 = vmul.f32 %v8315_v33, %v2561_v58  ;;  %v2692_v13 = vmul.f32 %v8322_v11, %v2659_v26  ;;  %vm3952_vm11 = vweird.f32 %v5446_v25 }
 0x337   : > { %v3948_v35 = vsub.f32 1.0, %v3947_v42  ;;  %v4332_v0 = vadd.f32 0.18741608, %v4331_v36  ;;  %v4343_v39 = vadd.f32 0.4994258, %v4342_v37  ;;  %v3883_v34 = vmul.f32 %v8627_v4, %v8627_v4  ;;  %vm3953_vm12 = vmor %vm3951_vm10, %vm3952_vm11 }
 0x338   : > { %v8635_v12 = vmin.f32 %v4283_v16, 16.0  ;;  %v3206_v54 = vadd.f32 %v3174_v20, %v3107_v43  ;;  %v2790_v55 = vmul.f32 %v8346_v22, %v2757_v18  ;;  %v2724_v62 = vadd.f32 %v2692_v13, %v2594_v40 }
 0x339   : > { %v3949_v56 = vmul.f32 %v5446_v25, %v3948_v35  ;;  %v4333_v19 = vmul.f32 %v4332_v0, %v8571_v44  ;;  %v4344_v15 = vmul.f32 %v4343_v39, %v8571_v44  ;;  %v8640_v46 = vmin.f32 %v3883_v34, 16.0  ;;  %v8671_v34 = vld [vmem:[%s9316_s4 + $0x3] ss:$0 sm:$0xff] }
 0x33a   : > { %v4285_v9 = vmul.f32 2.1237322e-06, %v8635_v12  ;;  %v3304_v8 = vadd.f32 %v3272_v49, %v3206_v54  ;;  %v4296_v58 = vmul.f32 3.8918573e-05, %v8635_v12  ;;  %v3935_v42 = vmul.f32 %v3934_v24, %v8486_v21 }
 0x33b   : > { %v3950_v17 = vadd.f32 %v5446_v25, %v3949_v56  ;;  %v4334_v47 = vadd.f32 1.1283791, %v4333_v19  ;;  %v8643_v14 = vadd.f32 1.0, %v4344_v15  ;;  %v3885_v44 = vmul.f32 2.1237322e-06, %v8640_v46 }
 0x33c   : > { %v3896_v28 = vmul.f32 3.8918573e-05, %v8640_v46  ;;  %v4286_v20 = vadd.f32 0.00028619796, %v4285_v9  ;;  %v3402_v26 = vadd.f32 %v3370_v30, %v3304_v8  ;;  %vm3956_vm13 = vcmp.eq.f32.partialorder %v3955_v31, 8.507059e+37 }
 0x33d   : > { %v3954_v49 = vsel %vm3953_vm12, %v5446_v25, %v3950_v17  ;;  %5447 = vrcp.f32 %v8643_v14  ;;  %v3508_v36 = vmul.f32 0.5, %v8472_v61  ;;  %v3886_v16 = vadd.f32 0.00028619796, %v3885_v44 }
 0x33e   : > { %v3959_v37 = vsel %vm3956_vm13, %v3958_v57, %v3954_v49  ;;  %v2822_v43 = vadd.f32 %v2790_v55, %v2724_v62  ;;  %v3897_v53 = vadd.f32 0.001143296, %v3896_v28  ;;  %v4287_v18 = vmul.f32 %v4286_v20, %v8635_v12 }
 0x33f   : > { %v3960_v40 = vmul.f32 %v3959_v37, %v3935_v42  ;;  %v4297_v35 = vadd.f32 0.001143296, %v4296_v58  ;;  %v8656_v0 = vmul.f32 %v4334_v47, %v8558_v38  ;;  %v4355_v30 = vand.u32 2147483647, %v8643_v14 }
 0x340   : > { %v3887_v21 = vmul.f32 %v3886_v16, %v8640_v46  ;;  %v3438_v24 = vmul.f32 %v8248_v45, %v3402_v26  ;;  %v3898_v61 = vmul.f32 %v3897_v53, %v8640_v46  ;;  %v4288_v57 = vadd.f32 0.0036580483, %v4287_v18 }
 0x341   : > { %v5242_v31 = vclamps-f32 %v3960_v40, 1.0  ;;  %v4298_v25 = vmul.f32 %v4297_v35, %v8635_v12  ;;  %vm4351_vm14 = vweird.f32 %v8643_v14  ;;  %v4357_v39 = vand.u32 2147483648, %v8643_v14  ;;  %v3151_v35 = vld [vmem:[#allocation2 + $0xf8] sm:$0xff] }
 0x342   : > { %v3888_v13 = vadd.f32 0.0036580483, %v3887_v21  ;;  %v8666_v38 = vadd.f32 %v8277_v27, %v3438_v24  ;;  %v2889_v45 = vmul.f32 %v8671_v34, %v8425_v10  ;;  %v3899_v19 = vadd.f32 0.014752088, %v3898_v61 }
 0x343   : > { %v5448_v54 = vpop.eup %5447  ;;  %v4852_v56 = vadd.f32 1.0, %v5242_v31  ;;  %v4289_v15 = vmul.f32 %v4288_v57, %v8635_v12  ;;  %v4299_v55 = vadd.f32 0.014752088, %v4298_v25  ;;  %vm8677_vm9 = vcmp.eq.f32.partialorder %v4355_v30, 8.507059e+37 }
 0x344   : > { %v4347_v9 = vmul.f32 %v5448_v54, %v8643_v14  ;;  %vm4352_vm15 = vweird.f32 %v5448_v54  ;;  %v3889_v62 = vmul.f32 %v3888_v13, %v8640_v46  ;;  %v2987_v17 = vmul.f32 %v8394_v1, %v8427_v23 }
 0x345   : > { %v4884_v47 = vmul.f32 %v4852_v56, %v3508_v36  ;;  %v3900_v10 = vmul.f32 %v3899_v19, %v8640_v46  ;;  %v4290_v58 = vadd.f32 0.05243302, %v4289_v15  ;;  %v4300_v44 = vmul.f32 %v4299_v55, %v8635_v12  ;;  %vm4353_vm2 = vmor %vm4351_vm14, %vm4352_vm15  ;;  %v3249_v56 = vld [vmem:[#allocation2 + $0xf9] sm:$0xff] }
 0x346   : > { %v4348_v28 = vsub.f32 1.0, %v4347_v9  ;;  %v3890_v20 = vadd.f32 0.05243302, %v3889_v62  ;;  %v8687_v26 = vmul.f32 0.70710677, %v8666_v38  ;;  %v2921_v42 = vadd.f32 %v2889_v45, %v2822_v43 }
 0x347   : > { %5271 = vmatpush.xpose.msk.msrb.mxu1 %vm2469_vm8, %v4884_v47  ;;  %v3901_v49 = vadd.f32 0.112945676, %v3900_v10  ;;  %v4291_v37 = vmul.f32 %v4290_v58, %v8635_v12  ;;  %v4301_v16 = vadd.f32 0.112945676, %v4300_v44  ;;  %v3085_v23 = vmul.f32 %v8401_v7, %v8441_v32 }
 0x348   : > { %v4349_v36 = vmul.f32 %v5448_v54, %v4348_v28  ;;  %v3891_v40 = vmul.f32 %v3890_v20, %v8640_v46  ;;  %v3843_v53 = vmul.f32 %v8687_v26, %v8687_v26  ;;  %v3019_v18 = vadd.f32 %v2987_v17, %v2921_v42 }
 0x349   : > { %v4358_v30 = vor.u32 1.1754944e-38, %v4357_v39  ;;  %v3902_v43 = vmul.f32 %v3901_v49, %v8640_v46  ;;  %v4292_v21 = vadd.f32 0.18741608, %v4291_v37  ;;  %v4302_v24 = vmul.f32 %v4301_v16, %v8635_v12 }
 0x34a   : > { %v4350_v31 = vadd.f32 %v5448_v54, %v4349_v36  ;;  %v3892_v61 = vadd.f32 0.18741608, %v3891_v40  ;;  %v8698_v57 = vmin.f32 %v3843_v53, 16.0  ;;  %v3117_v25 = vadd.f32 %v3085_v23, %v3019_v18  ;;  %v3347_v36 = vld [vmem:[#allocation2 + $0xfa] sm:$0xff]  ;;  %v8729_v40 = vld [vmem:[#allocation2 + $0x48] sm:$0xff] }
 0x34b   : > { %v3903_v32 = vadd.f32 0.4994258, %v3902_v43  ;;  %v4293_v13 = vmul.f32 %v4292_v21, %v8635_v12  ;;  %v4303_v45 = vadd.f32 0.4994258, %v4302_v24  ;;  %v3184_v39 = vmul.f32 %v8408_v52, %v3151_v35 }
 0x34c   : > { %v4354_v19 = vsel %vm4353_vm2, %v5448_v54, %v4350_v31  ;;  %v3893_v15 = vmul.f32 %v3892_v61, %v8640_v46  ;;  %v3845_v55 = vmul.f32 2.1237322e-06, %v8698_v57  ;;  %v3856_v9 = vmul.f32 3.8918573e-05, %v8698_v57 }
 0x34d   : > { %v4359_v62 = vsel %vm8677_vm9, %v4358_v30, %v4354_v19  ;;  %v3904_v14 = vmul.f32 %v3903_v32, %v8640_v46  ;;  %v4304_v17 = vmul.f32 %v4303_v45, %v8635_v12  ;;  %v3282_v44 = vmul.f32 %v8421_v29, %v3249_v56  ;;  %v8738_v30 = vld [vmem:[#allocation2 + $0x49] sm:$0xff] }
 0x34e   : > { %v4360_v47 = vmul.f32 %v4359_v62, %v8656_v0  ;;  %v3846_v10 = vadd.f32 0.00028619796, %v3845_v55  ;;  %v3857_v58 = vadd.f32 0.001143296, %v3856_v9  ;;  %v3894_v54 = vadd.f32 1.1283791, %v3893_v15 }
 0x34f   : > { %v8714_v28 = vadd.f32 1.0, %v3904_v14  ;;  %v4294_v20 = vadd.f32 1.1283791, %v4293_v13  ;;  %v8716_v42 = vadd.f32 1.0, %v4304_v17  ;;  %v3216_v46 = vadd.f32 %v3184_v39, %v3117_v25 }
 0x350   : > { %v5252_v49 = vclamps-f32 %v4360_v47, 1.0  ;;  %v3847_v8 = vmul.f32 %v3846_v10, %v8698_v57  ;;  %v3858_v37 = vmul.f32 %v3857_v58, %v8698_v57  ;;  %v3518_v12 = vmul.f32 0.5, %v8550_v41 }
 0x351   : > { %5449 = vrcp.f32 %v8714_v28  ;;  %v8723_v16 = vmul.f32 0.5, %v8615_v63  ;;  %v8726_v23 = vmul.f32 0.5, %v8609_v5  ;;  %v8732_v53 = vmul.f32 %v3894_v54, %v8627_v4  ;;  %v8740_v63 = vld [vmem:[#allocation2 + $0x4a] sm:$0xff]  ;;  %v8773_v54 = vld [vmem:[%s9317_s5] ss:$0 sm:$0xff] }
 0x352   : > { %v4862_v0 = vadd.f32 1.0, %v5252_v49  ;;  %5451 = vrcp.f32 %v8716_v42  ;;  %v3917_v18 = vand.u32 2147483648, %v8714_v28  ;;  %v8736_v41 = vmul.f32 %v4294_v20, %v8618_v50 }
 0x353   : > { %v3848_v35 = vadd.f32 0.0036580483, %v3847_v8  ;;  %v3915_v43 = vand.u32 2147483647, %v8714_v28  ;;  %v3859_v21 = vadd.f32 0.014752088, %v3858_v37  ;;  %v3314_v24 = vadd.f32 %v3282_v44, %v3216_v46 }
 0x354   : > { %v4894_v5 = vmul.f32 %v4862_v0, %v3518_v12  ;;  %v4315_v31 = vand.u32 2147483647, %v8716_v42  ;;  %v3380_v61 = vmul.f32 %v8436_v2, %v3347_v36  ;;  %v2583_v50 = vmul.f32 %v8315_v33, %v8729_v40 }
 0x355   : > { %v3849_v4 = vmul.f32 %v3848_v35, %v8698_v57  ;;  %vm3911_vm3 = vweird.f32 %v8714_v28  ;;  %v4317_v25 = vand.u32 2147483648, %v8716_v42  ;;  %v3860_v32 = vmul.f32 %v3859_v21, %v8698_v57  ;;  %v3238_v21 = vld [vmem:[#allocation2 + $0x79] sm:$0xff] }
 0x356   : > { %5294 = vmatpush.xpose.msk.msra.mxu2 %vm2469_vm8, %v4894_v5  ;;  %v2681_v13 = vmul.f32 %v8322_v11, %v8738_v30  ;;  %v2779_v45 = vmul.f32 %v8346_v22, %v8740_v63  ;;  %v3918_v56 = vor.u32 1.1754944e-38, %v3917_v18  ;;  %vm4311_vm4 = vweird.f32 %v8716_v42  ;;  %v3140_v18 = vld [vmem:[#allocation2 + $0x78] sm:$0xff] }
 0x357   : > { %v5450_v39 = vpop.eup %5449  ;;  %v3850_v19 = vadd.f32 0.05243302, %v3849_v4  ;;  %v3412_v15 = vadd.f32 %v3380_v61, %v3314_v24  ;;  %vm8758_vm5 = vcmp.eq.f32.partialorder %v3915_v43, 8.507059e+37  ;;  %v3861_v14 = vadd.f32 0.112945676, %v3860_v32  ;;  %v2560_v24 = vld [vmem:[#allocation2 + $0xc0] sm:$0xff] }
 0x358   : > { %v5452_v55 = vpop.eup %5451  ;;  %v3907_v9 = vmul.f32 %v5450_v39, %v8714_v28  ;;  %v2713_v17 = vadd.f32 %v2681_v13, %v2583_v50  ;;  %v2878_v47 = vmul.f32 %v8671_v34, %v8475_v51  ;;  %vm8765_vm6 = vcmp.eq.f32.partialorder %v4315_v31, 8.507059e+37  ;;  %v2658_v32 = vld [vmem:[#allocation2 + $0xc1] sm:$0xff] }
 0x359   : > { %v4307_v10 = vmul.f32 %v5452_v55, %v8716_v42  ;;  %v3851_v44 = vmul.f32 %v3850_v19, %v8698_v57  ;;  %v3448_v20 = vmul.f32 %v8773_v54, %v3412_v15  ;;  %v4318_v8 = vor.u32 1.1754944e-38, %v4317_v25 }
 0x35a   : > { %v3908_v49 = vsub.f32 1.0, %v3907_v9  ;;  %v3862_v37 = vmul.f32 %v3861_v14, %v8698_v57  ;;  %v2811_v51 = vadd.f32 %v2779_v45, %v2713_v17  ;;  %v2976_v36 = vmul.f32 %v8394_v1, %v8483_v6  ;;  %v3336_v17 = vld [vmem:[#allocation2 + $0x7a] sm:$0xff] }
 0x35b   : > { %v4308_v46 = vsub.f32 1.0, %v4307_v10  ;;  %v3852_v12 = vadd.f32 0.18741608, %v3851_v44  ;;  %v8778_v0 = vadd.f32 %v8277_v27, %v3448_v20  ;;  %vm3912_vm7 = vweird.f32 %v5450_v39 }
 0x35c   : > { %v3909_v35 = vmul.f32 %v5450_v39, %v3908_v49  ;;  %v3863_v5 = vadd.f32 0.4994258, %v3862_v37  ;;  %v2910_v43 = vadd.f32 %v2878_v47, %v2811_v51  ;;  %vm4312_vm10 = vweird.f32 %v5452_v55  ;;  %vm3913_vm11 = vmor %vm3911_vm3, %vm3912_vm7  ;;  %v2756_v47 = vld [vmem:[#allocation2 + $0xc2] sm:$0xff] }
 0x35d   : > { %v4309_v31 = vmul.f32 %v5452_v55, %v4308_v46  ;;  %v3853_v4 = vmul.f32 %v3852_v12, %v8698_v57  ;;  %v8784_v61 = vmul.f32 0.70710677, %v8778_v0  ;;  %v3074_v6 = vmul.f32 %v8401_v7, %v8490_v48  ;;  %vm4313_vm12 = vmor %vm4311_vm4, %vm4312_vm10 }
 0x35e   : > { %v3910_v50 = vadd.f32 %v5450_v39, %v3909_v35  ;;  %v3864_v27 = vmul.f32 %v3863_v5, %v8698_v57  ;;  %v3173_v25 = vmul.f32 %v8408_v52, %v3140_v18  ;;  %v3271_v19 = vmul.f32 %v8421_v29, %v3238_v21 }
 0x35f   : > { %v4310_v13 = vadd.f32 %v5452_v55, %v4309_v31  ;;  %v4243_v45 = vmul.f32 %v8784_v61, %v8784_v61  ;;  %v2593_v15 = vmul.f32 %v8315_v33, %v2560_v24  ;;  %v3854_v57 = vadd.f32 1.1283791, %v3853_v4 }
 0x360   : > { %v3914_v9 = vsel %vm3913_vm11, %v5450_v39, %v3910_v50  ;;  %v8798_v48 = vadd.f32 1.0, %v3864_v27  ;;  %v3008_v14 = vadd.f32 %v2976_v36, %v2910_v43  ;;  %v2691_v20 = vmul.f32 %v8322_v11, %v2658_v32  ;;  %v9469_v43 = vld [vmem:[#allocation10_spill] sm:$0xff]  ;;  %v9470_v27 = vld [vmem:[#allocation9_spill] sm:$0xff] }
 0x361   : > { %v3919_v28 = vsel %vm8758_vm5, %v3918_v56, %v3914_v9  ;;  %v4314_v10 = vsel %vm4313_vm12, %v5452_v55, %v4310_v13  ;;  %v8802_v44 = vmin.f32 %v4243_v45, 16.0  ;;  %v3369_v62 = vmul.f32 %v8436_v2, %v3336_v17 }
 0x362   : > { %v3920_v33 = vmul.f32 %v3919_v28, %v8732_v53  ;;  %v4319_v42 = vsel %vm8765_vm6, %v4318_v8, %v4314_v10  ;;  %5453 = vrcp.f32 %v8798_v48  ;;  %v3106_v39 = vadd.f32 %v3074_v6, %v3008_v14  ;;  %v9471_v14 = vld [vmem:[#allocation5_spill] sm:$0xff] }
 0x363   : > { %v4320_v49 = vmul.f32 %v4319_v42, %v8736_v41  ;;  %v4245_v37 = vmul.f32 2.1237322e-06, %v8802_v44  ;;  %v2789_v56 = vmul.f32 %v8346_v22, %v2756_v47  ;;  %v8814_v51 = vmul.f32 %v3854_v57, %v8687_v26  ;;  %v3248_v47 = vld [vmem:[#allocation2 + $0xf1] sm:$0xff]  ;;  %v8846_v42 = vld [vmem:[%s9318_s6] ss:$0 sm:$0xff] }
 0x364   : > { %v5241_v55 = vclamps-f32 %v3920_v33, 1.0  ;;  %v4256_v11 = vmul.f32 3.8918573e-05, %v8802_v44  ;;  %v3205_v53 = vadd.f32 %v3173_v25, %v3106_v39  ;;  %v3877_v8 = vand.u32 2147483648, %v8798_v48  ;;  %v3150_v25 = vld [vmem:[#allocation2 + $0xf0] sm:$0xff] }
 0x365   : > { %v5251_v58 = vclamps-f32 %v4320_v49, 1.0  ;;  %v4246_v46 = vadd.f32 0.00028619796, %v4245_v37  ;;  %v2723_v12 = vadd.f32 %v2691_v20, %v2593_v15  ;;  %v3875_v41 = vand.u32 2147483647, %v8798_v48  ;;  %v8829_v15 = vld [vmem:[#allocation2 + $0x38] sm:$0xff] }
 0x366   : > { %v4851_v36 = vadd.f32 1.0, %v5241_v55  ;;  %v4257_v18 = vadd.f32 0.001143296, %v4256_v11  ;;  %v3303_v35 = vadd.f32 %v3271_v19, %v3205_v53  ;;  %vm3871_vm13 = vweird.f32 %v8798_v48  ;;  %v8840_v20 = vld [vmem:[#allocation2 + $0x3a] sm:$0xff]  ;;  %v3346_v55 = vld [vmem:[#allocation2 + $0xf2] sm:$0xff] }
 0x367   : > { %v4861_v5 = vadd.f32 1.0, %v5251_v58  ;;  %v4247_v22 = vmul.f32 %v4246_v46, %v8802_v44  ;;  %v2821_v26 = vadd.f32 %v2789_v56, %v2723_v12  ;;  %v2888_v21 = vmul.f32 %v8671_v34, %v9469_v43  ;;  %v8854_v49 = vld [vmem:[%s9316_s4] ss:$0 sm:$0xff]  ;;  %v8862_v11 = vld [vmem:[%s9316_s4 + $0x1] ss:$0 sm:$0xff] }
 0x368   : > { %v5454_v24 = vpop.eup %5453  ;;  %v4883_v31 = vmul.f32 %v4851_v36, %v8723_v16  ;;  %v4258_v4 = vmul.f32 %v4257_v18, %v8802_v44  ;;  %v3401_v50 = vadd.f32 %v3369_v62, %v3303_v35  ;;  %v2986_v6 = vmul.f32 %v8394_v1, %v9470_v27  ;;  %v8835_v1 = vld [vmem:[#allocation2 + $0x39] sm:$0xff]  ;;  %v8872_v12 = vld [vmem:[%s9316_s4 + $0x2] ss:$0 sm:$0xff] }
 0x369   : > { %v4893_v32 = vmul.f32 %v4861_v5, %v8726_v23  ;;  %v3867_v13 = vmul.f32 %v5454_v24, %v8798_v48  ;;  %v3878_v45 = vor.u32 1.1754944e-38, %v3877_v8  ;;  %v4248_v19 = vadd.f32 0.0036580483, %v4247_v22 }
 0x36a   : > { %5272 = vmatpush.xpose.msk.msrb.mxu1 %vm2469_vm8, %v4883_v31  ;;  %v4259_v9 = vadd.f32 0.014752088, %v4258_v4  ;;  %v3437_v16 = vmul.f32 %v8773_v54, %v3401_v50  ;;  %v2920_v57 = vadd.f32 %v2888_v21, %v2821_v26  ;;  %v3084_v17 = vmul.f32 %v8401_v7, %v9471_v14 }
 0x36b   : > { %5295 = vmatpush.xpose.msk.msra.mxu2 %vm2469_vm8, %v4893_v32  ;;  %v3868_v23 = vsub.f32 1.0, %v3867_v13  ;;  %vm3872_vm14 = vweird.f32 %v5454_v24  ;;  %v4249_v28 = vmul.f32 %v4248_v19, %v8802_v44  ;;  %v3183_v10 = vmul.f32 %v8408_v52, %v3150_v25  ;;  %v8893_v19 = vld [vmem:[%s9316_s4 + $0x4] ss:$0 sm:$0xff] }
 0x36c   : > { %v4260_v33 = vmul.f32 %v4259_v9, %v8802_v44  ;;  %v8849_v7 = vadd.f32 %v8846_v42, %v3437_v16  ;;  %v3018_v39 = vadd.f32 %v2986_v6, %v2920_v57  ;;  %v2582_v52 = vmul.f32 %v8854_v49, %v8829_v15  ;;  %vm3873_vm15 = vmor %vm3871_vm13, %vm3872_vm14  ;;  %v8900_v16 = vld [vmem:[#allocation2 + $0x30] sm:$0xff] }
 0x36d   : > { %v3869_v37 = vmul.f32 %v5454_v24, %v3868_v23  ;;  %v4250_v62 = vadd.f32 0.05243302, %v4249_v28  ;;  %v3281_v56 = vmul.f32 %v8421_v29, %v3248_v47  ;;  %v2680_v53 = vmul.f32 %v8862_v11, %v8835_v1 }
 0x36e   : > { %v4261_v58 = vadd.f32 0.112945676, %v4260_v33  ;;  %v8867_v8 = vmul.f32 0.70710677, %v8849_v7  ;;  %v3116_v46 = vadd.f32 %v3084_v17, %v3018_v39  ;;  %v2778_v29 = vmul.f32 %v8872_v12, %v8840_v20 }
 0x36f   : > { %v3870_v36 = vadd.f32 %v5454_v24, %v3869_v37  ;;  %v4251_v18 = vmul.f32 %v4250_v62, %v8802_v44  ;;  %v2712_v35 = vadd.f32 %v2680_v53, %v2582_v52  ;;  %v2877_v5 = vmul.f32 %v8671_v34, %v8568_v60  ;;  %v8917_v37 = vld [vmem:[%s9316_s4 + $0x5] ss:$0 sm:$0xff] }
 0x370   : > { %v4262_v22 = vmul.f32 %v4261_v58, %v8802_v44  ;;  %v3803_v26 = vmul.f32 %v8867_v8, %v8867_v8  ;;  %v3215_v43 = vadd.f32 %v3183_v10, %v3116_v46  ;;  %v3379_v21 = vmul.f32 %v8436_v2, %v3346_v55 }
 0x371   : > { %v3874_v31 = vsel %vm3873_vm15, %v5454_v24, %v3870_v36  ;;  %vm3876_vm9 = vcmp.eq.f32.partialorder %v3875_v41, 8.507059e+37  ;;  %v4252_v4 = vadd.f32 0.18741608, %v4251_v18  ;;  %v2810_v50 = vadd.f32 %v2778_v29, %v2712_v35  ;;  %v8926_v29 = vld [vmem:[#allocation2 + $0x32] sm:$0xff] }
 0x372   : > { %v3879_v27 = vsel %vm3876_vm9, %v3878_v45, %v3874_v31  ;;  %v4263_v6 = vadd.f32 0.4994258, %v4262_v22  ;;  %v8886_v25 = vmin.f32 %v3803_v26, 16.0  ;;  %v3313_v60 = vadd.f32 %v3281_v56, %v3215_v43  ;;  %v3237_v56 = vld [vmem:[#allocation2 + $0x69] sm:$0xff] }
 0x373   : > { %v3880_v48 = vmul.f32 %v3879_v27, %v8814_v51  ;;  %v4253_v32 = vmul.f32 %v4252_v4, %v8802_v44  ;;  %v2909_v13 = vadd.f32 %v2877_v5, %v2810_v50  ;;  %v2975_v2 = vmul.f32 %v8893_v19, %v8575_v59  ;;  %v8902_v51 = vld [vmem:[#allocation2 + $0x31] sm:$0xff]  ;;  %v8935_v5 = vld [vmem:[%s9316_s4 + $0x6] ss:$0 sm:$0xff] }
 0x374   : > { %v4264_v41 = vmul.f32 %v4263_v6, %v8802_v44  ;;  %v3805_v24 = vmul.f32 2.1237322e-06, %v8886_v25  ;;  %v3816_v45 = vmul.f32 3.8918573e-05, %v8886_v25  ;;  %v3411_v9 = vadd.f32 %v3379_v21, %v3313_v60  ;;  %v8942_v21 = vld [vmem:[%s9316_s4 + $0x7] ss:$0 sm:$0xff] }
 0x375   : > { %v5240_v57 = vclamps-f32 %v3880_v48, 1.0  ;;  %v4254_v14 = vadd.f32 1.1283791, %v4253_v32  ;;  %v3007_v17 = vadd.f32 %v2975_v2, %v2909_v13  ;;  %v3506_v44 = vmul.f32 0.5, %v8666_v38  ;;  %v3139_v38 = vld [vmem:[#allocation2 + $0x68] sm:$0xff] }
 0x376   : > { %v8904_v47 = vadd.f32 1.0, %v4264_v41  ;;  %v3806_v23 = vadd.f32 0.00028619796, %v3805_v24  ;;  %v3817_v28 = vadd.f32 0.001143296, %v3816_v45  ;;  %v3447_v59 = vmul.f32 %v8773_v54, %v3411_v9  ;;  %v3335_v31 = vld [vmem:[#allocation2 + $0x6a] sm:$0xff] }
 0x377   : > { %v4850_v10 = vadd.f32 1.0, %v5240_v57  ;;  %v2581_v33 = vmul.f32 %v8854_v49, %v8900_v16  ;;  %v2679_v39 = vmul.f32 %v8862_v11, %v8902_v51  ;;  %v3073_v62 = vmul.f32 %v8917_v37, %v8587_v3  ;;  %v8960_v45 = vld [vmem:[%s9316_s4 + $0x8] ss:$0 sm:$0xff] }
 0x378   : > { %5455 = vrcp.f32 %v8904_v47  ;;  %v4277_v52 = vand.u32 2147483648, %v8904_v47  ;;  %v3807_v53 = vmul.f32 %v3806_v23, %v8886_v25  ;;  %v3818_v58 = vmul.f32 %v3817_v28, %v8886_v25 }
 0x379   : > { %v4882_v55 = vmul.f32 %v4850_v10, %v3506_v44  ;;  %v8924_v46 = vadd.f32 %v8846_v42, %v3447_v59  ;;  %v8929_v36 = vmul.f32 %v4254_v14, %v8784_v61  ;;  %v4275_v18 = vand.u32 2147483647, %v8904_v47  ;;  %v3138_v14 = vld [vmem:[#allocation2 + $0x60] sm:$0xff] }
 0x37a   : > { %v3105_v35 = vadd.f32 %v3073_v62, %v3007_v17  ;;  %v3172_v22 = vmul.f32 %v8935_v5, %v3139_v38  ;;  %v3808_v26 = vadd.f32 0.0036580483, %v3807_v53  ;;  %v3819_v43 = vadd.f32 0.014752088, %v3818_v58  ;;  %v8977_v53 = vld [vmem:[#allocation2 + $0x20] sm:$0xff] }
 0x37b   : > { %5273 = vmatpush.xpose.msk.msrb.mxu1 %vm2469_vm8, %v4882_v55  ;;  %v3270_v61 = vmul.f32 %v8942_v21, %v3237_v56  ;;  %v2711_v4 = vadd.f32 %v2679_v39, %v2581_v33  ;;  %v8946_v50 = vmul.f32 0.70710677, %v8924_v46  ;;  %v2777_v6 = vmul.f32 %v8872_v12, %v8926_v29 }
 0x37c   : > { %v3204_v27 = vadd.f32 %v3172_v22, %v3105_v35  ;;  %v2876_v60 = vmul.f32 %v8671_v34, %v8729_v40  ;;  %vm4271_vm2 = vweird.f32 %v8904_v47  ;;  %v4278_v48 = vor.u32 1.1754944e-38, %v4277_v52 }
 0x37d   : > { %v3809_v32 = vmul.f32 %v3808_v26, %v8886_v25  ;;  %v3820_v13 = vmul.f32 %v3819_v43, %v8886_v25  ;;  %v4203_v41 = vmul.f32 %v8946_v50, %v8946_v50  ;;  %v3368_v9 = vmul.f32 %v8960_v45, %v3335_v31  ;;  %v8982_v31 = vld [vmem:[#allocation2 + $0x21] sm:$0xff] }
 0x37e   : > { %v5456_v2 = vpop.eup %5455  ;;  %v3302_v24 = vadd.f32 %v3270_v61, %v3204_v27  ;;  %v2809_v57 = vadd.f32 %v2777_v6, %v2711_v4  ;;  %vm8964_vm3 = vcmp.eq.f32.partialorder %v4275_v18, 8.507059e+37  ;;  %v2974_v44 = vmul.f32 %v8893_v19, %v8738_v30 }
 0x37f   : > { %v4267_v17 = vmul.f32 %v5456_v2, %v8904_v47  ;;  %v3810_v28 = vadd.f32 0.05243302, %v3809_v32  ;;  %v3821_v59 = vadd.f32 0.112945676, %v3820_v13  ;;  %v8970_v10 = vmin.f32 %v4203_v41, 16.0 }
 0x380   : > { %v3400_v33 = vadd.f32 %v3368_v9, %v3302_v24  ;;  %v2908_v39 = vadd.f32 %v2876_v60, %v2809_v57  ;;  %v3072_v52 = vmul.f32 %v8917_v37, %v8740_v63  ;;  %v3171_v55 = vmul.f32 %v8935_v5, %v3138_v14 }
 0x381   : > { %v4268_v62 = vsub.f32 1.0, %v4267_v17  ;;  %v3811_v38 = vmul.f32 %v3810_v28, %v8886_v25  ;;  %v3822_v56 = vmul.f32 %v3821_v59, %v8886_v25  ;;  %vm4272_vm4 = vweird.f32 %v5456_v2  ;;  %v3236_v17 = vld [vmem:[#allocation2 + $0x61] sm:$0xff] }
 0x382   : > { %v4205_v58 = vmul.f32 2.1237322e-06, %v8970_v10  ;;  %v4216_v18 = vmul.f32 3.8918573e-05, %v8970_v10  ;;  %v3436_v35 = vmul.f32 %v8773_v54, %v3400_v33  ;;  %v3006_v61 = vadd.f32 %v2974_v44, %v2908_v39  ;;  %vm4273_vm5 = vmor %vm4271_vm2, %vm4272_vm4  ;;  %v3334_v28 = vld [vmem:[#allocation2 + $0x62] sm:$0xff] }
 0x383   : > { %v4269_v22 = vmul.f32 %v5456_v2, %v4268_v62  ;;  %v3812_v26 = vadd.f32 0.18741608, %v3811_v38  ;;  %v3823_v43 = vadd.f32 0.4994258, %v3822_v56  ;;  %v2580_v60 = vmul.f32 %v8854_v49, %v8977_v53 }
 0x384   : > { %v4206_v4 = vadd.f32 0.00028619796, %v4205_v58  ;;  %v4217_v27 = vadd.f32 0.001143296, %v4216_v18  ;;  %v8985_v6 = vadd.f32 %v8846_v42, %v3436_v35  ;;  %v3104_v24 = vadd.f32 %v3072_v52, %v3006_v61 }
 0x385   : > { %v4270_v32 = vadd.f32 %v5456_v2, %v4269_v22  ;;  %v3813_v13 = vmul.f32 %v3812_v26, %v8886_v25  ;;  %v3824_v41 = vmul.f32 %v3823_v43, %v8886_v25  ;;  %v2678_v59 = vmul.f32 %v8862_v11, %v8982_v31  ;;  %v9022_v43 = vld [vmem:[#allocation2 + $0x22] sm:$0xff] }
 0x386   : > { %v4207_v9 = vmul.f32 %v4206_v4, %v8970_v10  ;;  %v4218_v57 = vmul.f32 %v4217_v27, %v8970_v10  ;;  %v8997_v14 = vmul.f32 0.70710677, %v8985_v6  ;;  %v3203_v39 = vadd.f32 %v3171_v55, %v3104_v24 }
 0x387   : > { %v4274_v44 = vsel %vm4273_vm5, %v5456_v2, %v4270_v32  ;;  %v3814_v33 = vadd.f32 1.1283791, %v3813_v13  ;;  %v9001_v25 = vadd.f32 1.0, %v3824_v41  ;;  %v3269_v58 = vmul.f32 %v8942_v21, %v3236_v17 }
 0x388   : > { %v4279_v47 = vsel %vm8964_vm3, %v4278_v48, %v4274_v44  ;;  %v4208_v52 = vadd.f32 0.0036580483, %v4207_v9  ;;  %v4219_v62 = vadd.f32 0.014752088, %v4218_v57  ;;  %v3763_v38 = vmul.f32 %v8997_v14, %v8997_v14 }
 0x389   : > { %v4280_v56 = vmul.f32 %v4279_v47, %v8929_v36  ;;  %5457 = vrcp.f32 %v9001_v25  ;;  %v3367_v2 = vmul.f32 %v8960_v45, %v3334_v28  ;;  %v3516_v18 = vmul.f32 0.5, %v8778_v0 }
 0x38a   : > { %v9013_v55 = vmul.f32 0.5, %v8849_v7  ;;  %v4209_v48 = vmul.f32 %v4208_v52, %v8970_v10  ;;  %v4220_v23 = vmul.f32 %v4219_v62, %v8970_v10  ;;  %v9018_v22 = vmul.f32 0.5, %v8924_v46 }
 0x38b   : > { %v5250_v35 = vclamps-f32 %v4280_v56, 1.0  ;;  %v9020_v36 = vmin.f32 %v3763_v38, 16.0  ;;  %v3301_v26 = vadd.f32 %v3269_v58, %v3203_v39  ;;  %v3815_v61 = vmul.f32 %v3814_v33, %v8867_v8 }
 0x38c   : > { %v4210_v4 = vadd.f32 0.05243302, %v4209_v48  ;;  %v4221_v0 = vadd.f32 0.112945676, %v4220_v23  ;;  %v2710_v27 = vadd.f32 %v2678_v59, %v2580_v60  ;;  %v2776_v9 = vmul.f32 %v8872_v12, %v9022_v43 }
 0x38d   : > { %v4860_v7 = vadd.f32 1.0, %v5250_v35  ;;  %v3765_v32 = vmul.f32 2.1237322e-06, %v9020_v36  ;;  %v3776_v13 = vmul.f32 3.8918573e-05, %v9020_v36  ;;  %v3399_v41 = vadd.f32 %v3367_v2, %v3301_v26 }
 0x38e   : > { %v4211_v24 = vmul.f32 %v4210_v4, %v8970_v10  ;;  %v4222_v46 = vmul.f32 %v4221_v0, %v8970_v10  ;;  %v2875_v57 = vmul.f32 %v8671_v34, %v8829_v15  ;;  %v3835_v33 = vand.u32 2147483647, %v9001_v25 }
 0x38f   : > { %v5458_v8 = vpop.eup %5457  ;;  %v4892_v17 = vmul.f32 %v4860_v7, %v3516_v18  ;;  %v3766_v28 = vadd.f32 0.00028619796, %v3765_v32  ;;  %v3777_v60 = vadd.f32 0.001143296, %v3776_v13  ;;  %v3435_v59 = vmul.f32 %v8773_v54, %v3399_v41 }
 0x390   : > { %v3827_v44 = vmul.f32 %v5458_v8, %v9001_v25  ;;  %v4212_v39 = vadd.f32 0.18741608, %v4211_v24  ;;  %v4223_v47 = vadd.f32 0.4994258, %v4222_v46  ;;  %v2808_v56 = vadd.f32 %v2776_v9, %v2710_v27 }
 0x391   : > { %5296 = vmatpush.xpose.msk.msra.mxu2 %vm2469_vm8, %v4892_v17  ;;  %v3767_v52 = vmul.f32 %v3766_v28, %v9020_v36  ;;  %v3778_v62 = vmul.f32 %v3777_v60, %v9020_v36  ;;  %v9040_v38 = vadd.f32 %v8846_v42, %v3435_v59  ;;  %v3837_v2 = vand.u32 2147483648, %v9001_v25 }
 0x392   : > { %v3828_v58 = vsub.f32 1.0, %v3827_v44  ;;  %v4213_v18 = vmul.f32 %v4212_v39, %v8970_v10  ;;  %v4224_v48 = vmul.f32 %v4223_v47, %v8970_v10  ;;  %v2907_v26 = vadd.f32 %v2875_v57, %v2808_v56  ;;  %v5523_v44 = vld [vmem:[#allocation2 + $0x50] sm:$0xff]  ;;  %v9064_v56 = vld [vmem:[#allocation2 + $0x18] sm:$0xff] }
 0x393   : > { %v3768_v23 = vadd.f32 0.0036580483, %v3767_v52  ;;  %v3779_v35 = vadd.f32 0.014752088, %v3778_v62  ;;  %v2973_v4 = vmul.f32 %v8893_v19, %v8835_v1  ;;  %vm3832_vm6 = vweird.f32 %v5458_v8 }
 0x394   : > { %v3829_v0 = vmul.f32 %v5458_v8, %v3828_v58  ;;  %v9047_v7 = vadd.f32 1.0, %v4224_v48  ;;  %v9050_v32 = vmul.f32 0.70710677, %v9040_v38  ;;  %v4214_v27 = vadd.f32 1.1283791, %v4213_v18  ;;  %v9069_v18 = vld [vmem:[#allocation2 + $0x19] sm:$0xff] }
 0x395   : > { %v3769_v13 = vmul.f32 %v3768_v23, %v9020_v36  ;;  %v3780_v41 = vmul.f32 %v3779_v35, %v9020_v36  ;;  %v3005_v24 = vadd.f32 %v2973_v4, %v2907_v26  ;;  %vm3831_vm7 = vweird.f32 %v9001_v25  ;;  %v5524_v35 = vld [vmem:[#allocation2 + $0x51] sm:$0xff] }
 0x396   : > { %v3830_v10 = vadd.f32 %v5458_v8, %v3829_v0  ;;  %5459 = vrcp.f32 %v9047_v7  ;;  %v3071_v46 = vmul.f32 %v8917_v37, %v8840_v20  ;;  %vm3833_vm10 = vmor %vm3831_vm7, %vm3832_vm6  ;;  %vm3836_vm11 = vcmp.eq.f32.partialorder %v3835_v33, 8.507059e+37 }
 0x397   : > { %v3838_v9 = vor.u32 1.1754944e-38, %v3837_v2  ;;  %v3770_v57 = vadd.f32 0.05243302, %v3769_v13  ;;  %v3723_v17 = vmul.f32 %v9050_v32, %v9050_v32  ;;  %v3781_v60 = vadd.f32 0.112945676, %v3780_v41 }
 0x398   : > { %v3834_v28 = vsel %vm3833_vm10, %v5458_v8, %v3830_v10  ;;  %v3103_v59 = vadd.f32 %v3071_v46, %v3005_v24  ;;  %v3170_v39 = vmul.f32 %v5523_v44, %v8935_v5  ;;  %v4215_v25 = vmul.f32 %v4214_v27, %v8946_v50 }
 0x399   : > { %v3839_v47 = vsel %vm3836_vm11, %v3838_v9, %v3834_v28  ;;  %v4235_v52 = vand.u32 2147483647, %v9047_v7  ;;  %v3771_v62 = vmul.f32 %v3770_v57, %v9020_v36  ;;  %v3782_v58 = vmul.f32 %v3781_v60, %v9020_v36  ;;  %v9084_v28 = vld [vmem:[#allocation2 + $0x1a] sm:$0xff] }
 0x39a   : > { %v3840_v33 = vmul.f32 %v3839_v47, %v3815_v61  ;;  %v9067_v2 = vmin.f32 %v3723_v17, 16.0  ;;  %v3202_v8 = vadd.f32 %v3170_v39, %v3103_v59  ;;  %v4237_v48 = vand.u32 2147483648, %v9047_v7 }
 0x39b   : > { %v3772_v23 = vadd.f32 0.18741608, %v3771_v62  ;;  %v3268_v50 = vmul.f32 %v5524_v35, %v8942_v21  ;;  %v3366_v26 = vmul.f32 %v8960_v45, %v8587_v3  ;;  %v3783_v27 = vadd.f32 0.4994258, %v3782_v58 }
 0x39c   : > { %v5460_v4 = vpop.eup %5459  ;;  %v5239_v0 = vclamps-f32 %v3840_v33, 1.0  ;;  %v3725_v61 = vmul.f32 2.1237322e-06, %v9067_v2  ;;  %v2579_v13 = vmul.f32 %v8854_v49, %v9064_v56  ;;  %v3736_v10 = vmul.f32 3.8918573e-05, %v9067_v2 }
 0x39d   : > { %v4227_v41 = vmul.f32 %v5460_v4, %v9047_v7  ;;  %v3773_v24 = vmul.f32 %v3772_v23, %v9020_v36  ;;  %v2677_v46 = vmul.f32 %v8862_v11, %v9069_v18  ;;  %v3784_v3 = vmul.f32 %v3783_v27, %v9020_v36  ;;  %v2643_v23 = vld [vmem:[#allocation2 + $0x9] sm:$0xff] }
 0x39e   : > { %v4849_v9 = vadd.f32 1.0, %v5239_v0  ;;  %v3726_v57 = vadd.f32 0.00028619796, %v3725_v61  ;;  %v3300_v17 = vadd.f32 %v3268_v50, %v3202_v8  ;;  %vm4231_vm12 = vweird.f32 %v9047_v7 }
 0x39f   : > { %v4228_v60 = vsub.f32 1.0, %v4227_v41  ;;  %v3774_v59 = vadd.f32 1.1283791, %v3773_v24  ;;  %v3737_v44 = vadd.f32 0.001143296, %v3736_v10  ;;  %v9088_v47 = vadd.f32 1.0, %v3784_v3 }
 0x3a0   : > { %v4881_v39 = vmul.f32 %v4849_v9, %v9013_v55  ;;  %v3727_v62 = vmul.f32 %v3726_v57, %v9067_v2  ;;  %v3398_v33 = vadd.f32 %v3366_v26, %v3300_v17  ;;  %vm4232_vm13 = vweird.f32 %v5460_v4 }
 0x3a1   : > { %v4229_v58 = vmul.f32 %v5460_v4, %v4228_v60  ;;  %v3738_v36 = vmul.f32 %v3737_v44, %v9067_v2  ;;  %v2775_v8 = vmul.f32 %v8872_v12, %v9084_v28  ;;  %vm9095_vm14 = vcmp.eq.f32.partialorder %v4235_v52, 8.507059e+37  ;;  %vm4233_vm15 = vmor %vm4231_vm12, %vm4232_vm13 }
 0x3a2   : > { %5274 = vmatpush.xpose.msk.msrb.mxu1 %vm2469_vm8, %v4881_v39  ;;  %v4238_v35 = vor.u32 1.1754944e-38, %v4237_v48  ;;  %5461 = vrcp.f32 %v9088_v47  ;;  %v2709_v55 = vadd.f32 %v2677_v46, %v2579_v13  ;;  %v3728_v0 = vadd.f32 0.0036580483, %v3727_v62 }
 0x3a3   : > { %v4230_v50 = vadd.f32 %v5460_v4, %v4229_v58  ;;  %v3739_v26 = vadd.f32 0.014752088, %v3738_v36  ;;  %v3434_v27 = vmul.f32 %v8773_v54, %v3398_v33  ;;  %v9104_v61 = vmul.f32 %v3774_v59, %v8997_v14  ;;  %v2545_v58 = vld [vmem:[#allocation2 + $0x8] sm:$0xff] }
 0x3a4   : > { %v3795_v52 = vand.u32 2147483647, %v9088_v47  ;;  %v2807_v41 = vadd.f32 %v2775_v8, %v2709_v55  ;;  %v2874_v48 = vmul.f32 %v8671_v34, %v8900_v16  ;;  %v3729_v13 = vmul.f32 %v3728_v0, %v9067_v2  ;;  %v2741_v0 = vld [vmem:[#allocation2 + $0xa] sm:$0xff] }
 0x3a5   : > { %v4234_v24 = vsel %vm4233_vm15, %v5460_v4, %v4230_v50  ;;  %v3740_v10 = vmul.f32 %v3739_v26, %v9067_v2  ;;  %v9112_v46 = vadd.f32 %v8846_v42, %v3434_v27  ;;  %v2972_v14 = vmul.f32 %v8893_v19, %v8902_v51 }
 0x3a6   : > { %v4239_v7 = vsel %vm9095_vm14, %v4238_v35, %v4234_v24  ;;  %v2906_v9 = vadd.f32 %v2874_v48, %v2807_v41  ;;  %v3070_v3 = vmul.f32 %v8917_v37, %v8926_v29  ;;  %vm3791_vm9 = vweird.f32 %v9088_v47 }
 0x3a7   : > { %v4240_v57 = vmul.f32 %v4239_v7, %v4215_v25  ;;  %v3797_v4 = vand.u32 2147483648, %v9088_v47  ;;  %v3730_v17 = vadd.f32 0.05243302, %v3729_v13  ;;  %v3741_v60 = vadd.f32 0.112945676, %v3740_v10 }
 0x3a8   : > { %v5462_v59 = vpop.eup %5461  ;;  %v9123_v44 = vmul.f32 0.70710677, %v9112_v46  ;;  %v3004_v39 = vadd.f32 %v2972_v14, %v2906_v9  ;;  %v3169_v62 = vmul.f32 %v8935_v5, %v8729_v40  ;;  %v3267_v33 = vmul.f32 %v8942_v21, %v8738_v30 }
 0x3a9   : > { %v5249_v36 = vclamps-f32 %v4240_v57, 1.0  ;;  %v3787_v25 = vmul.f32 %v5462_v59, %v9088_v47  ;;  %vm3792_vm2 = vweird.f32 %v5462_v59  ;;  %v3731_v8 = vmul.f32 %v3730_v17, %v9067_v2 }
 0x3aa   : > { %v3742_v35 = vmul.f32 %v3741_v60, %v9067_v2  ;;  %v3683_v55 = vmul.f32 %v9123_v44, %v9123_v44  ;;  %v3102_v50 = vadd.f32 %v3070_v3, %v3004_v39  ;;  %v3365_v40 = vmul.f32 %v8960_v45, %v8740_v63  ;;  %vm3793_vm3 = vmor %vm3791_vm9, %vm3792_vm2 }
 0x3ab   : > { %v4859_v26 = vadd.f32 1.0, %v5249_v36  ;;  %v3788_v30 = vsub.f32 1.0, %v3787_v25  ;;  %v3732_v27 = vadd.f32 0.18741608, %v3731_v8  ;;  %v2578_v41 = vmul.f32 %v8854_v49, %v2545_v58 }
 0x3ac   : > { %v3743_v48 = vadd.f32 0.4994258, %v3742_v35  ;;  %v9137_v24 = vmin.f32 %v3683_v55, 16.0  ;;  %v3201_v13 = vadd.f32 %v3169_v62, %v3102_v50  ;;  %v2676_v10 = vmul.f32 %v8862_v11, %v2643_v23 }
 0x3ad   : > { %v4891_v7 = vmul.f32 %v4859_v26, %v9018_v22  ;;  %v3789_v9 = vmul.f32 %v5462_v59, %v3788_v30  ;;  %v3733_v14 = vmul.f32 %v3732_v27, %v9067_v2  ;;  %v2774_v3 = vmul.f32 %v8872_v12, %v2741_v0  ;;  %v2544_v27 = vld [vmem:[#allocation2] sm:$0xff] }
 0x3ae   : > { %v3744_v63 = vmul.f32 %v3743_v48, %v9067_v2  ;;  %v3685_v57 = vmul.f32 2.1237322e-06, %v9137_v24  ;;  %v3696_v17 = vmul.f32 3.8918573e-05, %v9137_v24  ;;  %v3299_v60 = vadd.f32 %v3267_v33, %v3201_v13 }
 0x3af   : > { %5297 = vmatpush.xpose.msk.msra.mxu2 %vm2469_vm8, %v4891_v7  ;;  %v3790_v39 = vadd.f32 %v5462_v59, %v3789_v9  ;;  %v3798_v62 = vor.u32 1.1754944e-38, %v3797_v4  ;;  %v2708_v58 = vadd.f32 %v2676_v10, %v2578_v41  ;;  %v2873_v22 = vmul.f32 %v8671_v34, %v8977_v53  ;;  %v2642_v10 = vld [vmem:[#allocation2 + $0x1] sm:$0xff] }
 0x3b0   : > { %v9152_v36 = vadd.f32 1.0, %v3744_v63  ;;  %v3686_v2 = vadd.f32 0.00028619796, %v3685_v57  ;;  %v3697_v25 = vadd.f32 0.001143296, %v3696_v17  ;;  %v3397_v8 = vadd.f32 %v3365_v40, %v3299_v60  ;;  %v2740_v63 = vld [vmem:[#allocation2 + $0x2] sm:$0xff] }
 0x3b1   : > { %v3794_v23 = vsel %vm3793_vm3, %v5462_v59, %v3790_v39  ;;  %vm3796_vm4 = vcmp.eq.f32.partialorder %v3795_v52, 8.507059e+37  ;;  %v3734_v33 = vadd.f32 1.1283791, %v3733_v14  ;;  %v2806_v35 = vadd.f32 %v2774_v3, %v2708_v58 }
 0x3b2   : > { %v3799_v55 = vsel %vm3796_vm4, %v3798_v62, %v3794_v23  ;;  %5463 = vrcp.f32 %v9152_v36  ;;  %v3687_v34 = vmul.f32 %v3686_v2, %v9137_v24  ;;  %v3698_v53 = vmul.f32 %v3697_v25, %v9137_v24 }
 0x3b3   : > { %v3800_v4 = vmul.f32 %v3799_v55, %v9104_v61  ;;  %v3504_v47 = vmul.f32 0.5, %v8985_v6  ;;  %v3433_v50 = vmul.f32 %v8773_v54, %v3397_v8  ;;  %v2905_v0 = vadd.f32 %v2873_v22, %v2806_v35 }
 0x3b4   : > { %v2971_v59 = vmul.f32 %v8893_v19, %v8982_v31  ;;  %v3735_v40 = vmul.f32 %v3734_v33, %v9050_v32  ;;  %v3688_v26 = vadd.f32 0.0036580483, %v3687_v34  ;;  %v3699_v30 = vadd.f32 0.014752088, %v3698_v53 }
 0x3b5   : > { %v5238_v52 = vclamps-f32 %v3800_v4, 1.0  ;;  %v9164_v61 = vadd.f32 %v8846_v42, %v3433_v50  ;;  %v3069_v48 = vmul.f32 %v8917_v37, %v9022_v43  ;;  %v3168_v6 = vmul.f32 %v8935_v5, %v8829_v15 }
 0x3b6   : > { %v3003_v41 = vadd.f32 %v2971_v59, %v2905_v0  ;;  %vm3751_vm5 = vweird.f32 %v9152_v36  ;;  %v3689_v31 = vmul.f32 %v3688_v26, %v9137_v24  ;;  %v3700_v32 = vmul.f32 %v3699_v30, %v9137_v24 }
 0x3b7   : > { %v4848_v13 = vadd.f32 1.0, %v5238_v52  ;;  %v3755_v9 = vand.u32 2147483647, %v9152_v36  ;;  %v9175_v14 = vmul.f32 0.70710677, %v9164_v61  ;;  %v2577_v43 = vmul.f32 %v8854_v49, %v2544_v27 }
 0x3b8   : > { %v5464_v7 = vpop.eup %5463  ;;  %v3101_v3 = vadd.f32 %v3069_v48, %v3003_v41  ;;  %v3757_v17 = vand.u32 2147483648, %v9152_v36  ;;  %v3266_v60 = vmul.f32 %v8942_v21, %v8835_v1  ;;  %v3701_v39 = vadd.f32 0.112945676, %v3700_v32 }
 0x3b9   : > { %v4880_v57 = vmul.f32 %v4848_v13, %v3504_v47  ;;  %v3747_v15 = vmul.f32 %v5464_v7, %v9152_v36  ;;  %v3643_v62 = vmul.f32 %v9175_v14, %v9175_v14  ;;  %v2675_v22 = vmul.f32 %v8862_v11, %v2642_v10  ;;  %v5525_v11 = vld [vmem:[%s9316_s4 + $0x3] ss:$0 sm:$0xff] }
 0x3ba   : > { %v3200_v58 = vadd.f32 %v3168_v6, %v3101_v3  ;;  %v3690_v49 = vadd.f32 0.05243302, %v3689_v31  ;;  %v3364_v25 = vmul.f32 %v8960_v45, %v8840_v20  ;;  %v2773_v8 = vmul.f32 %v8872_v12, %v2740_v63 }
 0x3bb   : > { %5275 = vmatpush.xpose.msk.msrb.mxu1 %vm2469_vm8, %v4880_v57  ;;  %v3748_v2 = vsub.f32 1.0, %v3747_v15  ;;  %v3702_v23 = vmul.f32 %v3701_v39, %v9137_v24  ;;  %v9190_v33 = vmin.f32 %v3643_v62, 16.0  ;;  %v2707_v35 = vadd.f32 %v2675_v22, %v2577_v43 }
 0x3bc   : > { %v3298_v1 = vadd.f32 %v3266_v60, %v3200_v58  ;;  %vm3752_vm6 = vweird.f32 %v5464_v7  ;;  %vm9192_vm7 = vcmp.eq.f32.partialorder %v3755_v9, 8.507059e+37  ;;  %v2872_v20 = vmul.f32 %v5525_v11, %v9064_v56 }
 0x3bd   : > { %v3749_v55 = vmul.f32 %v5464_v7, %v3748_v2  ;;  %v3703_v34 = vadd.f32 0.4994258, %v3702_v23  ;;  %v3645_v12 = vmul.f32 2.1237322e-06, %v9190_v33  ;;  %v3656_v53 = vmul.f32 3.8918573e-05, %v9190_v33  ;;  %vm3753_vm10 = vmor %vm3751_vm5, %vm3752_vm6 }
 0x3be   : > { %v3396_v47 = vadd.f32 %v3364_v25, %v3298_v1  ;;  %v3758_v0 = vor.u32 1.1754944e-38, %v3757_v17  ;;  %v3691_v59 = vmul.f32 %v3690_v49, %v9137_v24  ;;  %v2805_v52 = vadd.f32 %v2773_v8, %v2707_v35 }
 0x3bf   : > { %v3750_v50 = vadd.f32 %v5464_v7, %v3749_v55  ;;  %v3704_v26 = vmul.f32 %v3703_v34, %v9137_v24  ;;  %v3646_v30 = vadd.f32 0.00028619796, %v3645_v12  ;;  %v3657_v27 = vadd.f32 0.001143296, %v3656_v53 }
 0x3c0   : > { %v3432_v56 = vmul.f32 %v8773_v54, %v3396_v47  ;;  %v2904_v48 = vadd.f32 %v2872_v20, %v2805_v52  ;;  %v2970_v6 = vmul.f32 %v8893_v19, %v9069_v18  ;;  %v3068_v13 = vmul.f32 %v8917_v37, %v9084_v28 }
 0x3c1   : > { %v3754_v41 = vsel %vm3753_vm10, %v5464_v7, %v3750_v50  ;;  %v3705_v32 = vadd.f32 1.0, %v3704_v26  ;;  %v3647_v36 = vmul.f32 %v3646_v30, %v9190_v33  ;;  %v3658_v10 = vmul.f32 %v3657_v27, %v9190_v33 }
 0x3c2   : > { %v3759_v31 = vsel %vm9192_vm7, %v3758_v0, %v3754_v41  ;;  %v9216_v3 = vadd.f32 %v8846_v42, %v3432_v56  ;;  %v3002_v7 = vadd.f32 %v2970_v6, %v2904_v48  ;;  %v3167_v19 = vmul.f32 %v8935_v5, %v8900_v16 }
 0x3c3   : > { %v3760_v9 = vmul.f32 %v3759_v31, %v3735_v40  ;;  %5465 = vrcp.f32 %v3705_v32  ;;  %v3692_v43 = vadd.f32 0.18741608, %v3691_v59  ;;  %v3659_v37 = vadd.f32 0.014752088, %v3658_v10 }
 0x3c4   : > { %v3648_v28 = vadd.f32 0.0036580483, %v3647_v36  ;;  %v9221_v63 = vmul.f32 0.70710677, %v9216_v3  ;;  %v3100_v57 = vadd.f32 %v3068_v13, %v3002_v7  ;;  %v3503_v15 = vmul.f32 0.5, %v9040_v38 }
 0x3c5   : > { %v5237_v18 = vclamps-f32 %v3760_v9, 1.0  ;;  %v3660_v40 = vmul.f32 %v3659_v37, %v9190_v33  ;;  %v3265_v16 = vmul.f32 %v8942_v21, %v8902_v51  ;;  %v3363_v5 = vmul.f32 %v8960_v45, %v8926_v29 }
 0x3c6   : > { %v3603_v60 = vmul.f32 %v9221_v63, %v9221_v63  ;;  %v3199_v39 = vadd.f32 %v3167_v19, %v3100_v57  ;;  %v3693_v58 = vmul.f32 %v3692_v43, %v9137_v24  ;;  %v3649_v38 = vmul.f32 %v3648_v28, %v9190_v33 }
 0x3c7   : > { %v4847_v17 = vadd.f32 1.0, %v5237_v18  ;;  %v3661_v22 = vadd.f32 0.112945676, %v3660_v40  ;;  %v3717_v24 = vand.u32 2147483648, %v3705_v32  ;;  %v3715_v12 = vand.u32 2147483647, %v3705_v32 }
 0x3c8   : > { %v9233_v49 = vmin.f32 %v3603_v60, 16.0  ;;  %v3297_v25 = vadd.f32 %v3265_v16, %v3199_v39  ;;  %v3694_v45 = vadd.f32 1.1283791, %v3693_v58  ;;  %v3650_v55 = vadd.f32 0.05243302, %v3649_v38 }
 0x3c9   : > { %v4879_v62 = vmul.f32 %v4847_v17, %v3503_v15  ;;  %v5466_v2 = vpop.eup %5465  ;;  %v3662_v23 = vmul.f32 %v3661_v22, %v9190_v33  ;;  %vm3711_vm12 = vweird.f32 %v3705_v32  ;;  %v3718_v26 = vor.u32 1.1754944e-38, %v3717_v24 }
 0x3ca   : > { %v3707_v8 = vmul.f32 %v5466_v2, %v3705_v32  ;;  %v3605_v51 = vmul.f32 2.1237322e-06, %v9233_v49  ;;  %v3616_v21 = vmul.f32 3.8918573e-05, %v9233_v49  ;;  %v3395_v29 = vadd.f32 %v3363_v5, %v3297_v25 }
 0x3cb   : > { %5276 = vmatpush.xpose.msk.msrb.mxu1 %vm2469_vm8, %v4879_v62  ;;  %v3663_v35 = vadd.f32 0.4994258, %v3662_v23  ;;  %vm3712_vm11 = vweird.f32 %v5466_v2  ;;  %v3651_v30 = vmul.f32 %v3650_v55, %v9190_v33  ;;  %v3695_v56 = vmul.f32 %v3694_v45, %v9123_v44 }
 0x3cc   : > { %v3708_v1 = vsub.f32 1.0, %v3707_v8  ;;  %v3606_v4 = vadd.f32 0.00028619796, %v3605_v51  ;;  %v3617_v11 = vadd.f32 0.001143296, %v3616_v21  ;;  %v3431_v20 = vmul.f32 %v8773_v54, %v3395_v29  ;;  %vm3713_vm13 = vmor %vm3711_vm12, %vm3712_vm11 }
 0x3cd   : > { %v3664_v53 = vmul.f32 %v3663_v35, %v9190_v33  ;;  %vm3716_vm14 = vcmp.eq.f32.partialorder %v3715_v12, 8.507059e+37  ;;  %v3502_v44 = vmul.f32 0.5, %v9112_v46 }
 0x3ce   : > { %v3709_v34 = vmul.f32 %v5466_v2, %v3708_v1  ;;  %v3607_v47 = vmul.f32 %v3606_v4, %v9233_v49  ;;  %v3618_v50 = vmul.f32 %v3617_v11, %v9233_v49  ;;  %v9244_v52 = vadd.f32 %v8846_v42, %v3431_v20 }
 0x3cf   : > { %v3665_v59 = vadd.f32 1.0, %v3664_v53  ;;  %v3652_v42 = vadd.f32 0.18741608, %v3651_v30  ;;  %v3501_v53 = vmul.f32 0.5, %v9164_v61  ;;  %v4907_v30 = vld [vmem:[%s9319_s7] sm:$0xf] }
 0x3d0   : > { %v3710_v0 = vadd.f32 %v5466_v2, %v3709_v34  ;;  %v3608_v54 = vadd.f32 0.0036580483, %v3607_v47  ;;  %v3619_v27 = vadd.f32 0.014752088, %v3618_v50  ;;  %v9250_v31 = vmul.f32 0.70710677, %v9244_v52  ;;  %5298 = vmatmul.msk.f32.vlgmr.msra.gmra.mxu2 %vm2469_vm8, %v4907_v30 }
 0x3d1   : > { %5467 = vrcp.f32 %v3665_v59  ;;  %v3653_v37 = vmul.f32 %v3652_v42, %v9190_v33  ;;  %v3677_v16 = vand.u32 2147483648, %v3665_v59  ;;  %v3675_v33 = vand.u32 2147483647, %v3665_v59 }
 0x3d2   : > { %v3714_v41 = vsel %vm3713_vm13, %v5466_v2, %v3710_v0  ;;  %v3620_v13 = vmul.f32 %v3619_v27, %v9233_v49  ;;  %v3609_v32 = vmul.f32 %v3608_v54, %v9233_v49  ;;  %v3563_v9 = vmul.f32 %v9250_v31, %v9250_v31 }
 0x3d3   : > { %v3719_v48 = vsel %vm3716_vm14, %v3718_v26, %v3714_v41  ;;  %v3654_v58 = vadd.f32 1.1283791, %v3653_v37  ;;  %vm3671_vm9 = vweird.f32 %v3665_v59  ;;  %v3678_v51 = vor.u32 1.1754944e-38, %v3677_v16  ;;  %v421_v37 = vld [vmem:[%s5637_s22 + $0x118] sm:$0xff] }
 0x3d4   : > { %v3720_v6 = vmul.f32 %v3719_v48, %v3695_v56  ;;  %v3621_v10 = vadd.f32 0.112945676, %v3620_v13  ;;  %v9257_v43 = vmin.f32 %v3563_v9, 16.0  ;;  %v3610_v57 = vadd.f32 0.05243302, %v3609_v32 }
 0x3d5   : > { %v3655_v21 = vmul.f32 %v3654_v58, %v9175_v14  ;;  %vm3676_vm3 = vcmp.eq.f32.partialorder %v3675_v33, 8.507059e+37  ;;  %v5047_v13 = vld [vmem:[%s9320_s8] sm:$0xf]  ;;  %v5551_v32 = vmov 0  }
 0x3d6   : > { %v5236_v36 = vclamps-f32 %v3720_v6, 1.0  ;;  %v3622_v18 = vmul.f32 %v3621_v10, %v9233_v49  ;;  %v3565_v40 = vmul.f32 2.1237322e-06, %v9257_v43  ;;  %v3576_v60 = vmul.f32 3.8918573e-05, %v9257_v43  ;;  %v420_v6 = vld [vmem:[%s5637_s22 + $0x110] sm:$0xff]  ;;  %5331 = vset.pattern.permute.xlu0 %v5551_v32 }
 0x3d7   : > { %v5468_v7 = vpop.eup %5467  ;;  %v3611_v2 = vmul.f32 %v3610_v57, %v9233_v49  ;;  %5195 = vmatmul.msk.f32.gmra.mxu3 %vm423_vm1, %v420_v6  ;;  %5050 = vperm.xlu0 %5331, %v5047_v13   ;;  %s5301_s22 = sshll.u32 %s9483_s13, 3 }
 0x3d8   : > { %v4846_v19 = vadd.f32 1.0, %v5236_v36  ;;  %v3667_v28 = vmul.f32 %v5468_v7, %v3665_v59  ;;  %v3623_v17 = vadd.f32 0.4994258, %v3622_v18  ;;  %v3566_v5 = vadd.f32 0.00028619796, %v3565_v40  ;;  %s381_s28 = scalar_lea.vmem %s9322_s10, %s5301_s22 }
 0x3d9   : > { %v3577_v62 = vadd.f32 0.001143296, %v3576_v60  ;;  %vm3672_vm15 = vweird.f32 %v5468_v7  ;;  %v3612_v24 = vadd.f32 0.18741608, %v3611_v2 }
 0x3da   : > { %v4878_v15 = vmul.f32 %v4846_v19, %v3502_v44  ;;  %v3668_v39 = vsub.f32 1.0, %v3667_v28  ;;  %v3624_v46 = vmul.f32 %v3623_v17, %v9233_v49  ;;  %v3567_v23 = vmul.f32 %v3566_v5, %v9257_v43  ;;  %vm3673_vm2 = vmor %vm3671_vm9, %vm3672_vm15 }
 0x3db   : > { %v3578_v25 = vmul.f32 %v3577_v62, %v9257_v43  ;;  %v3613_v12 = vmul.f32 %v3612_v24, %v9233_v49  ;;  %v3500_v17 = vmul.f32 0.5, %v9216_v3 }
 0x3dc   : > { %5277 = vmatpush.xpose.msk.msrb.mxu1 %vm2469_vm8, %v4878_v15  ;;  %v3669_v22 = vmul.f32 %v5468_v7, %v3668_v39  ;;  %v3625_v38 = vadd.f32 1.0, %v3624_v46  ;;  %v3568_v55 = vadd.f32 0.0036580483, %v3567_v23  ;;  %v5055_v15 = vld [vmem:[%s9321_s9] sm:$0xf]  ;;  %v3499_v23 = vmul.f32 0.5, %v9244_v52 }
 0x3dd   : > { %v3579_v45 = vadd.f32 0.014752088, %v3578_v25  ;;  %v3614_v54 = vadd.f32 1.1283791, %v3613_v12 }
 0x3de   : > { %v3670_v8 = vadd.f32 %v5468_v7, %v3669_v22  ;;  %5469 = vrcp.f32 %v3625_v38  ;;  %v3569_v14 = vmul.f32 %v3568_v55, %v9257_v43  ;;  %v3637_v27 = vand.u32 2147483648, %v3625_v38 }
 0x3df   : > { %v3580_v4 = vmul.f32 %v3579_v45, %v9257_v43  ;;  %v3635_v49 = vand.u32 2147483647, %v3625_v38  ;;  %vm3631_vm5 = vweird.f32 %v3625_v38  ;;  %v3615_v9 = vmul.f32 %v3614_v54, %v9221_v63  ;;  %5196 = vmatmul.msk.f32.gmra.mxu3 %vm423_vm1, %v421_v37  ;;  %5058 = vperm.xlu0 %5331, %v5055_v15  }
 0x3e0   : > { %v3674_v29 = vsel %vm3673_vm2, %v5468_v7, %v3670_v8  ;;  %v3570_v41 = vadd.f32 0.05243302, %v3569_v14  ;;  %v3638_v36 = vor.u32 1.1754944e-38, %v3637_v27 }
 0x3e1   : > { %v3679_v1 = vsel %vm3676_vm3, %v3678_v51, %v3674_v29  ;;  %v3581_v20 = vadd.f32 0.112945676, %v3580_v4  ;;  %vm3636_vm7 = vcmp.eq.f32.partialorder %v3635_v49, 8.507059e+37 }
 0x3e2   : > { %v3680_v35 = vmul.f32 %v3679_v1, %v3655_v21  ;;  %v3571_v44 = vmul.f32 %v3570_v41, %v9257_v43 }
 0x3e3   : > { %v3582_v0 = vmul.f32 %v3581_v20, %v9257_v43 }
 0x3e4   : > { %v5235_v11 = vclamps-f32 %v3680_v35, 1.0  ;;  %v5470_v34 = vpop.eup %5469  ;;  %v3572_v57 = vadd.f32 0.18741608, %v3571_v44 }
 0x3e5   : > { %v3627_v50 = vmul.f32 %v5470_v34, %v3625_v38  ;;  %v3583_v56 = vadd.f32 0.4994258, %v3582_v0  ;;  %vm3632_vm4 = vweird.f32 %v5470_v34 }
 0x3e6   : > { %v4845_v47 = vadd.f32 1.0, %v5235_v11  ;;  %vm3633_vm6 = vmor %vm3631_vm5, %vm3632_vm4  ;;  %v3573_v39 = vmul.f32 %v3572_v57, %v9257_v43 }
 0x3e7   : > { %v3628_v26 = vsub.f32 1.0, %v3627_v50  ;;  %v3584_v48 = vmul.f32 %v3583_v56, %v9257_v43 }
 0x3e8   : > { %v4877_v59 = vmul.f32 %v4845_v47, %v3501_v53  ;;  %v3574_v62 = vadd.f32 1.1283791, %v3573_v39 }
 0x3e9   : > { %v3629_v61 = vmul.f32 %v5470_v34, %v3628_v26  ;;  %v3585_v10 = vadd.f32 1.0, %v3584_v48 }
 0x3ea   : > { %5278 = vmatpush.xpose.msk.msrb.mxu1 %vm2469_vm8, %v4877_v59  ;;  %v3575_v2 = vmul.f32 %v3574_v62, %v9250_v31 }
 0x3eb   : > { %v3630_v42 = vadd.f32 %v5470_v34, %v3629_v61  ;;  %5471 = vrcp.f32 %v3585_v10  ;;  %v3597_v5 = vand.u32 2147483648, %v3585_v10  ;;  %v3595_v22 = vand.u32 2147483647, %v3585_v10 }
 0x3ec   : > { %vm3591_vm11 = vweird.f32 %v3585_v10 }
 0x3ed   : > { %v3634_v7 = vsel %vm3633_vm6, %v5470_v34, %v3630_v42  ;;  %v3598_v3 = vor.u32 1.1754944e-38, %v3597_v5  ;;  %vm3596_vm1 = vcmp.eq.f32.partialorder %v3595_v22, 8.507059e+37 }
 0x3ee   : > { %v3639_v19 = vsel %vm3636_vm7, %v3638_v36, %v3634_v7 }
 0x3ef   : > { %v3640_v18 = vmul.f32 %v3639_v19, %v3615_v9 }
 0x3f1   : > { %v5234_v28 = vclamps-f32 %v3640_v18, 1.0  ;;  %v5472_v63 = vpop.eup %5471 }
 0x3f2   : > { %v3587_v16 = vmul.f32 %v5472_v63, %v3585_v10  ;;  %vm3592_vm10 = vweird.f32 %v5472_v63 }
 0x3f3   : > { %v4844_v40 = vadd.f32 1.0, %v5234_v28  ;;  %vm3593_vm12 = vmor %vm3591_vm11, %vm3592_vm10 }
 0x3f4   : > { %v3588_v46 = vsub.f32 1.0, %v3587_v16 }
 0x3f5   : > { %v4876_v60 = vmul.f32 %v4844_v40, %v3500_v17 }
 0x3f6   : > { %v3589_v58 = vmul.f32 %v5472_v63, %v3588_v46 }
 0x3f7   : > { %5279 = vmatpush.xpose.msk.msrb.mxu1 %vm2469_vm8, %v4876_v60 }
 0x3f8   : > { %v3590_v33 = vadd.f32 %v5472_v63, %v3589_v58 }
 0x3fa   : > { %v3594_v38 = vsel %vm3593_vm12, %v5472_v63, %v3590_v33 }
 0x3fb   : > { %v3599_v25 = vsel %vm3596_vm1, %v3598_v3, %v3594_v38 }
 0x3fc   : > { %v3600_v43 = vmul.f32 %v3599_v25, %v3575_v2 }
 0x3fe   : > { %v5233_v8 = vclamps-f32 %v3600_v43, 1.0 }
 0x400   : > { %v4843_v51 = vadd.f32 1.0, %v5233_v8 }
 0x402   : > { %v4875_v21 = vmul.f32 %v4843_v51, %v3499_v23 }
 0x404   : > { %5280 = vmatpush.xpose.msk.msrb.mxu1 %vm2469_vm8, %v4875_v21 }
 0x407   : > { %5281 = vmatmul.msk.f32.vlgmr.msrb.gmra.mxu1 %vm2469_vm8, %v4907_v30 }
 0x449   : > { %v5051_v1 = vpop.permute.xlu0 %5050 }
 0x451   : > { %v5059_v31 = vpop.permute.xlu0 %5058 }
 0x453   : > { %v5044_v24 = vpop.f32.mrf.mxu2 }
 0x454   : > { %v5054_v35 = vmul.f32 %v5051_v1, %v5044_v24 }
 0x456   : > { %v5062_v55 = vadd.f32 %v5059_v31, %v5054_v35 }
 0x458   : > { %v5065_v20 = vrot.slane %v5062_v55, 4 }
 0x45a   : > { %v655_v29 = vpop.f32.mrf.mxu3 }
 0x462   : > { %v658_v45 = vpop.f32.mrf.mxu3 }
 0x484   : > { %v5024_v4 = vpop.f32.mrf.mxu1 }
 0x485   : > { %v5053_v11 = vmul.f32 %v5051_v1, %v5024_v4 }
 0x487   : > { %v5061_v52 = vadd.f32 %v5059_v31, %v5053_v11 }
 0x489   : > { %v5066_v34 = vsel %vm532_vm0, %v5061_v52, %v5065_v20 }
 0x48a   : > { %5068 = vst [vmem:[%s381_s28] sm:$0xff] %v5066_v34 }
 0x48b PF: > { %s20_s15 = sadd.s32 1, %s5548_s15   ;;  %s9478_s13 = smov %s5544_s14 }
 0x48c   : > { %p17_p5 = scmp.ge.s32.totalorder %s20_s15, 4   ;;  %s9479_s14 = smov %s9481_s16 }
 0x48e   :  { %19 = sbr.rel (!%p17_p5) target bundleno = 2 (0x2), region = 93 }

</bundles_post_ra>
